<compile_context>
chip_gen: v7x
topology: tpu7x:2x2x1
jax: 0.10.0
libtpu: 0.0.40
codegen_flags: <defaults>
</compile_context>

<pallas_src>
import jax
import jax.numpy as jnp
from jax.experimental import pallas as pl
from jax.experimental.pallas import tpu as pltpu

BN_EPS = 1e-5


# ----------------------------------------------------------------------------
# BN (eval-mode) folding
# ----------------------------------------------------------------------------
def fold_bn(gamma, beta, running_mean, running_var, eps=BN_EPS):
    scale = gamma / jnp.sqrt(running_var + eps)
    shift = beta - running_mean * scale
    return scale, shift


# ----------------------------------------------------------------------------
# Generation-aware VMEM capacity (v5e/v6e: 128 MiB, v7x: 64 MiB per TensorCore)
# ----------------------------------------------------------------------------
def _vmem_capacity_bytes():
    try:
        return int(pltpu.get_tpu_info().vmem_capacity_bytes)
    except Exception:
        return 64 * 2 ** 20          # conservative: assume v7x


# ----------------------------------------------------------------------------
# Conservative per-step VMEM estimate (includes in-kernel temporaries)
# ----------------------------------------------------------------------------
def _vmem_estimate(tile_h, halo_h, W, Cin, Cmid, Cout, pad, act_isz, w_isz):
    Wp = W + 2 * pad
    M = tile_h * W
    # double-buffered streamed blocks: body x (+ two halos) + output
    stream = 2 * act_isz * W * (Cin * (tile_h + 2 * halo_h) + Cout * tile_h)
    # double-buffered weight / bias blocks (constant index maps)
    weights = 2 * (w_isz * (Cin * Cmid + 9 * Cmid * Cmid + Cmid * Cout)
                   + 4 * (2 * Cmid + Cout))
    # persistent padded stage-1 scratch (f32)
    scratch = 4 * (tile_h + 2 * pad) * Wp * Cmid
    # transient values: y1, im2col patches, y2, pre-store out, f32 residual
    temps = 4 * (M * Cmid + M * 9 * Cmid + M * Cmid + M * Cout + M * Cin)
    return stream + weights + scratch + temps


# ----------------------------------------------------------------------------
# Tile selection: returns (tile_h, use_halo)
#   use_halo=False -> one whole-image tile per batch element, no halo inputs.
# ----------------------------------------------------------------------------
def _pick_tiling(N, H, W, Cin, Cmid, Cout, pad, act_isz, w_isz, budget, tile_h):
    if tile_h is not None:
        if tile_h >= H:
            return H, False
        if H % tile_h != 0 or tile_h % pad != 0:
            raise ValueError(
                f"tile_h={tile_h} must divide H={H} and be a multiple of dilation={pad}")
        return tile_h, True
    if H % pad != 0:
        # Odd feature-map sizes: single halo-free whole-image tile (replaces the old
        # fallback that DMA'd x three times and tripled stage-1 work).
        return H, False
    whole_fits = _vmem_estimate(H, 0, W, Cin, Cmid, Cout, pad, act_isz, w_isz) <= budget
    prefer_split = (N == 1)     # keep >= 2 grid units so both v7x TensorCores get work
    if whole_fits and not prefer_split:
        return H, False
    cands = sorted((t for t in range(pad, H, pad) if H % t == 0), reverse=True)
    # bound halo overhead (tile >= 4*dilation) and keep enough matmul rows (M >= 256)
    good = [t for t in cands if t >= 4 * pad and t * W >= 256]
    for group in (good, cands):
        for t in group:
            if _vmem_estimate(t, pad, W, Cin, Cmid, Cout, pad, act_isz, w_isz) <= budget:
                return t, True
    if whole_fits:
        return H, False
    return (cands[-1], True) if cands else (H, False)


# ----------------------------------------------------------------------------
# Fused bottleneck kernel factory
#   stage1: y1  = relu(x @ W1_eff + b1)          (W1_eff = dw1*pw1*bn1_scale)
#   stage2: y2  = relu(im2col(y1_padded) @ W2_comb + b2)
#           (W2_comb[t*Cmid+c, :] = dw2[t, c] * pw2[c, :] * bn2_scale)
#   stage3: out = relu(y2 @ W3_eff + b3 + x)     (W3_eff = dw3*pw3*bn3_scale)
# All intermediates stay in VMEM; x is read once per tile (+ a dilation halo when
# row-tiled), the output is written once.
# ----------------------------------------------------------------------------
def make_fused_bottleneck(N, H, W, Cin, Cmid, Cout, dilation,
                          act_dtype=jnp.float32, tile_h=None):
    pad = dilation
    assert 1 <= pad <= H, "dilation larger than the image is not supported"
    act_isz = jnp.dtype(act_dtype).itemsize
    w_isz = act_isz

    cap = _vmem_capacity_bytes()
    if cap >= 100 * 2 ** 20:          # v5e / v6e: 128 MiB VMEM -> big tiles
        budget, vmem_limit = 96 * 2 ** 20, 110 * 2 ** 20
    else:                             # v7x: 64 MiB / TC -> leave Mosaic headroom
        budget, vmem_limit = 32 * 2 ** 20, 48 * 2 ** 20

    tH, use_halo = _pick_tiling(N, H, W, Cin, Cmid, Cout, pad, act_isz, w_isz,
                                budget, tile_h)
    win_rows = tH + 2 * pad
    f32 = jnp.float32

    def stage23(y1p_ref, x_body, w2_ref, b2_ref, w3_ref, b3_ref, o_ref):
        # im2col over the padded stage-1 activation: ONE K = 9*Cmid MXU matmul
        taps = [y1p_ref[kh * pad:kh * pad + tH, kw * pad:kw * pad + W, :]
                for kh in range(3) for kw in range(3)]
        patches = jnp.concatenate(taps, axis=-1).reshape(tH * W, 9 * Cmid)
        y2 = jnp.maximum(
            jnp.dot(patches.astype(w2_ref.dtype), w2_ref[...],
                    preferred_element_type=f32) + b2_ref[...], 0.0)
        res = x_body.reshape(tH * W, Cin).astype(f32)
        out = jnp.dot(y2.astype(w3_ref.dtype), w3_ref[...],
                      preferred_element_type=f32) + b3_ref[...] + res
        o_ref[0] = jnp.maximum(out, 0.0).reshape(tH, W, Cout).astype(o_ref.dtype)

    if use_halo:
        n_tiles = H // tH
        nblk_h = H // pad
        thb = tH // pad

        def kernel(xt_ref, xb_ref, xn_ref, w1_ref, b1_ref, w2_ref, b2_ref,
                   w3_ref, b3_ref, o_ref, y1p_ref):
            i = pl.program_id(1)
            last = pl.num_programs(1) - 1

            def pw1(xv, rows):
                y = jnp.dot(xv.reshape(rows * W, Cin), w1_ref[...],
                            preferred_element_type=f32)
                return jnp.maximum(y + b1_ref[...], 0.0).reshape(rows, W, Cmid)

            # re-zero only the thin pad columns of the persistent scratch
            zc = jnp.zeros((win_rows, pad, Cmid), f32)
            y1p_ref[:, 0:pad, :] = zc
            y1p_ref[:, pad + W:pad + W + pad, :] = zc
            zr = jnp.zeros((pad, W, Cmid), f32)

            @pl.when(i > 0)                      # top halo rows (real neighbor rows)
            def _():
                y1p_ref[0:pad, pad:pad + W, :] = pw1(xt_ref[0], pad)

            @pl.when(i == 0)                     # image top boundary -> zero pad
            def _():
                y1p_ref[0:pad, pad:pad + W, :] = zr

            xb = xb_ref[0]
            y1p_ref[pad:pad + tH, pad:pad + W, :] = pw1(xb, tH)

            @pl.when(i < last)                   # bottom halo rows
            def _():
                y1p_ref[pad + tH:pad + tH + pad, pad:pad + W, :] = pw1(xn_ref[0], pad)

            @pl.when(i == last)                  # image bottom boundary -> zero pad
            def _():
                y1p_ref[pad + tH:pad + tH + pad, pad:pad + W, :] = zr

            stage23(y1p_ref, xb, w2_ref, b2_ref, w3_ref, b3_ref, o_ref)

        def cmap(n, i):
            return (0, 0)

        grid = (N, n_tiles)
        in_specs = [
            pl.BlockSpec((1, pad, W, Cin),
                         lambda n, i: (n, jnp.maximum(i * thb - 1, 0), 0, 0)),
            pl.BlockSpec((1, tH, W, Cin), lambda n, i: (n, i, 0, 0)),
            pl.BlockSpec((1, pad, W, Cin),
                         lambda n, i: (n, jnp.minimum((i + 1) * thb, nblk_h - 1), 0, 0)),
            pl.BlockSpec((Cin, Cmid), cmap),
            pl.BlockSpec((1, Cmid), cmap),
            pl.BlockSpec((9 * Cmid, Cmid), cmap),
            pl.BlockSpec((1, Cmid), cmap),
            pl.BlockSpec((Cmid, Cout), cmap),
            pl.BlockSpec((1, Cout), cmap),
        ]
        out_specs = pl.BlockSpec((1, tH, W, Cout), lambda n, i: (n, i, 0, 0))
        semantics = ("parallel", "parallel")
    else:
        def kernel(x_ref, w1_ref, b1_ref, w2_ref, b2_ref, w3_ref, b3_ref,
                   o_ref, y1p_ref):
            # zero the pad border of the scratch (left/right cols, top/bottom rows)
            zc = jnp.zeros((win_rows, pad, Cmid), f32)
            y1p_ref[:, 0:pad, :] = zc
            y1p_ref[:, pad + W:pad + W + pad, :] = zc
            zr = jnp.zeros((pad, W, Cmid), f32)
            y1p_ref[0:pad, pad:pad + W, :] = zr
            y1p_ref[pad + tH:pad + tH + pad, pad:pad + W, :] = zr

            x = x_ref[0]
            y1 = jnp.dot(x.reshape(tH * W, Cin), w1_ref[...],
                         preferred_element_type=f32)
            y1 = jnp.maximum(y1 + b1_ref[...], 0.0)
            y1p_ref[pad:pad + tH, pad:pad + W, :] = y1.reshape(tH, W, Cmid)

            stage23(y1p_ref, x, w2_ref, b2_ref, w3_ref, b3_ref, o_ref)

        def cmap(n):
            return (0, 0)

        grid = (N,)
        in_specs = [
            pl.BlockSpec((1, H, W, Cin), lambda n: (n, 0, 0, 0)),
            pl.BlockSpec((Cin, Cmid), cmap),
            pl.BlockSpec((1, Cmid), cmap),
            pl.BlockSpec((9 * Cmid, Cmid), cmap),
            pl.BlockSpec((1, Cmid), cmap),
            pl.BlockSpec((Cmid, Cout), cmap),
            pl.BlockSpec((1, Cout), cmap),
        ]
        out_specs = pl.BlockSpec((1, H, W, Cout), lambda n: (n, 0, 0, 0))
        semantics = ("parallel",)

    call = pl.pallas_call(
        kernel,
        out_shape=jax.ShapeDtypeStruct((N, H, W, Cout), act_dtype),
        grid_spec=pltpu.PrefetchScalarGridSpec(
            num_scalar_prefetch=0,
            grid=grid,
            in_specs=in_specs,
            out_specs=out_specs,
            scratch_shapes=[pltpu.VMEM((win_rows, W + 2 * pad, Cmid), jnp.float32)],
        ),
        compiler_params=pltpu.CompilerParams(
            dimension_semantics=semantics,
            vmem_limit_bytes=int(vmem_limit),
        ),
    )
    return call, use_halo


# ----------------------------------------------------------------------------
# Bottleneck forward (Pallas wrapper): NCHW in/out, weight + BN + im2col folding on host
# ----------------------------------------------------------------------------
def bottleneck_forward(x_nchw, params, *, planes, atrous, act_dtype=jnp.float32,
                       tile_h=None):
    N, Cin, H, W = x_nchw.shape
    Cout = planes * 4
    assert Cin == Cout, "identity-skip Bottleneck requires inplanes == planes * 4"
    f32 = jnp.float32

    s1, t1 = fold_bn(*params["bn1"])
    s2, t2 = fold_bn(*params["bn2"])
    s3, t3 = fold_bn(*params["bn3"])

    # Fold depthwise-1x1 scales + BN scales into pointwise weights; fold the 3x3
    # depthwise taps into the pointwise-2 im2col weights (all exact in f32).
    w1_eff = (params["dw1"][:, None] * params["pw1"]) * s1[None, :]          # (Cin, Cmid)
    w2p_eff = params["pw2"] * s2[None, :]                                    # (Cmid, Cmid)
    w2_comb = (params["dw2_93"][:, :, None] * w2p_eff[None, :, :]
               ).reshape(9 * planes, planes)                                 # (9*Cmid, Cmid)
    w3_eff = (params["dw3"][:, None] * params["pw3"]) * s3[None, :]          # (Cmid, Cout)

    x_nhwc = jnp.transpose(x_nchw, (0, 2, 3, 1)).astype(act_dtype)

    call, use_halo = make_fused_bottleneck(N, H, W, Cin, planes, Cout, atrous,
                                           act_dtype=act_dtype, tile_h=tile_h)
    wargs = (
        w1_eff.astype(act_dtype), t1.reshape(1, -1).astype(f32),
        w2_comb.astype(act_dtype), t2.reshape(1, -1).astype(f32),
        w3_eff.astype(act_dtype), t3.reshape(1, -1).astype(f32),
    )
    out = call(x_nhwc, x_nhwc, x_nhwc, *wargs) if use_halo else call(x_nhwc, *wargs)
    return jnp.transpose(out, (0, 3, 1, 2))                                  # back to NCHW


# ----------------------------------------------------------------------------
# Pure-JAX reference (mirrors the PyTorch forward exactly, NCHW, f32)
# ----------------------------------------------------------------------------
def _ref_dsconv(x, dw_w, pw_w, stride, padding, dilation):
    cin = x.shape[1]
    y = jax.lax.conv_general_dilated(
        x, dw_w, (stride, stride), [(padding, padding), (padding, padding)],
        rhs_dilation=(dilation, dilation),
        dimension_numbers=("NCHW", "OIHW", "NCHW"),
        feature_group_count=cin)
    return jax.lax.conv_general_dilated(
        y, pw_w, (1, 1), "VALID", dimension_numbers=("NCHW", "OIHW", "NCHW"))


def _ref_bn(x, gamma, beta, rm, rv, eps=BN_EPS):
    inv = gamma / jnp.sqrt(rv + eps)
    return (x - rm[None, :, None, None]) * inv[None, :, None, None] + beta[None, :, None, None]


def bottleneck_reference(x, raw, *, atrous):
    out = _ref_dsconv(x, raw["dw1_w"], raw["pw1_w"], 1, 0, 1)
    out = jnp.maximum(_ref_bn(out, *raw["bn1"]), 0.0)
    out = _ref_dsconv(out, raw["dw2_w"], raw["pw2_w"], 1, atrous, atrous)
    out = jnp.maximum(_ref_bn(out, *raw["bn2"]), 0.0)
    out = _ref_dsconv(out, raw["dw3_w"], raw["pw3_w"], 1, 0, 1)
    out = _ref_bn(out, *raw["bn3"]) + x
    return jnp.maximum(out, 0.0)


# ----------------------------------------------------------------------------
if __name__ == "__main__":
    # Smallest real identity-skip block of ResNet_Atrous layer1: 256 -> 64 -> 256
    # (stride=1, downsample=None).  Channel counts are multiples of 128 so the
    # HBM-facing tensors are lane-dense.
    inplanes, planes = 256, 64
    N, H, W = 2, 16, 16
    exp_c = planes * 4  # == inplanes

    key = jax.random.PRNGKey(0)
    ks = jax.random.split(key, 12)
    f32 = jnp.float32

    # DSConv weights (PyTorch OIHW conventions)
    dw1_w = jax.random.normal(ks[0], (inplanes, 1, 1, 1), f32) * 0.2
    pw1_w = jax.random.normal(ks[1], (planes, inplanes, 1, 1), f32) * 0.1
    dw2_w = jax.random.normal(ks[2], (planes, 1, 3, 3), f32) * 0.2
    pw2_w = jax.random.normal(ks[3], (planes, planes, 1, 1), f32) * 0.1
    dw3_w = jax.random.normal(ks[4], (planes, 1, 1, 1), f32) * 0.2
    pw3_w = jax.random.normal(ks[5], (exp_c, planes, 1, 1), f32) * 0.1

    def bn_params(k, c):
        k1, k2, k3, k4 = jax.random.split(k, 4)
        gamma = 1.0 + 0.1 * jax.random.normal(k1, (c,), f32)
        beta = 0.1 * jax.random.normal(k2, (c,), f32)
        rmean = 0.1 * jax.random.normal(k3, (c,), f32)
        rvar = 1.0 + 0.1 * jax.random.uniform(k4, (c,), f32)
        return (gamma, beta, rmean, rvar)

    bn1 = bn_params(ks[6], planes)
    bn2 = bn_params(ks[7], planes)
    bn3 = bn_params(ks[8], exp_c)

    x = jax.random.normal(ks[9], (N, inplanes, H, W), f32)

    # Repack weights for the Pallas (channels-last) pipeline
    params = {
        "dw1": dw1_w.reshape(inplanes),
        "pw1": jnp.transpose(pw1_w.reshape(planes, inplanes)),     # (Cin, planes)
        "dw2_93": jnp.transpose(dw2_w.reshape(planes, 9)),         # (9, planes), row = kh*3+kw
        "pw2": jnp.transpose(pw2_w.reshape(planes, planes)),
        "dw3": dw3_w.reshape(planes),
        "pw3": jnp.transpose(pw3_w.reshape(exp_c, planes)),        # (planes, Cout)
        "bn1": bn1, "bn2": bn2, "bn3": bn3,
    }
    raw = {"dw1_w": dw1_w, "pw1_w": pw1_w, "dw2_w": dw2_w, "pw2_w": pw2_w,
           "dw3_w": dw3_w, "pw3_w": pw3_w, "bn1": bn1, "bn2": bn2, "bn3": bn3}

    # 1) f32, atrous=1, explicit two row tiles of 8 rows (exercises the 1-row halo path)
    out1 = jax.block_until_ready(
        bottleneck_forward(x, params, planes=planes, atrous=1, tile_h=8))
    ref1 = bottleneck_reference(x, raw, atrous=1)
    assert out1.shape == (N, exp_c, H, W), out1.shape
    assert jnp.allclose(out1, ref1, rtol=2e-3, atol=2e-3), float(jnp.max(jnp.abs(out1 - ref1)))

    # 2) f32, atrous=2, explicit two row tiles of 8 rows with 2-row halos (boundary clamping)
    out2 = jax.block_until_ready(
        bottleneck_forward(x, params, planes=planes, atrous=2, tile_h=8))
    ref2 = bottleneck_reference(x, raw, atrous=2)
    assert jnp.allclose(out2, ref2, rtol=2e-3, atol=2e-3), float(jnp.max(jnp.abs(out2 - ref2)))

    # 3) f32, atrous=2, auto tiling -> whole-image tile, no halo inputs
    out3 = jax.block_until_ready(
        bottleneck_forward(x, params, planes=planes, atrous=2))
    assert jnp.allclose(out3, ref2, rtol=2e-3, atol=2e-3), float(jnp.max(jnp.abs(out3 - ref2)))

    # 4) bf16 activations/weights (f32 MXU accumulation + f32 epilogue), auto tiling
    out4 = jax.block_until_ready(
        bottleneck_forward(x, params, planes=planes, atrous=1, act_dtype=jnp.bfloat16))
    err4 = float(jnp.max(jnp.abs(out4.astype(f32) - ref1)))
    assert err4 < 0.05 * (float(jnp.max(jnp.abs(ref1))) + 1.0), err4

    print("KERNEL_OK")
</pallas_src>

<mosaic_0001>
module attributes {stable_mosaic.version = 11 : i64} {
  func.func @kernel(%arg0: i32, %arg1: i32, %arg2: memref<1x1x16x256xf32, #tpu.memory_space<vmem>>, %arg3: memref<1x8x16x256xf32, #tpu.memory_space<vmem>>, %arg4: memref<1x1x16x256xf32, #tpu.memory_space<vmem>>, %arg5: memref<256x64xf32, #tpu.memory_space<vmem>>, %arg6: memref<1x64xf32, #tpu.memory_space<vmem>>, %arg7: memref<576x64xf32, #tpu.memory_space<vmem>>, %arg8: memref<1x64xf32, #tpu.memory_space<vmem>>, %arg9: memref<64x256xf32, #tpu.memory_space<vmem>>, %arg10: memref<1x256xf32, #tpu.memory_space<vmem>>, %arg11: memref<1x8x16x256xf32, #tpu.memory_space<vmem>>, %arg12: memref<10x18x64xf32, #tpu.memory_space<vmem>>) attributes {dimension_semantics = [#tpu.dimension_semantics<parallel>, #tpu.dimension_semantics<parallel>], iteration_bounds = array<i64: 2, 2>, scalar_prefetch = 0 : i64, scratch_operands = 1 : i64, tpu.core_type = #tpu.core_type<tc>, window_params = [{transform_indices = @transform_0, window_bounds = array<i64: 1, 1, 16, 256>}, {transform_indices = @transform_1, window_bounds = array<i64: 1, 8, 16, 256>}, {transform_indices = @transform_2, window_bounds = array<i64: 1, 1, 16, 256>}, {pipeline_mode = #tpu.pipeline_mode<synchronous>, transform_indices = @transform_3, window_bounds = array<i64: 256, 64>}, {pipeline_mode = #tpu.pipeline_mode<synchronous>, transform_indices = @transform_4, window_bounds = array<i64: 1, 64>}, {pipeline_mode = #tpu.pipeline_mode<synchronous>, transform_indices = @transform_5, window_bounds = array<i64: 576, 64>}, {pipeline_mode = #tpu.pipeline_mode<synchronous>, transform_indices = @transform_6, window_bounds = array<i64: 1, 64>}, {pipeline_mode = #tpu.pipeline_mode<synchronous>, transform_indices = @transform_7, window_bounds = array<i64: 64, 256>}, {pipeline_mode = #tpu.pipeline_mode<synchronous>, transform_indices = @transform_8, window_bounds = array<i64: 1, 256>}, {transform_indices = @transform_9, window_bounds = array<i64: 1, 8, 16, 256>}]} {
    %cst = arith.constant 0.000000e+00 : f32
    %0 = vector.broadcast %cst : f32 to vector<10x1x64xf32>
    %c0 = arith.constant 0 : index
    %c0_0 = arith.constant 0 : index
    %c0_1 = arith.constant 0 : index
    %1 = vector.load %arg12[%c0, %c0_0, %c0_1] : memref<10x18x64xf32, #tpu.memory_space<vmem>>, vector<10x1x64xf32>
    tpu.vector_store %arg12[%c0, %c0_0, %c0_1], %0 {strides = array<i32>} : memref<10x18x64xf32, #tpu.memory_space<vmem>>, vector<10x1x64xf32>,
    %c0_2 = arith.constant 0 : index
    %c17 = arith.constant 17 : index
    %c0_3 = arith.constant 0 : index
    %2 = vector.load %arg12[%c0_2, %c17, %c0_3] : memref<10x18x64xf32, #tpu.memory_space<vmem>>, vector<10x1x64xf32>
    tpu.vector_store %arg12[%c0_2, %c17, %c0_3], %0 {strides = array<i32>} : memref<10x18x64xf32, #tpu.memory_space<vmem>>, vector<10x1x64xf32>,
    %cst_4 = arith.constant 0.000000e+00 : f32
    %3 = vector.broadcast %cst_4 : f32 to vector<1x16x64xf32>
    %c0_i32 = arith.constant 0 : i32
    %4 = arith.cmpi sgt, %arg1, %c0_i32 : i32
    %5 = arith.extui %4 : i1 to i32
    %c0_i32_5 = arith.constant 0 : i32
    %6 = arith.cmpi ne, %5, %c0_i32_5 : i32
    scf.if %6 {
      %c0_65 = arith.constant 0 : index
      %c0_66 = arith.constant 0 : index
      %c0_67 = arith.constant 0 : index
      %c0_68 = arith.constant 0 : index
      %59 = vector.load %arg2[%c0_65, %c0_66, %c0_67, %c0_68] : memref<1x1x16x256xf32, #tpu.memory_space<vmem>>, vector<1x1x16x256xf32>
      %60 = vector.shape_cast %59 : vector<1x1x16x256xf32> to vector<1x16x256xf32>
      %61 = vector.shape_cast %60 : vector<1x16x256xf32> to vector<16x256xf32>
      %c0_69 = arith.constant 0 : index
      %c0_70 = arith.constant 0 : index
      %62 = vector.load %arg5[%c0_69, %c0_70] : memref<256x64xf32, #tpu.memory_space<vmem>>, vector<256x64xf32>
      %cst_71 = arith.constant dense<0.000000e+00> : vector<16x64xf32>
      %63 = tpu.matmul %61, %62, %cst_71 {dimension_numbers = #tpu.dot_dimension_numbers<[1], [0], [0], [1], [0, 0, 1, 1], [], []>} : vector<16x256xf32>, vector<256x64xf32>, vector<16x64xf32> -> vector<16x64xf32>
      %c0_72 = arith.constant 0 : index
      %c0_73 = arith.constant 0 : index
      %64 = vector.load %arg6[%c0_72, %c0_73] : memref<1x64xf32, #tpu.memory_space<vmem>>, vector<1x64xf32>
      %65 = vector.broadcast %64 : vector<1x64xf32> to vector<16x64xf32>
      %66 = arith.addf %63, %65 : vector<16x64xf32>
      %cst_74 = arith.constant 0.000000e+00 : f32
      %67 = vector.broadcast %cst_74 : f32 to vector<16x64xf32>
      %68 = arith.maximumf %66, %67 : vector<16x64xf32>
      %69 = vector.shape_cast %68 : vector<16x64xf32> to vector<1x16x64xf32>
      %c0_75 = arith.constant 0 : index
      %c1_76 = arith.constant 1 : index
      %c0_77 = arith.constant 0 : index
      %70 = vector.load %arg12[%c0_75, %c1_76, %c0_77] : memref<10x18x64xf32, #tpu.memory_space<vmem>>, vector<1x16x64xf32>
      tpu.vector_store %arg12[%c0_75, %c1_76, %c0_77], %69 {strides = array<i32>} : memref<10x18x64xf32, #tpu.memory_space<vmem>>, vector<1x16x64xf32>,
    } else {
    }
    %c0_i32_6 = arith.constant 0 : i32
    %7 = arith.cmpi eq, %arg1, %c0_i32_6 : i32
    %8 = arith.extui %7 : i1 to i32
    %c0_i32_7 = arith.constant 0 : i32
    %9 = arith.cmpi ne, %8, %c0_i32_7 : i32
    scf.if %9 {
      %c0_65 = arith.constant 0 : index
      %c1_66 = arith.constant 1 : index
      %c0_67 = arith.constant 0 : index
      %59 = vector.load %arg12[%c0_65, %c1_66, %c0_67] : memref<10x18x64xf32, #tpu.memory_space<vmem>>, vector<1x16x64xf32>
      tpu.vector_store %arg12[%c0_65, %c1_66, %c0_67], %3 {strides = array<i32>} : memref<10x18x64xf32, #tpu.memory_space<vmem>>, vector<1x16x64xf32>,
    } else {
    }
    %c0_8 = arith.constant 0 : index
    %c0_9 = arith.constant 0 : index
    %c0_10 = arith.constant 0 : index
    %c0_11 = arith.constant 0 : index
    %10 = vector.load %arg3[%c0_8, %c0_9, %c0_10, %c0_11] : memref<1x8x16x256xf32, #tpu.memory_space<vmem>>, vector<1x8x16x256xf32>
    %11 = vector.shape_cast %10 : vector<1x8x16x256xf32> to vector<8x16x256xf32>
    %12 = vector.shape_cast %11 : vector<8x16x256xf32> to vector<128x256xf32>
    %c0_12 = arith.constant 0 : index
    %c0_13 = arith.constant 0 : index
    %13 = vector.load %arg5[%c0_12, %c0_13] : memref<256x64xf32, #tpu.memory_space<vmem>>, vector<256x64xf32>
    %cst_14 = arith.constant dense<0.000000e+00> : vector<128x64xf32>
    %14 = tpu.matmul %12, %13, %cst_14 {dimension_numbers = #tpu.dot_dimension_numbers<[1], [0], [0], [1], [0, 0, 1, 1], [], []>} : vector<128x256xf32>, vector<256x64xf32>, vector<128x64xf32> -> vector<128x64xf32>
    %c0_15 = arith.constant 0 : index
    %c0_16 = arith.constant 0 : index
    %15 = vector.load %arg6[%c0_15, %c0_16] : memref<1x64xf32, #tpu.memory_space<vmem>>, vector<1x64xf32>
    %16 = vector.broadcast %15 : vector<1x64xf32> to vector<128x64xf32>
    %17 = arith.addf %14, %16 : vector<128x64xf32>
    %cst_17 = arith.constant 0.000000e+00 : f32
    %18 = vector.broadcast %cst_17 : f32 to vector<128x64xf32>
    %19 = arith.maximumf %17, %18 : vector<128x64xf32>
    %20 = vector.shape_cast %19 : vector<128x64xf32> to vector<8x16x64xf32>
    %c1 = arith.constant 1 : index
    %c1_18 = arith.constant 1 : index
    %c0_19 = arith.constant 0 : index
    %21 = vector.load %arg12[%c1, %c1_18, %c0_19] : memref<10x18x64xf32, #tpu.memory_space<vmem>>, vector<8x16x64xf32>
    tpu.vector_store %arg12[%c1, %c1_18, %c0_19], %20 {strides = array<i32>} : memref<10x18x64xf32, #tpu.memory_space<vmem>>, vector<8x16x64xf32>,
    %c1_i32 = arith.constant 1 : i32
    %22 = arith.cmpi slt, %arg1, %c1_i32 : i32
    %23 = arith.extui %22 : i1 to i32
    %c0_i32_20 = arith.constant 0 : i32
    %24 = arith.cmpi ne, %23, %c0_i32_20 : i32
    scf.if %24 {
      %c0_65 = arith.constant 0 : index
      %c0_66 = arith.constant 0 : index
      %c0_67 = arith.constant 0 : index
      %c0_68 = arith.constant 0 : index
      %59 = vector.load %arg4[%c0_65, %c0_66, %c0_67, %c0_68] : memref<1x1x16x256xf32, #tpu.memory_space<vmem>>, vector<1x1x16x256xf32>
      %60 = vector.shape_cast %59 : vector<1x1x16x256xf32> to vector<1x16x256xf32>
      %61 = vector.shape_cast %60 : vector<1x16x256xf32> to vector<16x256xf32>
      %c0_69 = arith.constant 0 : index
      %c0_70 = arith.constant 0 : index
      %62 = vector.load %arg5[%c0_69, %c0_70] : memref<256x64xf32, #tpu.memory_space<vmem>>, vector<256x64xf32>
      %cst_71 = arith.constant dense<0.000000e+00> : vector<16x64xf32>
      %63 = tpu.matmul %61, %62, %cst_71 {dimension_numbers = #tpu.dot_dimension_numbers<[1], [0], [0], [1], [0, 0, 1, 1], [], []>} : vector<16x256xf32>, vector<256x64xf32>, vector<16x64xf32> -> vector<16x64xf32>
      %c0_72 = arith.constant 0 : index
      %c0_73 = arith.constant 0 : index
      %64 = vector.load %arg6[%c0_72, %c0_73] : memref<1x64xf32, #tpu.memory_space<vmem>>, vector<1x64xf32>
      %65 = vector.broadcast %64 : vector<1x64xf32> to vector<16x64xf32>
      %66 = arith.addf %63, %65 : vector<16x64xf32>
      %cst_74 = arith.constant 0.000000e+00 : f32
      %67 = vector.broadcast %cst_74 : f32 to vector<16x64xf32>
      %68 = arith.maximumf %66, %67 : vector<16x64xf32>
      %69 = vector.shape_cast %68 : vector<16x64xf32> to vector<1x16x64xf32>
      %c9 = arith.constant 9 : index
      %c1_75 = arith.constant 1 : index
      %c0_76 = arith.constant 0 : index
      %70 = vector.load %arg12[%c9, %c1_75, %c0_76] : memref<10x18x64xf32, #tpu.memory_space<vmem>>, vector<1x16x64xf32>
      tpu.vector_store %arg12[%c9, %c1_75, %c0_76], %69 {strides = array<i32>} : memref<10x18x64xf32, #tpu.memory_space<vmem>>, vector<1x16x64xf32>,
    } else {
    }
    %c1_i32_21 = arith.constant 1 : i32
    %25 = arith.cmpi eq, %arg1, %c1_i32_21 : i32
    %26 = arith.extui %25 : i1 to i32
    %c0_i32_22 = arith.constant 0 : i32
    %27 = arith.cmpi ne, %26, %c0_i32_22 : i32
    scf.if %27 {
      %c9 = arith.constant 9 : index
      %c1_65 = arith.constant 1 : index
      %c0_66 = arith.constant 0 : index
      %59 = vector.load %arg12[%c9, %c1_65, %c0_66] : memref<10x18x64xf32, #tpu.memory_space<vmem>>, vector<1x16x64xf32>
      tpu.vector_store %arg12[%c9, %c1_65, %c0_66], %3 {strides = array<i32>} : memref<10x18x64xf32, #tpu.memory_space<vmem>>, vector<1x16x64xf32>,
    } else {
    }
    %c0_23 = arith.constant 0 : index
    %c0_24 = arith.constant 0 : index
    %c0_25 = arith.constant 0 : index
    %28 = vector.load %arg12[%c0_23, %c0_24, %c0_25] : memref<10x18x64xf32, #tpu.memory_space<vmem>>, vector<8x16x64xf32>
    %c0_26 = arith.constant 0 : index
    %c1_27 = arith.constant 1 : index
    %c0_28 = arith.constant 0 : index
    %29 = vector.load %arg12[%c0_26, %c1_27, %c0_28] : memref<10x18x64xf32, #tpu.memory_space<vmem>>, vector<8x16x64xf32>
    %c0_29 = arith.constant 0 : index
    %c2 = arith.constant 2 : index
    %c0_30 = arith.constant 0 : index
    %30 = vector.load %arg12[%c0_29, %c2, %c0_30] : memref<10x18x64xf32, #tpu.memory_space<vmem>>, vector<8x16x64xf32>
    %c1_31 = arith.constant 1 : index
    %c0_32 = arith.constant 0 : index
    %c0_33 = arith.constant 0 : index
    %31 = vector.load %arg12[%c1_31, %c0_32, %c0_33] : memref<10x18x64xf32, #tpu.memory_space<vmem>>, vector<8x16x64xf32>
    %c1_34 = arith.constant 1 : index
    %c1_35 = arith.constant 1 : index
    %c0_36 = arith.constant 0 : index
    %32 = vector.load %arg12[%c1_34, %c1_35, %c0_36] : memref<10x18x64xf32, #tpu.memory_space<vmem>>, vector<8x16x64xf32>
    %c1_37 = arith.constant 1 : index
    %c2_38 = arith.constant 2 : index
    %c0_39 = arith.constant 0 : index
    %33 = vector.load %arg12[%c1_37, %c2_38, %c0_39] : memref<10x18x64xf32, #tpu.memory_space<vmem>>, vector<8x16x64xf32>
    %c2_40 = arith.constant 2 : index
    %c0_41 = arith.constant 0 : index
    %c0_42 = arith.constant 0 : index
    %34 = vector.load %arg12[%c2_40, %c0_41, %c0_42] : memref<10x18x64xf32, #tpu.memory_space<vmem>>, vector<8x16x64xf32>
    %c2_43 = arith.constant 2 : index
    %c1_44 = arith.constant 1 : index
    %c0_45 = arith.constant 0 : index
    %35 = vector.load %arg12[%c2_43, %c1_44, %c0_45] : memref<10x18x64xf32, #tpu.memory_space<vmem>>, vector<8x16x64xf32>
    %c2_46 = arith.constant 2 : index
    %c2_47 = arith.constant 2 : index
    %c0_48 = arith.constant 0 : index
    %36 = vector.load %arg12[%c2_46, %c2_47, %c0_48] : memref<10x18x64xf32, #tpu.memory_space<vmem>>, vector<8x16x64xf32>
    %37 = tpu.concatenate %28, %29, %30, %31, %32, %33, %34, %35, %36 in 2 : vector<8x16x64xf32>, vector<8x16x64xf32>, vector<8x16x64xf32>, vector<8x16x64xf32>, vector<8x16x64xf32>, vector<8x16x64xf32>, vector<8x16x64xf32>, vector<8x16x64xf32>, vector<8x16x64xf32> -> vector<8x16x576xf32>
    %38 = vector.shape_cast %37 : vector<8x16x576xf32> to vector<128x576xf32>
    %c0_49 = arith.constant 0 : index
    %c0_50 = arith.constant 0 : index
    %39 = vector.load %arg7[%c0_49, %c0_50] : memref<576x64xf32, #tpu.memory_space<vmem>>, vector<576x64xf32>
    %cst_51 = arith.constant dense<0.000000e+00> : vector<128x64xf32>
    %40 = tpu.matmul %38, %39, %cst_51 {dimension_numbers = #tpu.dot_dimension_numbers<[1], [0], [0], [1], [0, 0, 1, 1], [], []>} : vector<128x576xf32>, vector<576x64xf32>, vector<128x64xf32> -> vector<128x64xf32>
    %c0_52 = arith.constant 0 : index
    %c0_53 = arith.constant 0 : index
    %41 = vector.load %arg8[%c0_52, %c0_53] : memref<1x64xf32, #tpu.memory_space<vmem>>, vector<1x64xf32>
    %42 = vector.broadcast %41 : vector<1x64xf32> to vector<128x64xf32>
    %43 = arith.addf %40, %42 : vector<128x64xf32>
    %cst_54 = arith.constant 0.000000e+00 : f32
    %44 = vector.broadcast %cst_54 : f32 to vector<128x64xf32>
    %45 = arith.maximumf %43, %44 : vector<128x64xf32>
    %46 = vector.shape_cast %11 : vector<8x16x256xf32> to vector<128x256xf32>
    %c0_55 = arith.constant 0 : index
    %c0_56 = arith.constant 0 : index
    %47 = vector.load %arg9[%c0_55, %c0_56] : memref<64x256xf32, #tpu.memory_space<vmem>>, vector<64x256xf32>
    %cst_57 = arith.constant dense<0.000000e+00> : vector<128x256xf32>
    %48 = tpu.matmul %45, %47, %cst_57 {dimension_numbers = #tpu.dot_dimension_numbers<[1], [0], [0], [1], [0, 0, 1, 1], [], []>} : vector<128x64xf32>, vector<64x256xf32>, vector<128x256xf32> -> vector<128x256xf32>
    %c0_58 = arith.constant 0 : index
    %c0_59 = arith.constant 0 : index
    %49 = vector.load %arg10[%c0_58, %c0_59] : memref<1x256xf32, #tpu.memory_space<vmem>>, vector<1x256xf32>
    %50 = vector.broadcast %49 : vector<1x256xf32> to vector<128x256xf32>
    %51 = arith.addf %48, %50 : vector<128x256xf32>
    %52 = arith.addf %51, %46 : vector<128x256xf32>
    %cst_60 = arith.constant 0.000000e+00 : f32
    %53 = vector.broadcast %cst_60 : f32 to vector<128x256xf32>
    %54 = arith.maximumf %52, %53 : vector<128x256xf32>
    %55 = vector.shape_cast %54 : vector<128x256xf32> to vector<8x16x256xf32>
    %c0_61 = arith.constant 0 : index
    %c0_62 = arith.constant 0 : index
    %c0_63 = arith.constant 0 : index
    %c0_64 = arith.constant 0 : index
    %56 = vector.load %arg11[%c0_61, %c0_62, %c0_63, %c0_64] : memref<1x8x16x256xf32, #tpu.memory_space<vmem>>, vector<1x8x16x256xf32>
    %57 = vector.shape_cast %56 : vector<1x8x16x256xf32> to vector<8x16x256xf32>
    %58 = vector.shape_cast %55 : vector<8x16x256xf32> to vector<1x8x16x256xf32>
    tpu.vector_store %arg11[%c0_61, %c0_62, %c0_63, %c0_64], %58 {strides = array<i32>} : memref<1x8x16x256xf32, #tpu.memory_space<vmem>>, vector<1x8x16x256xf32>,
    return
  }
  func.func @transform_0(%arg0: i32, %arg1: i32) -> (i32, i32, i32, i32) {
    %c8_i32 = arith.constant 8 : i32
    %0 = arith.muli %arg1, %c8_i32 : i32
    %c1_i32 = arith.constant 1 : i32
    %1 = arith.subi %0, %c1_i32 : i32
    %c0_i32 = arith.constant 0 : i32
    %2 = arith.maxsi %1, %c0_i32 : i32
    %c0_i32_0 = arith.constant 0 : i32
    %c0_i32_1 = arith.constant 0 : i32
    %c0_i32_2 = arith.constant 0 : i32
    return %arg0, %2, %c0_i32_0, %c0_i32_1 : i32, i32, i32, i32
  }
  func.func @transform_1(%arg0: i32, %arg1: i32) -> (i32, i32, i32, i32) {
    %c0_i32 = arith.constant 0 : i32
    %c0_i32_0 = arith.constant 0 : i32
    %c0_i32_1 = arith.constant 0 : i32
    return %arg0, %arg1, %c0_i32, %c0_i32_0 : i32, i32, i32, i32
  }
  func.func @transform_2(%arg0: i32, %arg1: i32) -> (i32, i32, i32, i32) {
    %c1_i32 = arith.constant 1 : i32
    %0 = arith.addi %arg1, %c1_i32 : i32
    %c8_i32 = arith.constant 8 : i32
    %1 = arith.muli %0, %c8_i32 : i32
    %c15_i32 = arith.constant 15 : i32
    %2 = arith.minsi %1, %c15_i32 : i32
    %c0_i32 = arith.constant 0 : i32
    %c0_i32_0 = arith.constant 0 : i32
    %c0_i32_1 = arith.constant 0 : i32
    return %arg0, %2, %c0_i32, %c0_i32_0 : i32, i32, i32, i32
  }
  func.func @transform_3(%arg0: i32, %arg1: i32) -> (i32, i32) {
    %c0_i32 = arith.constant 0 : i32
    %c0_i32_0 = arith.constant 0 : i32
    %c0_i32_1 = arith.constant 0 : i32
    return %c0_i32, %c0_i32_0 : i32, i32
  }
  func.func @transform_4(%arg0: i32, %arg1: i32) -> (i32, i32) {
    %c0_i32 = arith.constant 0 : i32
    %c0_i32_0 = arith.constant 0 : i32
    %c0_i32_1 = arith.constant 0 : i32
    return %c0_i32, %c0_i32_0 : i32, i32
  }
  func.func @transform_5(%arg0: i32, %arg1: i32) -> (i32, i32) {
    %c0_i32 = arith.constant 0 : i32
    %c0_i32_0 = arith.constant 0 : i32
    %c0_i32_1 = arith.constant 0 : i32
    return %c0_i32, %c0_i32_0 : i32, i32
  }
  func.func @transform_6(%arg0: i32, %arg1: i32) -> (i32, i32) {
    %c0_i32 = arith.constant 0 : i32
    %c0_i32_0 = arith.constant 0 : i32
    %c0_i32_1 = arith.constant 0 : i32
    return %c0_i32, %c0_i32_0 : i32, i32
  }
  func.func @transform_7(%arg0: i32, %arg1: i32) -> (i32, i32) {
    %c0_i32 = arith.constant 0 : i32
    %c0_i32_0 = arith.constant 0 : i32
    %c0_i32_1 = arith.constant 0 : i32
    return %c0_i32, %c0_i32_0 : i32, i32
  }
  func.func @transform_8(%arg0: i32, %arg1: i32) -> (i32, i32) {
    %c0_i32 = arith.constant 0 : i32
    %c0_i32_0 = arith.constant 0 : i32
    %c0_i32_1 = arith.constant 0 : i32
    return %c0_i32, %c0_i32_0 : i32, i32
  }
  func.func @transform_9(%arg0: i32, %arg1: i32) -> (i32, i32, i32, i32) {
    %c0_i32 = arith.constant 0 : i32
    %c0_i32_0 = arith.constant 0 : i32
    %c0_i32_1 = arith.constant 0 : i32
    return %arg0, %arg1, %c0_i32, %c0_i32_0 : i32, i32, i32, i32
  }
}

</mosaic_0001>

<bundles_post_ra>
// kernel: tpu_custom_call.1
= control target key start
LH: loop header
LB: loop body
LE: loop exit
PB: predicated region body
PF: predicated region fallthrough
CT: control target
= control target key end

     0   :  { %s5565_s0 = inlined_call_operand.vmem [shape: f32[2,16,16,256], index: 0, kind: input, shape index: {}]   ;;  %s5566_s1 = inlined_call_operand.hbm [shape: f32[2,16,16,256], index: 1, kind: input, shape index: {}]   ;;  %s5567_s2 = inlined_call_operand.hbm [shape: f32[2,16,16,256], index: 2, kind: input, shape index: {}]   ;;  %s5568_s3 = inlined_call_operand.vmem [shape: f32[256,64], index: 3, kind: input, shape index: {}]   ;;  %s5569_s4 = inlined_call_operand.vmem [shape: f32[1,64], index: 4, kind: input, shape index: {}]   ;;  %s5570_s5 = inlined_call_operand.vmem [shape: f32[576,64], index: 5, kind: input, shape index: {}]   ;;  %s5571_s6 = inlined_call_operand.vmem [shape: f32[1,64], index: 6, kind: input, shape index: {}]   ;;  %s5572_s7 = inlined_call_operand.vmem [shape: f32[64,256], index: 7, kind: input, shape index: {}]   ;;  %s5573_s8 = inlined_call_operand.vmem [shape: f32[1,256], index: 8, kind: input, shape index: {}]   ;;  %s5574_s9 = inlined_call_operand.hbm [shape: f32[2,16,16,256], index: 9, kind: output, shape index: {}]  }
   0x1   :  { %5644 = sst [smem:[#allocation65_spill]] %s5566_s1 }
   0x2   :  { %5645 = sst [smem:[#allocation66_spill]] %s5569_s4 }
   0x3   :  { %5646 = sst [smem:[#allocation67_spill]] %s5570_s5 }
   0x4   :  { %5647 = sst [smem:[#allocation68_spill]] %s5571_s6 }
   0x5   :  { %5648 = sst [smem:[#allocation69_spill]] %s5572_s7 }
   0x6   :  { %5649 = sst [smem:[#allocation70_spill]] %s5573_s8 }
   0x7   :  { %5650 = sst [smem:[#allocation71_spill]] %s5574_s9 }
   0x8   :  { %14 = vsyncpa [#allocation4], 0 }
   0x9   :  { %16 = vsyncpa [#allocation4 + $0x1], 0 }
   0xa   :  { %17 = vsyncpa [#allocation7], 0 }
   0xb   :  { %19 = vsyncpa [#allocation7 + $0x1], 0 }
   0xc   :  { %20 = vsyncpa [#allocation5], 0 }
   0xd   :  { %22 = vsyncpa [#allocation5 + $0x1], 0  ;;  %s3814_s30 = smov 0   ;;  %s3816_s10 = smov 0  }
   0xe   :  { %s3818_s11 = smov 0   ;;  %s3820_s12 = smov 0  }
   0xf   :  { %s3822_s13 = smov 0   ;;  %s3824_s14 = smov 0  }
  0x10   :  { %s3826_s15 = smov 0   ;;  %s3828_s16 = smov 0  }
  0x11   :  { %s3830_s17 = smov 0   ;;  %s3832_s18 = smov 0  }
  0x12   :  { %s3834_s19 = smov 0  }
  0x13 LB: > { %5651 = sst [smem:[#allocation12_spill]] %s3723_s12  ;;  %s2563_s20 = sadd.s32 4294967295, %s3751_s19   ;;  %s3751_s19 = sphi %s3834_s19, %s28_s19   ;;  %s3747_s18 = sphi %s3832_s18, %s5796_s18   ;;  %s3743_s17 = sphi %s3830_s17, %s5795_s17   ;;  %s3739_s16 = sphi %s3828_s16, %s5794_s16   ;;  %s3735_s15 = sphi %s3826_s15, %s5785_s15   ;;  %s3731_s14 = sphi %s3824_s14, %s5793_s14   ;;  %s3727_s13 = sphi %s3822_s13, %s5792_s13   ;;  %s3723_s12 = sphi %s3820_s12, %s5791_s12   ;;  %s3719_s11 = sphi %s3818_s11, %s5790_s11   ;;  %s3715_s10 = sphi %s3816_s10, %s5789_s10   ;;  %s3711_s30 = sphi %s3814_s30, %s5788_s30  }
  0x14   : > { %5652 = sst [smem:[#allocation13_spill]] %s3743_s17  ;;  %s2564_s21 = sadd.s32 4294967294, %s3751_s19  }
  0x15   : > { %s37_s22 = sadd.s32 1, %s3743_s17  ;;  %s40_s23 = sadd.s32 1, %s3747_s18 }
  0x16   : > { %p38_p0 = scmp.ge.s32.totalorder %s37_s22, 2  ;;  %p92_p1 = scmp.ne.s32.totalorder %s3731_s14, %s3727_s13 }
  0x17   : > { %p5583_p2 = scmp.eq.s32.totalorder %s3751_s19, 0  ;;  %p98_p4 = scmp.ne.s32.totalorder %s3727_s13, %s3723_s12 }
  0x18   : > { %s5798_s22 = smov (%p38_p0, %s37_s22), 0  ;;  %s5800_s23 = smov (!%p38_p0, %s40_s23), %s3747_s18 }
  0x19   : > { %5653 = sst [smem:[#allocation14_spill]] %s5798_s22  ;;  %p3884_p3 = por %p5583_p2, %p92_p1 }
  0x1a   : > { %p3890_p5 = scmp.eq.s32.totalorder %s2563_s20, 0  ;;  %p286_p6 = scmp.eq.s32.totalorder %s2563_s20, 3 }
  0x1b   : > { %p292_p7 = scmp.eq.s32.totalorder %s2564_s21, 3  ;;  %p5582_p11 = scmp.lt.s32.totalorder %s3751_s19, 4 }
  0x1c   : > { %p3896_p8 = por %p3890_p5, %p98_p4  ;;  %p3900_p9 = por %p286_p6, %p92_p1 }
  0x1d   : > { %p3904_p10 = por %p292_p7, %p98_p4  ;;  %s350_s24 = sand.u32 1, %s3731_s14  }
  0x1e   : > { %s5656_s27 = scalar_select %p3896_p8, 1, 0 }
  0x1f   : > { %s5657_s28 = scalar_select %p3900_p9, 1, 0 }
  0x20   : > { %s5659_s29 = scalar_select %p3904_p10, 1, 0 }
  0x21   : > { %5658 = sst [smem:[#allocation15_spill]] %s5657_s28  ;;  %s2648_s20 = sshll.u32 %s3743_s17, 5 }
  0x22   : > { %5660 = sst [smem:[#allocation16_spill]] %s5659_s29  ;;  %s2573_s12 = sshll.u32 %s350_s24, 8 }
  0x23   : > { %s5588_s9 = sshll.u32 %s3747_s18, 6  ;;  %s354_s8 = scalar_lea.vmem [#allocation3], %s2573_s12 }
  0x24   : > { %s361_s21 = sadd.s32 %s2648_s20, %s5588_s9  ;;  %s364_s6 = sshll.u32 %s354_s8, 4  ;;  %s3914_s6 = int_to_ptr.vmem [resolvable:$true] %s364_s6 }
  0x25   : > { %s2577_s7 = sshll.u32 %s361_s21, 7  ;;  %s5661_s1 = sld [smem:[#allocation65_spill]] }
  0x26   : > { %p3925_p12 = pnand %p5582_p11, %p3884_p3  ;;  %s3930_s8 = scalar_lea.sflag [#allocation4], %s350_s24 }
  0x28   : > { %p3567_p1 = pneg %p3925_p12 }
  0x2b   : > { %s3919_s28 = scalar_lea.hbm %s5661_s1, %s2577_s7  ;;  %s3570_s7 = scalar_lea.hbm %s5661_s1, 16384 }
  0x2c   : > { %s3565_s12 = scalar_lea.hbm %s3919_s28, 4096  ;;  %p3571_p3 = scmp.lt.u32.totalorder %s3919_s28, %s5661_s1 }
  0x2d   : > { %p3566_p0 = scmp.ne.s32.totalorder %s3919_s28, %s3565_s12  ;;  %p3572_p7 = scmp.lt.u32.totalorder %s3570_s7, %s3565_s12 }
  0x2e   : > { %p3574_p2 = scmp.lt.u32.totalorder %s3565_s12, %s3919_s28 }
  0x2f   : > { %p3568_p4 = pnand %p3567_p1, %p3566_p0  ;;  %p3573_p11 = por %p3572_p7, %p3571_p3 }
  0x31   : > { %p3569_p6 = pneg %p3568_p4  ;;  %p3575_p13 = por %p3574_p2, %p3573_p11 }
  0x33   : > { %p3576_p10 = pnand %p3575_p13, %p3569_p6 }
  0x35   : > { %3579 = shalt.err (!%p3576_p10)
}
  0x36   : > { %s3580_s24 = scalar_lea.vmem %s3914_s6, 4096  ;;  %s3753_s21 = smov [#allocation3]  }
  0x37   : > { %p3581_p0 = scmp.ne.s32.totalorder %s3914_s6, %s3580_s24  ;;  %s3585_s4 = sshll.u32 %s3753_s21, 4  ;;  %s3586_s4 = int_to_ptr.vmem [resolvable:$false] %s3585_s4 }
  0x38   : > { %s3587_s5 = scalar_lea.vmem %s3586_s4, 8192  ;;  %p3588_p8 = scmp.lt.s32.totalorder %s3914_s6, %s3586_s4 }
  0x39   : > { %p3583_p4 = pnand %p3581_p0, %p3567_p1  ;;  %p3589_p3 = scmp.lt.s32.totalorder %s3587_s5, %s3580_s24 }
  0x3b   : > { %p3584_p9 = pneg %p3583_p4  ;;  %p3590_p7 = por %p3589_p3, %p3588_p8 }
  0x3d   : > { %p3591_p2 = pnand %p3590_p7, %p3584_p9 }
  0x3f   : > { %3594 = shalt.err (!%p3591_p2)
}
  0x40   : > { %s5586_s12 = smov 256   ;;  %s5587_s7 = smov 16  }
  0x41   : > { %3299 = dma.hbm_to_vmem [thread:$0]  (!%p3925_p12), %s3919_s28, 4096, %s3914_s6, %s3930_s8, %s5586_s12, %s5586_s12, %s5587_s7  }
  0x42   : > { %p399_p8 = scmp.lt.s32.totalorder %s3751_s19, 5  ;;  %p5663_p9 = scmp.ge.s32.totalorder %s3751_s19, 1 }
  0x43   : > { %p42_p11 = scmp.ge.s32.totalorder %s5800_s23, 2  ;;  %s81_s20 = ssub.s32 %s3743_s17, %s5798_s22 }
  0x44   : > { %p3964_p10 = pnand %p5663_p9, %p399_p8  ;;  %s2644_s29 = sshll.u32 %s3743_s17, 3 }
  0x45   : > { %s2646_s24 = sshll.u32 %s5798_s22, 3  ;;  %s5802_s23 = smov (%p42_p11, %s5800_s23), 0 }
  0x46   : > { %5665 = sst [smem:[#allocation17_spill]] %s5802_s23  ;;  %s2645_s6 = sadd.s32 8, %s2644_s29 }
  0x47   : > { %s2647_s28 = sadd.s32 8, %s2646_s24  ;;  %s80_s8 = ssub.s32 %s3747_s18, %s5802_s23 }
  0x48   : > { %p110_p12 = scmp.lt.s32.totalorder %s2645_s6, 15  ;;  %s82_s21 = sor.u32 %s81_s20, %s80_s8 }
  0x49   : > { %p114_p13 = scmp.lt.s32.totalorder %s2647_s28, 15  ;;  %p83_p1 = scmp.eq.s32.totalorder %s82_s21, 0 }
  0x4a   : > { %s121_s4 = sadd.s32 1, %s3719_s11  ;;  %s5804_s6 = smov (!%p110_p12, %s2645_s6), 15 }
  0x4b   : > { %s5666_s5 = sadd.s32 1, %s3731_s14  ;;  %s5806_s28 = smov (!%p114_p13, %s2647_s28), 15 }
  0x4c   : > { %s3982_s12 = scalar_select %p83_p1, %s3731_s14, %s5666_s5  }
  0x4d   : > { %p128_p6 = scmp.ne.s32.totalorder %s3719_s11, %s3715_s10  ;;  %p134_p0 = scmp.ne.s32.totalorder %s3715_s10, %s3711_s30 }
  0x4e   : > { %s117_s29 = ssub.s32 %s5804_s6, %s5806_s28  ;;  %s374_s7 = sand.u32 1, %s3719_s11  }
  0x4f   : > { %s118_s24 = sor.u32 %s117_s29, %s80_s8  ;;  %p5667_p4 = scmp.eq.s32.totalorder %s3751_s19, 0 }
  0x50   : > { %p119_p7 = scmp.eq.s32.totalorder %s118_s24, 0  ;;  %p3993_p2 = por %p134_p0, %p3890_p5 }
  0x51   : > { %p130_p3 = por %p128_p6, %p5667_p4  ;;  %s2578_s21 = sshll.u32 %s374_s7, 5 }
  0x52   : > { %s5668_s20 = scalar_select %p3993_p2, 1, 0 }
  0x53   : > { %s3998_s9 = scalar_select %p119_p7, %s3719_s11, %s121_s4  }
  0x54   : > { %s2580_s5 = sshll.u32 %s5804_s6, 2  ;;  %s5669_s1 = sshll.u32 %s3747_s18, 6 }
  0x55   : > { %s388_s23 = sadd.s32 %s2580_s5, %s5669_s1  ;;  %s378_s22 = scalar_lea.vmem [#allocation6], %s2578_s21 }
  0x56   : > { %s391_s30 = sshll.u32 %s378_s22, 4  ;;  %s2582_s17 = sshll.u32 %s388_s23, 7  ;;  %s4002_s30 = int_to_ptr.vmem [resolvable:$true] %s391_s30 }
  0x57   : > { %s4007_s29 = scalar_lea.hbm %s5567_s2, %s2582_s17  ;;  %p5670_p5 = scmp.lt.s32.totalorder %s3751_s19, 4 }
  0x58   : > { %s4015_s1 = scalar_lea.sflag [#allocation7], %s374_s7  ;;  %s3595_s22 = scalar_lea.hbm %s4007_s29, 512 }
  0x59   : > { %p4011_p8 = pnand %p5670_p5, %p130_p3  ;;  %p3596_p9 = scmp.ne.s32.totalorder %s4007_s29, %s3595_s22 }
  0x5a   : > { %s3600_s6 = scalar_lea.hbm %s5567_s2, 16384  ;;  %p3601_p1 = scmp.lt.u32.totalorder %s4007_s29, %s5567_s2 }
  0x5b   : > { %p3597_p11 = pneg %p4011_p8  ;;  %p3602_p6 = scmp.lt.u32.totalorder %s3600_s6, %s3595_s22 }
  0x5c   : > { %p3604_p4 = scmp.lt.u32.totalorder %s3595_s22, %s4007_s29 }
  0x5d   : > { %p3598_p12 = pnand %p3597_p11, %p3596_p9  ;;  %p3603_p0 = por %p3602_p6, %p3601_p1 }
  0x5f   : > { %p3599_p13 = pneg %p3598_p12  ;;  %p3605_p3 = por %p3604_p4, %p3603_p0 }
  0x61   : > { %p3606_p7 = pnand %p3605_p3, %p3599_p13 }
  0x63   : > { %3609 = shalt.err (!%p3606_p7)
}
  0x64   : > { %s3610_s7 = scalar_lea.vmem %s4002_s30, 512  ;;  %s3756_s21 = smov [#allocation6]  }
  0x65   : > { %p3611_p5 = scmp.ne.s32.totalorder %s4002_s30, %s3610_s7  ;;  %s3615_s5 = sshll.u32 %s3756_s21, 4  ;;  %s3616_s5 = int_to_ptr.vmem [resolvable:$false] %s3615_s5 }
  0x66   : > { %s3617_s28 = scalar_lea.vmem %s3616_s5, 1024  ;;  %p3618_p2 = scmp.lt.s32.totalorder %s4002_s30, %s3616_s5 }
  0x67   : > { %p3613_p9 = pnand %p3611_p5, %p3597_p11  ;;  %p3619_p1 = scmp.lt.s32.totalorder %s3617_s28, %s3610_s7 }
  0x69   : > { %p3614_p12 = pneg %p3613_p9  ;;  %p3620_p6 = por %p3619_p1, %p3618_p2 }
  0x6b   : > { %p3621_p0 = pnand %p3620_p6, %p3614_p12 }
  0x6d   : > { %3624 = shalt.err (!%p3621_p0)
}
  0x6e   : > { %s5672_s8 = smov 16   ;;  %s5673_s22 = smov 256  }
  0x6f   : > { %3302 = dma.hbm_to_vmem [thread:$0]  (!%p4011_p8), %s4007_s29, 512, %s4002_s30, %s4015_s1, %s5673_s22, %s5673_s22, %s5672_s8  }
  0x70   : > { %403 = sbr.rel (%p3964_p10) target bundleno = 1653 (0x675), region = 56 }
  0x77   : > { %s4049_s17 = sand.u32 1, %s3727_s13   ;;  %p5674_p2 = scmp.ne.s32.totalorder %s5656_s27, 0 }
  0x78   : > { %s2584_s23 = sshll.u32 %s4049_s17, 8  ;;  %s406_s6 = scalar_lea.sflag [#allocation4], %s4049_s17 }
  0x79   : > { %s4055_s26 = scalar_lea.vmem [#allocation3], %s2584_s23 }
  0x7a   : > { %3698 = dma.done.wait (%p5674_p2), %s406_s6, 4096  }
  0x7b   : > { %3700 = vsyncadd (%p5674_p2), %s406_s6, 4294963200  ;;  %s414_s25 = sand.u32 1, %s3715_s10   ;;  %p5675_p10 = scmp.ne.s32.totalorder %s5668_s20, 0 }
  0x7c   : > { %s2585_s30 = sshll.u32 %s414_s25, 5  ;;  %s415_s29 = scalar_lea.sflag [#allocation7], %s414_s25 }
  0x7d   : > { %s4062_s1 = scalar_lea.vmem [#allocation6], %s2585_s30 }
  0x7e   : > { %3702 = dma.done.wait (%p5675_p10), %s415_s29, 512  }
  0x7f   : > { %3704 = vsyncadd (%p5675_p10), %s415_s29, 4294966784  ;;  %s2587_s4 = sshll.u32 %s3735_s15, 3  ;;  %vm494_vm0 = vcmask 516096   ;;  %p475_p8 = scmp.lt.s32.totalorder %s3739_s16, 1  ;;  %v5593_v0 = vmov 0.0  }
  0x80   : > { %s2588_s24 = sadd.s32 4294967295, %s2587_s4  ;;  %495 = vst.msk [vmem:[#allocation2] sm:$0x1] %vm494_vm0, %v5593_v0  ;;  %496 = vst.msk [vmem:[#allocation2 + $0x18] sm:$0x1] %vm494_vm0, %v5593_v0  ;;  %s4120_s6 = scalar_lea.vmem [#allocation8], %s2584_s23 }
  0x81   : > { %497 = vst.msk [vmem:[#allocation2 + $0x30] sm:$0x1] %vm494_vm0, %v5593_v0  ;;  %498 = vst.msk [vmem:[#allocation2 + $0x48] sm:$0x1] %vm494_vm0, %v5593_v0  ;;  %p473_p11 = scmp.gt.s32.totalorder %s2588_s24, 0  ;;  %p2589_p13 = scmp.lt.s32.totalorder %s2588_s24, 15 }
  0x82   : > { %499 = vst.msk [vmem:[#allocation2 + $0x60] sm:$0x1] %vm494_vm0, %v5593_v0  ;;  %500 = vst.msk [vmem:[#allocation2 + $0x78] sm:$0x1] %vm494_vm0, %v5593_v0  ;;  %s476_s27 = scalar_select %p475_p8, %s3739_s16, 1 }
  0x83   : > { %501 = vst.msk [vmem:[#allocation2 + $0x90] sm:$0x1] %vm494_vm0, %v5593_v0  ;;  %502 = vst.msk [vmem:[#allocation2 + $0xa8] sm:$0x1] %vm494_vm0, %v5593_v0  ;;  %s5808_s24 = smov (!%p473_p11, %s2588_s24), 0  ;;  %p2597_p4 = scmp.le.s32.totalorder %s3735_s15, 0 }
  0x84   : > { %503 = vst.msk [vmem:[#allocation2 + $0xc0] sm:$0x1] %vm494_vm0, %v5593_v0  ;;  %504 = vst.msk [vmem:[#allocation2 + $0xd8] sm:$0x1] %vm494_vm0, %v5593_v0  ;;  %s2595_s20 = sshll.u32 %s476_s27, 6  ;;  %s5810_s24 = smov (!%p2589_p13, %s5808_s24), 15 }
  0x85   : > { %505 = vst.msk [vmem:[#allocation2 + $0x11] sm:$0x1] %vm494_vm0, %v5593_v0  ;;  %506 = vst.msk [vmem:[#allocation2 + $0x29] sm:$0x1] %vm494_vm0, %v5593_v0  ;;  %s2594_s7 = sshll.u32 %s5810_s24, 2  ;;  %518 = sbr.rel (%p2597_p4) target bundleno = 390 (0x186), region = 68 }
  0x86   : > { %507 = vst.msk [vmem:[#allocation2 + $0x41] sm:$0x1] %vm494_vm0, %v5593_v0  ;;  %508 = vst.msk [vmem:[#allocation2 + $0x59] sm:$0x1] %vm494_vm0, %v5593_v0  ;;  %s481_s21 = sadd.s32 %s2595_s20, %s2594_s7  ;;  %v539_v1 = vld [vmem:[%s5568_s3 + $0x80] sm:$0xff] (!%p2597_p4)  ;;  %v540_v2 = vld [vmem:[%s5568_s3 + $0x88] sm:$0xff] (!%p2597_p4) }
  0x87   : > { %509 = vst.msk [vmem:[#allocation2 + $0x71] sm:$0x1] %vm494_vm0, %v5593_v0  ;;  %510 = vst.msk [vmem:[#allocation2 + $0x89] sm:$0x1] %vm494_vm0, %v5593_v0  ;;  %s2596_s5 = sshll.u32 %s481_s21, 3  ;;  %v523_v3 = vld [vmem:[%s5568_s3] sm:$0xff] (!%p2597_p4)  ;;  %v3034_v4 = vpack.c.bf16 (!%p2597_p4), %v540_v2, %v539_v1 }
  0x88   : > { %511 = vst.msk [vmem:[#allocation2 + $0xa1] sm:$0x1] %vm494_vm0, %v5593_v0  ;;  %512 = vst.msk [vmem:[#allocation2 + $0xb9] sm:$0x1] %vm494_vm0, %v5593_v0  ;;  %s4116_s22 = scalar_lea.vmem %s5565_s0, %s2596_s5  ;;  %v524_v5 = vld [vmem:[%s5568_s3 + $0x8] sm:$0xff] (!%p2597_p4)  ;;  %v541_v6 = vld [vmem:[%s5568_s3 + $0x90] sm:$0xff] (!%p2597_p4) }
  0x89   : > { %513 = vst.msk [vmem:[#allocation2 + $0xd1] sm:$0x1] %vm494_vm0, %v5593_v0  ;;  %514 = vst.msk [vmem:[#allocation2 + $0xe9] sm:$0x1] %vm494_vm0, %v5593_v0  ;;  %v542_v7 = vld [vmem:[%s5568_s3 + $0x98] sm:$0xff] (!%p2597_p4)  ;;  %v3036_v8 = vpack.c.bf16 (!%p2597_p4), %v524_v5, %v523_v3  ;;  %v525_v10 = vld [vmem:[%s5568_s3 + $0x10] sm:$0xff] (!%p2597_p4)  ;;  %3035 = vmatprep.subr.bf16.mxu0 (!%p2597_p4), %v3034_v4  ;;  %3226 = vmatprep.subr.bf16.mxu1 (!%p2597_p4), %v3034_v4 }
  0x8a   : > { %v3038_v9 = vpack.c.bf16 (!%p2597_p4), %v542_v7, %v541_v6  ;;  %v526_v11 = vld [vmem:[%s5568_s3 + $0x18] sm:$0xff] (!%p2597_p4)  ;;  %v543_v12 = vld [vmem:[%s5568_s3 + $0xa0] sm:$0xff] (!%p2597_p4)  ;;  %v544_v13 = vld [vmem:[%s5568_s3 + $0xa8] sm:$0xff] (!%p2597_p4)  ;;  %s5676_s30 = sld [smem:[#allocation66_spill]] (!%p2597_p4)  ;;  %vm639_vm1 = vcmask (!%p2597_p4), 523264  }
  0x8b   : > { %3037 = vmatpush3.bf16.msra.mxu0 (!%p2597_p4), %v3036_v8  ;;  %3234 = vmatpush3.bf16.msra.mxu1 (!%p2597_p4), %v3036_v8  ;;  %v3040_v14 = vpack.c.bf16 (!%p2597_p4), %v526_v11, %v525_v10  ;;  %v3042_v15 = vpack.c.bf16 (!%p2597_p4), %v544_v13, %v543_v12  ;;  %v527_v16 = vld [vmem:[%s5568_s3 + $0x20] sm:$0xff] (!%p2597_p4)  ;;  %v528_v17 = vld [vmem:[%s5568_s3 + $0x28] sm:$0xff] (!%p2597_p4)  ;;  %v545_v18 = vld [vmem:[%s5568_s3 + $0xb0] sm:$0xff] (!%p2597_p4) }
  0x8c   : > { %3039 = vmatprep.subr.bf16.mxu0 %v3038_v9  ;;  %3227 = vmatprep.subr.bf16.mxu1 %v3038_v9  ;;  %v546_v19 = vld [vmem:[%s5568_s3 + $0xb8] sm:$0xff]  ;;  %v3044_v20 = vpack.c.bf16 %v528_v17, %v527_v16  ;;  %v529_v22 = vld [vmem:[%s5568_s3 + $0x30] sm:$0xff]  ;;  %v547_v24 = vld [vmem:[%s5568_s3 + $0xc0] sm:$0xff] }
  0x8d   : > { %v3046_v21 = vpack.c.bf16 %v546_v19, %v545_v18  ;;  %v530_v23 = vld [vmem:[%s5568_s3 + $0x38] sm:$0xff]  ;;  %v548_v25 = vld [vmem:[%s5568_s3 + $0xc8] sm:$0xff]  ;;  %v531_v30 = vld [vmem:[%s5568_s3 + $0x40] sm:$0xff] }
  0x8e   : > { %v520_v26 = vld [vmem:[%s4116_s22 + $0x8] sm:$0xff]  ;;  %v522_v27 = vld [vmem:[%s4116_s22 + $0x18] sm:$0xff]  ;;  %v3048_v28 = vpack.c.bf16 %v530_v23, %v529_v22  ;;  %v3050_v29 = vpack.c.bf16 %v548_v25, %v547_v24  ;;  %v549_v32 = vld [vmem:[%s5568_s3 + $0xd0] sm:$0xff] }
  0x8f   : > { %3041 = vmatpush3.bf16.msra.mxu0 %v3040_v14  ;;  %3235 = vmatpush3.bf16.msra.mxu1 %v3040_v14  ;;  %v532_v31 = vld [vmem:[%s5568_s3 + $0x48] sm:$0xff]  ;;  %v550_v33 = vld [vmem:[%s5568_s3 + $0xd8] sm:$0xff]  ;;  %v533_v36 = vld [vmem:[%s5568_s3 + $0x50] sm:$0xff] }
  0x90   : > { %3043 = vmatprep.subr.bf16.mxu0 %v3042_v15  ;;  %3228 = vmatprep.subr.bf16.mxu1 %v3042_v15  ;;  %v3052_v34 = vpack.c.bf16 %v532_v31, %v531_v30  ;;  %v3054_v35 = vpack.c.bf16 %v550_v33, %v549_v32  ;;  %v534_v37 = vld [vmem:[%s5568_s3 + $0x58] sm:$0xff]  ;;  %v551_v38 = vld [vmem:[%s5568_s3 + $0xe0] sm:$0xff]  ;;  %v552_v39 = vld [vmem:[%s5568_s3 + $0xe8] sm:$0xff] }
  0x91   : > { %626 = vmatprep.mubr.f32.mxu0 %v520_v26  ;;  %631 = vmatprep.mubr.f32.mxu1 %v522_v27  ;;  %v3056_v40 = vpack.c.bf16 %v534_v37, %v533_v36  ;;  %v3058_v41 = vpack.c.bf16 %v552_v39, %v551_v38  ;;  %v535_v42 = vld [vmem:[%s5568_s3 + $0x60] sm:$0xff]  ;;  %v536_v43 = vld [vmem:[%s5568_s3 + $0x68] sm:$0xff]  ;;  %v553_v44 = vld [vmem:[%s5568_s3 + $0xf0] sm:$0xff] }
  0x92   : > { %v554_v45 = vld [vmem:[%s5568_s3 + $0xf8] sm:$0xff]  ;;  %v3060_v46 = vpack.c.bf16 %v536_v43, %v535_v42  ;;  %v537_v48 = vld [vmem:[%s5568_s3 + $0x70] sm:$0xff]  ;;  %v519_v51 = vld [vmem:[%s4116_s22] sm:$0xff] }
  0x93   : > { %3045 = vmatpush3.bf16.msra.mxu0 %v3044_v20  ;;  %3236 = vmatpush3.bf16.msra.mxu1 %v3044_v20  ;;  %v3062_v47 = vpack.c.bf16 %v554_v45, %v553_v44  ;;  %v538_v49 = vld [vmem:[%s5568_s3 + $0x78] sm:$0xff]  ;;  %v521_v52 = vld [vmem:[%s4116_s22 + $0x10] sm:$0xff]  ;;  %v2598_v55 = vld [vmem:[%s5676_s30] ss:$0 sm:$0xff] }
  0x94   : > { %3047 = vmatprep.subr.bf16.mxu0 %v3046_v21  ;;  %3229 = vmatprep.subr.bf16.mxu1 %v3046_v21  ;;  %v3064_v50 = vpack.c.bf16 %v538_v49, %v537_v48 }
  0x97   : > { %3049 = vmatpush3.bf16.msra.mxu0 %v3048_v28  ;;  %3237 = vmatpush3.bf16.msra.mxu1 %v3048_v28 }
  0x98   : > { %3051 = vmatprep.subr.bf16.mxu0 %v3050_v29  ;;  %3230 = vmatprep.subr.bf16.mxu1 %v3050_v29 }
  0x9b   : > { %3053 = vmatpush3.bf16.msra.mxu0 %v3052_v34  ;;  %3238 = vmatpush3.bf16.msra.mxu1 %v3052_v34 }
  0x9c   : > { %3055 = vmatprep.subr.bf16.mxu0 %v3054_v35  ;;  %3231 = vmatprep.subr.bf16.mxu1 %v3054_v35 }
  0x9f   : > { %3057 = vmatpush3.bf16.msra.mxu0 %v3056_v40  ;;  %3239 = vmatpush3.bf16.msra.mxu1 %v3056_v40 }
  0xa0   : > { %3059 = vmatprep.subr.bf16.mxu0 %v3058_v41  ;;  %3232 = vmatprep.subr.bf16.mxu1 %v3058_v41 }
  0xa3   : > { %3061 = vmatpush3.bf16.msra.mxu0 %v3060_v46  ;;  %3240 = vmatpush3.bf16.msra.mxu1 %v3060_v46 }
  0xa4   : > { %3063 = vmatprep.subr.bf16.mxu0 %v3062_v47  ;;  %3233 = vmatprep.subr.bf16.mxu1 %v3062_v47 }
  0xa7   : > { %3065 = vmatpush3.bf16.msra.mxu0 %v3064_v50  ;;  %3241 = vmatpush3.bf16.msra.mxu1 %v3064_v50 }
  0xaa   : > { %627 = vmatmul.mubr.f32.vlgmr.msra.gmra.mrb[0].mxu0 %v519_v51  ;;  %632 = vmatmul.mubr.f32.vlgmr.msra.gmra.mrb[0].mxu1 %v521_v52 }
 0x17d   : > { %v2686_v53 = vpop.f32.mrb[0].mxu0  ;;  %v2689_v54 = vpop.f32.mrb[0].mxu1 }
 0x17e   : > { %v2687_v56 = vpop.f32.mrb[1].mxu0  ;;  %v2690_v57 = vpop.f32.mrb[1].mxu1 }
 0x17f   : > { %v2688_v58 = vadd.f32 %v2687_v56, %v2686_v53  ;;  %v2691_v59 = vadd.f32 %v2690_v57, %v2689_v54 }
 0x181   : > { %v629_v60 = vadd.f32 %v2688_v58, %v2598_v55  ;;  %v634_v61 = vadd.f32 %v2691_v59, %v2598_v55 }
 0x183   : > { %v637_v62 = vmax.f32 %v629_v60, 0.0  ;;  %v638_v63 = vmax.f32 %v634_v61, 0.0 }
 0x185   : > { %640 = vst.msk [vmem:[#allocation2 + $0x1] sm:$0xff] %vm639_vm1, %v637_v62  ;;  %641 = vst.msk [vmem:[#allocation2 + $0x9] sm:$0xff] %vm639_vm1, %v638_v63 }
 0x186 PF: > { %p2599_p3 = scmp.ne.s32.totalorder %s3735_s15, 0 }
 0x187   : > { %vm646_vm2 = vcmask (!%p2599_p3), 523264   ;;  %v3758_v1 = vmov (!%p2599_p3), 0.0  }
 0x188   : > { %645 = sbr.rel (%p2599_p3) target bundleno = 399 (0x18f), region = 72  ;;  %647 = vst.msk [vmem:[#allocation2 + $0x1] sm:$0xff] (!%p2599_p3), %vm646_vm2, %v3758_v1  ;;  %648 = vst.msk [vmem:[#allocation2 + $0x9] sm:$0xff] (!%p2599_p3), %vm646_vm2, %v3758_v1 }
 0x18f PF: > { %v697_v2 = vld [vmem:[%s5568_s3 + $0x80] sm:$0xff]  ;;  %v698_v3 = vld [vmem:[%s5568_s3 + $0x88] sm:$0xff]  ;;  %v699_v7 = vld [vmem:[%s5568_s3 + $0x90] sm:$0xff]  ;;  %s5709_s28 = sld [smem:[#allocation66_spill]]  ;;  %vm882_vm3 = vcmask 523264   ;;  %p2601_p7 = scmp.ge.s32.totalorder %s3735_s15, 1 }
 0x190   : > { %v681_v4 = vld [vmem:[%s5568_s3] sm:$0xff]  ;;  %v3066_v5 = vpack.c.bf16 %v698_v3, %v697_v2  ;;  %v682_v6 = vld [vmem:[%s5568_s3 + $0x8] sm:$0xff]  ;;  %v700_v8 = vld [vmem:[%s5568_s3 + $0x98] sm:$0xff]  ;;  %s5710_s4 = sld [smem:[#allocation66_spill]] (!%p2601_p7) }
 0x191   : > { %v3068_v9 = vpack.c.bf16 %v682_v6, %v681_v4  ;;  %v3070_v10 = vpack.c.bf16 %v700_v8, %v699_v7  ;;  %v683_v11 = vld [vmem:[%s5568_s3 + $0x10] sm:$0xff]  ;;  %v684_v12 = vld [vmem:[%s5568_s3 + $0x18] sm:$0xff]  ;;  %v701_v13 = vld [vmem:[%s5568_s3 + $0xa0] sm:$0xff] }
 0x192   : > { %3067 = vmatprep.subr.bf16.mxu0 %v3066_v5  ;;  %3242 = vmatprep.subr.bf16.mxu1 %v3066_v5  ;;  %v702_v14 = vld [vmem:[%s5568_s3 + $0xa8] sm:$0xff]  ;;  %v3072_v15 = vpack.c.bf16 %v684_v12, %v683_v11  ;;  %v685_v17 = vld [vmem:[%s5568_s3 + $0x20] sm:$0xff]  ;;  %v703_v19 = vld [vmem:[%s5568_s3 + $0xb0] sm:$0xff] }
 0x193   : > { %3069 = vmatpush3.bf16.msra.mxu0 %v3068_v9  ;;  %3250 = vmatpush3.bf16.msra.mxu1 %v3068_v9  ;;  %v3074_v16 = vpack.c.bf16 %v702_v14, %v701_v13  ;;  %v686_v18 = vld [vmem:[%s5568_s3 + $0x28] sm:$0xff]  ;;  %v704_v20 = vld [vmem:[%s5568_s3 + $0xb8] sm:$0xff]  ;;  %v687_v23 = vld [vmem:[%s5568_s3 + $0x30] sm:$0xff] }
 0x194   : > { %3071 = vmatprep.subr.bf16.mxu0 %v3070_v10  ;;  %3243 = vmatprep.subr.bf16.mxu1 %v3070_v10  ;;  %v3076_v21 = vpack.c.bf16 %v686_v18, %v685_v17  ;;  %v3078_v22 = vpack.c.bf16 %v704_v20, %v703_v19  ;;  %v688_v24 = vld [vmem:[%s5568_s3 + $0x38] sm:$0xff]  ;;  %v705_v25 = vld [vmem:[%s5568_s3 + $0xc0] sm:$0xff]  ;;  %v706_v26 = vld [vmem:[%s5568_s3 + $0xc8] sm:$0xff] }
 0x195   : > { %v4282_v27 = vld [vmem:[%s4055_s26 + $0x8] sm:$0xff]  ;;  %v3080_v29 = vpack.c.bf16 %v688_v24, %v687_v23  ;;  %v3082_v30 = vpack.c.bf16 %v706_v26, %v705_v25  ;;  %v689_v31 = vld [vmem:[%s5568_s3 + $0x40] sm:$0xff]  ;;  %v690_v32 = vld [vmem:[%s5568_s3 + $0x48] sm:$0xff] }
 0x196   : > { %5677 = vst [vmem:[#allocation18_spill] sm:$0xff] %v4282_v27  ;;  %784 = vmatprep.mubr.f32.mxu0 %v4282_v27  ;;  %v4286_v28 = vld [vmem:[%s4055_s26 + $0x88] sm:$0xff]  ;;  %v707_v33 = vld [vmem:[%s5568_s3 + $0xd0] sm:$0xff]  ;;  %v3084_v35 = vpack.c.bf16 %v690_v32, %v689_v31  ;;  %v709_v39 = vld [vmem:[%s5568_s3 + $0xe0] sm:$0xff] }
 0x197   : > { %3073 = vmatpush3.bf16.msra.mxu0 %v3072_v15  ;;  %3251 = vmatpush3.bf16.msra.mxu1 %v3072_v15  ;;  %5678 = vst [vmem:[#allocation19_spill] sm:$0xff] %v4286_v28  ;;  %v708_v34 = vld [vmem:[%s5568_s3 + $0xd8] sm:$0xff]  ;;  %v691_v37 = vld [vmem:[%s5568_s3 + $0x50] sm:$0xff]  ;;  %v710_v40 = vld [vmem:[%s5568_s3 + $0xe8] sm:$0xff] }
 0x198   : > { %3075 = vmatprep.subr.bf16.mxu0 %v3074_v16  ;;  %3244 = vmatprep.subr.bf16.mxu1 %v3074_v16  ;;  %v3086_v36 = vpack.c.bf16 %v708_v34, %v707_v33  ;;  %v692_v38 = vld [vmem:[%s5568_s3 + $0x58] sm:$0xff]  ;;  %v3090_v42 = vpack.c.bf16 %v710_v40, %v709_v39  ;;  %v693_v43 = vld [vmem:[%s5568_s3 + $0x60] sm:$0xff]  ;;  %v694_v44 = vld [vmem:[%s5568_s3 + $0x68] sm:$0xff] }
 0x199   : > { %824 = vmatprep.mubr.f32.mxu1 %v4286_v28  ;;  %v3088_v41 = vpack.c.bf16 %v692_v38, %v691_v37  ;;  %v711_v45 = vld [vmem:[%s5568_s3 + $0xf0] sm:$0xff]  ;;  %v712_v46 = vld [vmem:[%s5568_s3 + $0xf8] sm:$0xff]  ;;  %v3092_v47 = vpack.c.bf16 %v694_v44, %v693_v43  ;;  %v4338_v54 = vld [vmem:[%s4055_s26 + $0x18] sm:$0xff] }
 0x19a   : > { %v3094_v48 = vpack.c.bf16 %v712_v46, %v711_v45  ;;  %v695_v49 = vld [vmem:[%s5568_s3 + $0x70] sm:$0xff]  ;;  %v696_v50 = vld [vmem:[%s5568_s3 + $0x78] sm:$0xff]  ;;  %5681 = vst [vmem:[#allocation22_spill] sm:$0xff] %v4338_v54  ;;  %v4341_v55 = vld [vmem:[%s4055_s26 + $0x98] sm:$0xff] }
 0x19b   : > { %3077 = vmatpush3.bf16.msra.mxu0 %v3076_v21  ;;  %3252 = vmatpush3.bf16.msra.mxu1 %v3076_v21  ;;  %v3096_v51 = vpack.c.bf16 %v696_v50, %v695_v49  ;;  %v4332_v52 = vld [vmem:[%s4055_s26] sm:$0xff]  ;;  %5682 = vst [vmem:[#allocation23_spill] sm:$0xff] %v4341_v55  ;;  %v4348_v56 = vld [vmem:[%s4055_s26 + $0x10] sm:$0xff]  ;;  %v4354_v58 = vld [vmem:[%s4055_s26 + $0x28] sm:$0xff] }
 0x19c   : > { %3079 = vmatprep.subr.bf16.mxu0 %v3078_v22  ;;  %3245 = vmatprep.subr.bf16.mxu1 %v3078_v22  ;;  %5679 = vst [vmem:[#allocation20_spill] sm:$0xff] %v4332_v52  ;;  %v4335_v53 = vld [vmem:[%s4055_s26 + $0x80] sm:$0xff]  ;;  %5683 = vst [vmem:[#allocation24_spill] sm:$0xff] %v4348_v56  ;;  %v4351_v57 = vld [vmem:[%s4055_s26 + $0x90] sm:$0xff] }
 0x19d   : > { %5680 = vst [vmem:[#allocation21_spill] sm:$0xff] %v4335_v53  ;;  %5684 = vst [vmem:[#allocation25_spill] sm:$0xff] %v4351_v57  ;;  %v4357_v59 = vld [vmem:[%s4055_s26 + $0xa8] sm:$0xff]  ;;  %v4364_v60 = vld [vmem:[%s4055_s26 + $0x20] sm:$0xff] }
 0x19e   : > { %5685 = vst [vmem:[#allocation26_spill] sm:$0xff] %v4354_v58  ;;  %5686 = vst [vmem:[#allocation27_spill] sm:$0xff] %v4357_v59  ;;  %v4367_v61 = vld [vmem:[%s4055_s26 + $0xa0] sm:$0xff]  ;;  %v4370_v62 = vld [vmem:[%s4055_s26 + $0x38] sm:$0xff] }
 0x19f   : > { %3081 = vmatpush3.bf16.msra.mxu0 %v3080_v29  ;;  %3253 = vmatpush3.bf16.msra.mxu1 %v3080_v29  ;;  %5687 = vst [vmem:[#allocation28_spill] sm:$0xff] %v4364_v60  ;;  %5688 = vst [vmem:[#allocation29_spill] sm:$0xff] %v4367_v61  ;;  %v4373_v63 = vld [vmem:[%s4055_s26 + $0xb8] sm:$0xff]  ;;  %v4380_v1 = vld [vmem:[%s4055_s26 + $0x30] sm:$0xff] }
 0x1a0   : > { %3083 = vmatprep.subr.bf16.mxu0 %v3082_v30  ;;  %3246 = vmatprep.subr.bf16.mxu1 %v3082_v30  ;;  %5689 = vst [vmem:[#allocation30_spill] sm:$0xff] %v4370_v62  ;;  %5690 = vst [vmem:[#allocation31_spill] sm:$0xff] %v4373_v63  ;;  %v4383_v2 = vld [vmem:[%s4055_s26 + $0xb0] sm:$0xff]  ;;  %v4386_v3 = vld [vmem:[%s4055_s26 + $0x48] sm:$0xff] }
 0x1a1   : > { %5691 = vst [vmem:[#allocation32_spill] sm:$0xff] %v4380_v1  ;;  %5692 = vst [vmem:[#allocation33_spill] sm:$0xff] %v4383_v2  ;;  %v4389_v4 = vld [vmem:[%s4055_s26 + $0xc8] sm:$0xff]  ;;  %v4396_v5 = vld [vmem:[%s4055_s26 + $0x40] sm:$0xff] }
 0x1a2   : > { %5693 = vst [vmem:[#allocation34_spill] sm:$0xff] %v4386_v3  ;;  %5694 = vst [vmem:[#allocation35_spill] sm:$0xff] %v4389_v4  ;;  %v4399_v6 = vld [vmem:[%s4055_s26 + $0xc0] sm:$0xff]  ;;  %v4402_v7 = vld [vmem:[%s4055_s26 + $0x58] sm:$0xff] }
 0x1a3   : > { %3085 = vmatpush3.bf16.msra.mxu0 %v3084_v35  ;;  %3254 = vmatpush3.bf16.msra.mxu1 %v3084_v35  ;;  %5695 = vst [vmem:[#allocation36_spill] sm:$0xff] %v4396_v5  ;;  %5696 = vst [vmem:[#allocation37_spill] sm:$0xff] %v4399_v6  ;;  %v4405_v8 = vld [vmem:[%s4055_s26 + $0xd8] sm:$0xff]  ;;  %v4412_v9 = vld [vmem:[%s4055_s26 + $0x50] sm:$0xff] }
 0x1a4   : > { %3087 = vmatprep.subr.bf16.mxu0 %v3086_v36  ;;  %3247 = vmatprep.subr.bf16.mxu1 %v3086_v36  ;;  %5697 = vst [vmem:[#allocation38_spill] sm:$0xff] %v4402_v7  ;;  %5698 = vst [vmem:[#allocation39_spill] sm:$0xff] %v4405_v8  ;;  %v4415_v10 = vld [vmem:[%s4055_s26 + $0xd0] sm:$0xff]  ;;  %v4418_v11 = vld [vmem:[%s4055_s26 + $0x68] sm:$0xff] }
 0x1a5   : > { %5699 = vst [vmem:[#allocation40_spill] sm:$0xff] %v4412_v9  ;;  %5700 = vst [vmem:[#allocation41_spill] sm:$0xff] %v4415_v10  ;;  %v4421_v12 = vld [vmem:[%s4055_s26 + $0xe8] sm:$0xff]  ;;  %v4428_v13 = vld [vmem:[%s4055_s26 + $0x60] sm:$0xff] }
 0x1a6   : > { %5701 = vst [vmem:[#allocation42_spill] sm:$0xff] %v4418_v11  ;;  %5702 = vst [vmem:[#allocation43_spill] sm:$0xff] %v4421_v12  ;;  %v4431_v14 = vld [vmem:[%s4055_s26 + $0xe0] sm:$0xff]  ;;  %v4434_v15 = vld [vmem:[%s4055_s26 + $0x78] sm:$0xff] }
 0x1a7   : > { %3089 = vmatpush3.bf16.msra.mxu0 %v3088_v41  ;;  %3255 = vmatpush3.bf16.msra.mxu1 %v3088_v41  ;;  %5703 = vst [vmem:[#allocation44_spill] sm:$0xff] %v4428_v13  ;;  %5704 = vst [vmem:[#allocation45_spill] sm:$0xff] %v4431_v14  ;;  %v4437_v16 = vld [vmem:[%s4055_s26 + $0xf8] sm:$0xff]  ;;  %v4444_v17 = vld [vmem:[%s4055_s26 + $0x70] sm:$0xff] }
 0x1a8   : > { %3091 = vmatprep.subr.bf16.mxu0 %v3090_v42  ;;  %3248 = vmatprep.subr.bf16.mxu1 %v3090_v42  ;;  %5705 = vst [vmem:[#allocation46_spill] sm:$0xff] %v4434_v15  ;;  %5706 = vst [vmem:[#allocation47_spill] sm:$0xff] %v4437_v16  ;;  %v4447_v18 = vld [vmem:[%s4055_s26 + $0xf0] sm:$0xff] }
 0x1a9   : > { %5707 = vst [vmem:[#allocation48_spill] sm:$0xff] %v4444_v17  ;;  %5708 = vst [vmem:[#allocation49_spill] sm:$0xff] %v4447_v18  ;;  %v4454_v21 = vld [vmem:[%s5709_s28] ss:$0 sm:$0xff] }
 0x1ab   : > { %3093 = vmatpush3.bf16.msra.mxu0 %v3092_v47  ;;  %3256 = vmatpush3.bf16.msra.mxu1 %v3092_v47 }
 0x1ac   : > { %3095 = vmatprep.subr.bf16.mxu0 %v3094_v48  ;;  %3249 = vmatprep.subr.bf16.mxu1 %v3094_v48 }
 0x1af   : > { %3097 = vmatpush3.bf16.msra.mxu0 %v3096_v51  ;;  %3257 = vmatpush3.bf16.msra.mxu1 %v3096_v51 }
 0x1b2   : > { %785 = vmatmul.mubr.f32.vlgmr.msra.gmra.mrb[0].mxu0 %v4332_v52  ;;  %825 = vmatmul.mubr.f32.vlgmr.msra.gmra.mrb[0].mxu1 %v4335_v53 }
 0x1b3   : > { %789 = vmatprep.mubr.f32.mxu0 %v4338_v54  ;;  %829 = vmatprep.mubr.f32.mxu1 %v4341_v55 }
 0x1b6   : > { %790 = vmatmul.mubr.f32.gmra.mrb[2].mxu0 %v4348_v56  ;;  %830 = vmatmul.mubr.f32.gmra.mrb[2].mxu1 %v4351_v57 }
 0x1b7   : > { %794 = vmatprep.mubr.f32.mxu0 %v4354_v58  ;;  %834 = vmatprep.mubr.f32.mxu1 %v4357_v59 }
 0x1ba   : > { %795 = vmatmul.mubr.f32.gmra.mrb[4].mxu0 %v4364_v60  ;;  %835 = vmatmul.mubr.f32.gmra.mrb[4].mxu1 %v4367_v61 }
 0x1bb   : > { %799 = vmatprep.mubr.f32.mxu0 %v4370_v62  ;;  %839 = vmatprep.mubr.f32.mxu1 %v4373_v63 }
 0x1be   : > { %800 = vmatmul.mubr.f32.gmra.mrb[6].mxu0 %v4380_v1  ;;  %840 = vmatmul.mubr.f32.gmra.mrb[6].mxu1 %v4383_v2 }
 0x1bf   : > { %804 = vmatprep.mubr.f32.mxu0 %v4386_v3  ;;  %844 = vmatprep.mubr.f32.mxu1 %v4389_v4 }
 0x1c2   : > { %805 = vmatmul.mubr.f32.gmra.mrb[8].mxu0 %v4396_v5  ;;  %845 = vmatmul.mubr.f32.gmra.mrb[8].mxu1 %v4399_v6 }
 0x1c3   : > { %809 = vmatprep.mubr.f32.mxu0 %v4402_v7  ;;  %849 = vmatprep.mubr.f32.mxu1 %v4405_v8 }
 0x1c6   : > { %810 = vmatmul.mubr.f32.gmra.mrb[10].mxu0 %v4412_v9  ;;  %850 = vmatmul.mubr.f32.gmra.mrb[10].mxu1 %v4415_v10 }
 0x1c7   : > { %814 = vmatprep.mubr.f32.mxu0 %v4418_v11  ;;  %854 = vmatprep.mubr.f32.mxu1 %v4421_v12 }
 0x1ca   : > { %815 = vmatmul.mubr.f32.gmra.mrb[12].mxu0 %v4428_v13  ;;  %855 = vmatmul.mubr.f32.gmra.mrb[12].mxu1 %v4431_v14 }
 0x1cb   : > { %819 = vmatprep.mubr.f32.mxu0 %v4434_v15  ;;  %859 = vmatprep.mubr.f32.mxu1 %v4437_v16 }
 0x1ce   : > { %820 = vmatmul.mubr.f32.gmra.mrb[14].mxu0 %v4444_v17  ;;  %860 = vmatmul.mubr.f32.gmra.mrb[14].mxu1 %v4447_v18 }
 0x285   : > { %v2724_v19 = vpop.f32.mrb[0].mxu0  ;;  %v2748_v20 = vpop.f32.mrb[0].mxu1 }
 0x286   : > { %v2725_v22 = vpop.f32.mrb[1].mxu0  ;;  %v2749_v23 = vpop.f32.mrb[1].mxu1 }
 0x287   : > { %v2726_v24 = vadd.f32 %v2725_v22, %v2724_v19  ;;  %v2750_v25 = vadd.f32 %v2749_v23, %v2748_v20 }
 0x289   : > { %v787_v26 = vadd.f32 %v2726_v24, %v4454_v21  ;;  %v827_v29 = vadd.f32 %v2750_v25, %v4454_v21  ;;  %v2727_v30 = vpop.f32.mrb[2].mxu0  ;;  %v2751_v31 = vpop.f32.mrb[2].mxu1 }
 0x28a   : > { %v2728_v32 = vpop.f32.mrb[3].mxu0  ;;  %v2752_v33 = vpop.f32.mrb[3].mxu1 }
 0x28b   : > { %v865_v34 = vmax.f32 %v787_v26, 0.0  ;;  %v873_v35 = vmax.f32 %v827_v29, 0.0  ;;  %v2729_v36 = vadd.f32 %v2728_v32, %v2727_v30  ;;  %v2753_v37 = vadd.f32 %v2752_v33, %v2751_v31 }
 0x28d   : > { %883 = vst.msk [vmem:[#allocation2 + $0x19] sm:$0xff] %vm882_vm3, %v865_v34  ;;  %891 = vst.msk [vmem:[#allocation2 + $0x79] sm:$0xff] %vm882_vm3, %v873_v35  ;;  %v792_v38 = vadd.f32 %v2729_v36, %v4454_v21  ;;  %v832_v39 = vadd.f32 %v2753_v37, %v4454_v21  ;;  %v2730_v40 = vpop.f32.mrb[4].mxu0  ;;  %v2754_v41 = vpop.f32.mrb[4].mxu1 }
 0x28e   : > { %v2731_v42 = vpop.f32.mrb[5].mxu0  ;;  %v2755_v43 = vpop.f32.mrb[5].mxu1 }
 0x28f   : > { %v866_v44 = vmax.f32 %v792_v38, 0.0  ;;  %v874_v45 = vmax.f32 %v832_v39, 0.0  ;;  %v2732_v46 = vadd.f32 %v2731_v42, %v2730_v40  ;;  %v2756_v47 = vadd.f32 %v2755_v43, %v2754_v41 }
 0x291   : > { %884 = vst.msk [vmem:[#allocation2 + $0x21] sm:$0xff] %vm882_vm3, %v866_v44  ;;  %892 = vst.msk [vmem:[#allocation2 + $0x81] sm:$0xff] %vm882_vm3, %v874_v45  ;;  %v797_v48 = vadd.f32 %v2732_v46, %v4454_v21  ;;  %v837_v49 = vadd.f32 %v2756_v47, %v4454_v21  ;;  %v2733_v50 = vpop.f32.mrb[6].mxu0  ;;  %v2757_v51 = vpop.f32.mrb[6].mxu1 }
 0x292   : > { %v2734_v19 = vpop.f32.mrb[7].mxu0  ;;  %v2758_v20 = vpop.f32.mrb[7].mxu1 }
 0x293   : > { %v867_v22 = vmax.f32 %v797_v48, 0.0  ;;  %v875_v23 = vmax.f32 %v837_v49, 0.0  ;;  %v2735_v24 = vadd.f32 %v2734_v19, %v2733_v50  ;;  %v2759_v25 = vadd.f32 %v2758_v20, %v2757_v51 }
 0x295   : > { %885 = vst.msk [vmem:[#allocation2 + $0x31] sm:$0xff] %vm882_vm3, %v867_v22  ;;  %893 = vst.msk [vmem:[#allocation2 + $0x91] sm:$0xff] %vm882_vm3, %v875_v23  ;;  %v802_v26 = vadd.f32 %v2735_v24, %v4454_v21  ;;  %v842_v29 = vadd.f32 %v2759_v25, %v4454_v21  ;;  %v2736_v30 = vpop.f32.mrb[8].mxu0  ;;  %v2760_v31 = vpop.f32.mrb[8].mxu1 }
 0x296   : > { %v2737_v32 = vpop.f32.mrb[9].mxu0  ;;  %v2761_v33 = vpop.f32.mrb[9].mxu1 }
 0x297   : > { %v868_v34 = vmax.f32 %v802_v26, 0.0  ;;  %v876_v35 = vmax.f32 %v842_v29, 0.0  ;;  %v2738_v36 = vadd.f32 %v2737_v32, %v2736_v30  ;;  %v2762_v37 = vadd.f32 %v2761_v33, %v2760_v31 }
 0x299   : > { %886 = vst.msk [vmem:[#allocation2 + $0x39] sm:$0xff] %vm882_vm3, %v868_v34  ;;  %894 = vst.msk [vmem:[#allocation2 + $0x99] sm:$0xff] %vm882_vm3, %v876_v35  ;;  %v807_v38 = vadd.f32 %v2738_v36, %v4454_v21  ;;  %v847_v39 = vadd.f32 %v2762_v37, %v4454_v21  ;;  %v2739_v40 = vpop.f32.mrb[10].mxu0  ;;  %v2763_v41 = vpop.f32.mrb[10].mxu1 }
 0x29a   : > { %v2740_v42 = vpop.f32.mrb[11].mxu0  ;;  %v2764_v43 = vpop.f32.mrb[11].mxu1 }
 0x29b   : > { %v869_v44 = vmax.f32 %v807_v38, 0.0  ;;  %v877_v45 = vmax.f32 %v847_v39, 0.0  ;;  %v2741_v46 = vadd.f32 %v2740_v42, %v2739_v40  ;;  %v2765_v47 = vadd.f32 %v2764_v43, %v2763_v41  ;;  %v923_v42 = vld [vmem:[%s5568_s3 + $0x80] sm:$0xff] (!%p2601_p7)  ;;  %v924_v43 = vld [vmem:[%s5568_s3 + $0x88] sm:$0xff] (!%p2601_p7) }
 0x29d   : > { %887 = vst.msk [vmem:[#allocation2 + $0x49] sm:$0xff] %vm882_vm3, %v869_v44  ;;  %895 = vst.msk [vmem:[#allocation2 + $0xa9] sm:$0xff] %vm882_vm3, %v877_v45  ;;  %v812_v48 = vadd.f32 %v2741_v46, %v4454_v21  ;;  %v852_v49 = vadd.f32 %v2765_v47, %v4454_v21  ;;  %v2742_v50 = vpop.f32.mrb[12].mxu0  ;;  %v2766_v51 = vpop.f32.mrb[12].mxu1  ;;  %v3098_v44 = vpack.c.bf16 (!%p2601_p7), %v924_v43, %v923_v42  ;;  %v908_v45 = vld [vmem:[%s5568_s3 + $0x8] sm:$0xff] (!%p2601_p7)  ;;  %v925_v46 = vld [vmem:[%s5568_s3 + $0x90] sm:$0xff] (!%p2601_p7) }
 0x29e   : > { %v2743_v19 = vpop.f32.mrb[13].mxu0  ;;  %v2767_v20 = vpop.f32.mrb[13].mxu1  ;;  %v926_v47 = vld [vmem:[%s5568_s3 + $0x98] sm:$0xff] (!%p2601_p7)  ;;  %v933_v42 = vld [vmem:[%s5568_s3 + $0xd0] sm:$0xff] (!%p2601_p7) }
 0x29f   : > { %v870_v22 = vmax.f32 %v812_v48, 0.0  ;;  %v878_v23 = vmax.f32 %v852_v49, 0.0  ;;  %v2744_v24 = vadd.f32 %v2743_v19, %v2742_v50  ;;  %v2768_v25 = vadd.f32 %v2767_v20, %v2766_v51  ;;  %v909_v50 = vld [vmem:[%s5568_s3 + $0x10] sm:$0xff] (!%p2601_p7)  ;;  %v910_v51 = vld [vmem:[%s5568_s3 + $0x18] sm:$0xff] (!%p2601_p7)  ;;  %v927_v19 = vld [vmem:[%s5568_s3 + $0xa0] sm:$0xff] (!%p2601_p7)  ;;  %3099 = vmatprep.subr.bf16.mxu0 (!%p2601_p7), %v3098_v44  ;;  %3258 = vmatprep.subr.bf16.mxu1 (!%p2601_p7), %v3098_v44 }
 0x2a0   : > { %v3102_v49 = vpack.c.bf16 (!%p2601_p7), %v926_v47, %v925_v46  ;;  %v928_v20 = vld [vmem:[%s5568_s3 + $0xa8] sm:$0xff] (!%p2601_p7)  ;;  %v934_v43 = vld [vmem:[%s5568_s3 + $0xd8] sm:$0xff] (!%p2601_p7)  ;;  %v935_v47 = vld [vmem:[%s5568_s3 + $0xe0] sm:$0xff] (!%p2601_p7) }
 0x2a1   : > { %888 = vst.msk [vmem:[#allocation2 + $0x51] sm:$0xff] %vm882_vm3, %v870_v22  ;;  %896 = vst.msk [vmem:[#allocation2 + $0xb1] sm:$0xff] %vm882_vm3, %v878_v23  ;;  %v817_v26 = vadd.f32 %v2744_v24, %v4454_v21  ;;  %v857_v29 = vadd.f32 %v2768_v25, %v4454_v21  ;;  %v2745_v30 = vpop.f32.mrb[14].mxu0  ;;  %v2769_v31 = vpop.f32.mrb[14].mxu1  ;;  %v3104_v22 = vpack.c.bf16 (!%p2601_p7), %v910_v51, %v909_v50  ;;  %v911_v24 = vld [vmem:[%s5568_s3 + $0x20] sm:$0xff] (!%p2601_p7)  ;;  %v912_v25 = vld [vmem:[%s5568_s3 + $0x28] sm:$0xff] (!%p2601_p7) }
 0x2a2   : > { %v2746_v32 = vpop.f32.mrb[15].mxu0  ;;  %v2770_v33 = vpop.f32.mrb[15].mxu1  ;;  %v3106_v23 = vpack.c.bf16 (!%p2601_p7), %v928_v20, %v927_v19  ;;  %v3118_v44 = vpack.c.bf16 (!%p2601_p7), %v934_v43, %v933_v42  ;;  %v918_v46 = vld [vmem:[%s5568_s3 + $0x58] sm:$0xff] (!%p2601_p7)  ;;  %v919_v51 = vld [vmem:[%s5568_s3 + $0x60] sm:$0xff] (!%p2601_p7)  ;;  %v920_v19 = vld [vmem:[%s5568_s3 + $0x68] sm:$0xff] (!%p2601_p7) }
 0x2a3   : > { %v871_v34 = vmax.f32 %v817_v26, 0.0  ;;  %v879_v35 = vmax.f32 %v857_v29, 0.0  ;;  %v2747_v36 = vadd.f32 %v2746_v32, %v2745_v30  ;;  %v2771_v37 = vadd.f32 %v2770_v33, %v2769_v31  ;;  %902 = sbr.rel (%p2601_p7) target bundleno = 931 (0x3a3), region = 76  ;;  %v929_v26 = vld [vmem:[%s5568_s3 + $0xb0] sm:$0xff] (!%p2601_p7)  ;;  %v930_v29 = vld [vmem:[%s5568_s3 + $0xb8] sm:$0xff] (!%p2601_p7) }
 0x2a4   : > { %v3108_v30 = vpack.c.bf16 (!%p2601_p7), %v912_v25, %v911_v24  ;;  %v3110_v31 = vpack.c.bf16 (!%p2601_p7), %v930_v29, %v929_v26  ;;  %v913_v32 = vld [vmem:[%s5568_s3 + $0x30] sm:$0xff] (!%p2601_p7)  ;;  %v914_v33 = vld [vmem:[%s5568_s3 + $0x38] sm:$0xff] (!%p2601_p7) }
 0x2a5   : > { %889 = vst.msk [vmem:[#allocation2 + $0x61] sm:$0xff] %vm882_vm3, %v871_v34  ;;  %897 = vst.msk [vmem:[#allocation2 + $0xc1] sm:$0xff] %vm882_vm3, %v879_v35  ;;  %v822_v38 = vadd.f32 %v2747_v36, %v4454_v21  ;;  %v862_v39 = vadd.f32 %v2771_v37, %v4454_v21  ;;  %v907_v21 = vld [vmem:[%s5568_s3] sm:$0xff] (!%p2601_p7)  ;;  %v932_v35 = vld [vmem:[%s5568_s3 + $0xc8] sm:$0xff] (!%p2601_p7) }
 0x2a6   : > { %v3100_v48 = vpack.c.bf16 (!%p2601_p7), %v908_v45, %v907_v21  ;;  %v931_v34 = vld [vmem:[%s5568_s3 + $0xc0] sm:$0xff] (!%p2601_p7)  ;;  %v904_v36 = vld [vmem:[%s4062_s1 + $0x8] sm:$0xff] (!%p2601_p7)  ;;  %v906_v37 = vld [vmem:[%s4062_s1 + $0x18] sm:$0xff] (!%p2601_p7) }
 0x2a7   : > { %v872_v40 = vmax.f32 %v822_v38, 0.0  ;;  %v880_v41 = vmax.f32 %v862_v39, 0.0  ;;  %1010 = vmatprep.mubr.f32.mxu0 (!%p2601_p7), %v904_v36  ;;  %v3112_v38 = vpack.c.bf16 (!%p2601_p7), %v914_v33, %v913_v32  ;;  %v3114_v39 = vpack.c.bf16 (!%p2601_p7), %v932_v35, %v931_v34  ;;  %1015 = vmatprep.mubr.f32.mxu1 (!%p2601_p7), %v906_v37  ;;  %v917_v45 = vld [vmem:[%s5568_s3 + $0x50] sm:$0xff] (!%p2601_p7)  ;;  %v922_v26 = vld [vmem:[%s5568_s3 + $0x78] sm:$0xff] (!%p2601_p7)  ;;  %v2602_v34 = vld [vmem:[%s5710_s4] ss:$0 sm:$0xff] (!%p2601_p7) }
 0x2a8   : > { %3101 = vmatpush3.bf16.msra.mxu0 (!%p2601_p7), %v3100_v48  ;;  %3266 = vmatpush3.bf16.msra.mxu1 (!%p2601_p7), %v3100_v48  ;;  %v936_v48 = vld [vmem:[%s5568_s3 + $0xe8] sm:$0xff] (!%p2601_p7)  ;;  %v937_v20 = vld [vmem:[%s5568_s3 + $0xf0] sm:$0xff] (!%p2601_p7) }
 0x2a9   : > { %890 = vst.msk [vmem:[#allocation2 + $0x69] sm:$0xff] %vm882_vm3, %v872_v40  ;;  %898 = vst.msk [vmem:[#allocation2 + $0xc9] sm:$0xff] %vm882_vm3, %v880_v41  ;;  %3103 = vmatprep.subr.bf16.mxu0 (!%p2601_p7), %v3102_v49  ;;  %3259 = vmatprep.subr.bf16.mxu1 (!%p2601_p7), %v3102_v49  ;;  %v915_v40 = vld [vmem:[%s5568_s3 + $0x40] sm:$0xff] (!%p2601_p7)  ;;  %v916_v41 = vld [vmem:[%s5568_s3 + $0x48] sm:$0xff] (!%p2601_p7)  ;;  %v3120_v49 = vpack.c.bf16 (!%p2601_p7), %v918_v46, %v917_v45  ;;  %v3122_v50 = vpack.c.bf16 (!%p2601_p7), %v936_v48, %v935_v47 }
 0x2aa   : > { %v3116_v21 = vpack.c.bf16 %v916_v41, %v915_v40  ;;  %v921_v25 = vld [vmem:[%s5568_s3 + $0x70] sm:$0xff] }
 0x2ab   : > { %v3128_v29 = vpack.c.bf16 %v922_v26, %v921_v25 }
 0x2ac   : > { %3105 = vmatpush3.bf16.msra.mxu0 %v3104_v22  ;;  %3267 = vmatpush3.bf16.msra.mxu1 %v3104_v22  ;;  %v938_v22 = vld [vmem:[%s5568_s3 + $0xf8] sm:$0xff] }
 0x2ad   : > { %3107 = vmatprep.subr.bf16.mxu0 %v3106_v23  ;;  %3260 = vmatprep.subr.bf16.mxu1 %v3106_v23  ;;  %v3124_v23 = vpack.c.bf16 %v920_v19, %v919_v51  ;;  %v3126_v24 = vpack.c.bf16 %v938_v22, %v937_v20 }
 0x2b0   : > { %3109 = vmatpush3.bf16.msra.mxu0 %v3108_v30  ;;  %3268 = vmatpush3.bf16.msra.mxu1 %v3108_v30  ;;  %v903_v30 = vld [vmem:[%s4062_s1] sm:$0xff] }
 0x2b1   : > { %3111 = vmatprep.subr.bf16.mxu0 %v3110_v31  ;;  %3261 = vmatprep.subr.bf16.mxu1 %v3110_v31  ;;  %v905_v31 = vld [vmem:[%s4062_s1 + $0x10] sm:$0xff] }
 0x2b4   : > { %3113 = vmatpush3.bf16.msra.mxu0 %v3112_v38  ;;  %3269 = vmatpush3.bf16.msra.mxu1 %v3112_v38 }
 0x2b5   : > { %3115 = vmatprep.subr.bf16.mxu0 %v3114_v39  ;;  %3262 = vmatprep.subr.bf16.mxu1 %v3114_v39 }
 0x2b8   : > { %3117 = vmatpush3.bf16.msra.mxu0 %v3116_v21  ;;  %3270 = vmatpush3.bf16.msra.mxu1 %v3116_v21 }
 0x2b9   : > { %3119 = vmatprep.subr.bf16.mxu0 %v3118_v44  ;;  %3263 = vmatprep.subr.bf16.mxu1 %v3118_v44 }
 0x2bc   : > { %3121 = vmatpush3.bf16.msra.mxu0 %v3120_v49  ;;  %3271 = vmatpush3.bf16.msra.mxu1 %v3120_v49 }
 0x2bd   : > { %3123 = vmatprep.subr.bf16.mxu0 %v3122_v50  ;;  %3264 = vmatprep.subr.bf16.mxu1 %v3122_v50 }
 0x2c0   : > { %3125 = vmatpush3.bf16.msra.mxu0 %v3124_v23  ;;  %3272 = vmatpush3.bf16.msra.mxu1 %v3124_v23 }
 0x2c1   : > { %3127 = vmatprep.subr.bf16.mxu0 %v3126_v24  ;;  %3265 = vmatprep.subr.bf16.mxu1 %v3126_v24 }
 0x2c4   : > { %3129 = vmatpush3.bf16.msra.mxu0 %v3128_v29  ;;  %3273 = vmatpush3.bf16.msra.mxu1 %v3128_v29 }
 0x2c7   : > { %1011 = vmatmul.mubr.f32.vlgmr.msra.gmra.mrb[0].mxu0 %v903_v30  ;;  %1016 = vmatmul.mubr.f32.vlgmr.msra.gmra.mrb[0].mxu1 %v905_v31 }
 0x39a   : > { %v2804_v32 = vpop.f32.mrb[0].mxu0  ;;  %v2807_v33 = vpop.f32.mrb[0].mxu1 }
 0x39b   : > { %v2805_v35 = vpop.f32.mrb[1].mxu0  ;;  %v2808_v36 = vpop.f32.mrb[1].mxu1 }
 0x39c   : > { %v2806_v37 = vadd.f32 %v2805_v35, %v2804_v32  ;;  %v2809_v38 = vadd.f32 %v2808_v36, %v2807_v33 }
 0x39e   : > { %v1013_v39 = vadd.f32 %v2806_v37, %v2602_v34  ;;  %v1018_v40 = vadd.f32 %v2809_v38, %v2602_v34 }
 0x3a0   : > { %v1021_v41 = vmax.f32 %v1013_v39, 0.0  ;;  %v1022_v42 = vmax.f32 %v1018_v40, 0.0 }
 0x3a2   : > { %1024 = vst.msk [vmem:[#allocation2 + $0xd9] sm:$0xff] %vm882_vm3, %v1021_v41  ;;  %1025 = vst.msk [vmem:[#allocation2 + $0xe1] sm:$0xff] %vm882_vm3, %v1022_v42 }
 0x3a3 PF: > { %p2603_p5 = scmp.ne.s32.totalorder %s3735_s15, 1 }
 0x3a4   : > { %v3759_v43 = vmov (!%p2603_p5), 0.0  }
 0x3a5   : > { %1029 = sbr.rel (%p2603_p5) target bundleno = 940 (0x3ac), region = 80  ;;  %1031 = vst.msk [vmem:[#allocation2 + $0xd9] sm:$0xff] (!%p2603_p5), %vm882_vm3, %v3759_v43  ;;  %1032 = vst.msk [vmem:[#allocation2 + $0xe1] sm:$0xff] (!%p2603_p5), %vm882_vm3, %v3759_v43 }
 0x3ac PF: > { %v1049_v21 = vld [vmem:[#allocation2 + $0x1] sm:$0xff]  ;;  %v4597_v44 = vld [vmem:[#allocation2 + $0x18] sm:$0xff]  ;;  %v4602_v47 = vld [vmem:[#allocation2 + $0x30] sm:$0xff]  ;;  %s3760_s1 = smov 64   ;;  %s5714_s20 = sld [smem:[#allocation67_spill]] }
 0x3ad   : > { %v4599_v45 = vld [vmem:[#allocation2 + $0x19] sm:$0xff]  ;;  %v3405_v46 = vpack.i.bf16 %v1049_v21, %v4597_v44  ;;  %v1050_v48 = vld [vmem:[#allocation2 + $0x9] sm:$0xff]  ;;  %v4608_v51 = vld [vmem:[#allocation2 + $0x21] sm:$0xff]  ;;  %s5743_s21 = sld [smem:[#allocation69_spill]]  ;;  %s5744_s25 = sld [smem:[#allocation68_spill]] }
 0x3ae   : > { %5711 = vst [vmem:[#allocation50_spill] sm:$0xff] %v4599_v45  ;;  %v4604_v49 = vld [vmem:[#allocation2 + $0x20] sm:$0xff]  ;;  %v3415_v50 = vpack.i.bf16 %v4599_v45, %v4602_v47  ;;  %5712 = vst [vmem:[#allocation51_spill] sm:$0xff] %v4608_v51  ;;  %v4610_v19 = vld [vmem:[#allocation2 + $0x38] sm:$0xff]  ;;  %s5745_s29 = sld [smem:[#allocation70_spill]]  ;;  %s2653_s4 = sshll.u32 %s3735_s15, 5 }
 0x3af   : > { %3406 = vrot.lane.b32.xlu0 %v3405_v46, %s3760_s1  ;;  %v3410_v20 = vpack.i.bf16 %v1050_v48, %v4604_v49  ;;  %v3420_v22 = vpack.i.bf16 %v4608_v51, %v4610_v19  ;;  %v4617_v23 = vld [vmem:[#allocation2 + $0x31] sm:$0xff]  ;;  %v4619_v24 = vld [vmem:[#allocation2 + $0x48] sm:$0xff]  ;;  %v4621_v25 = vld [vmem:[#allocation2 + $0x39] sm:$0xff]  ;;  %s2640_s24 = sshll.u32 %s3739_s16, 6  ;;  %s5776_s15 = sld [smem:[#allocation15_spill]] }
 0x3b0   : > { %3416 = vrot.lane.b32.xlu1 %v3415_v50, %s3760_s1  ;;  %v4623_v26 = vld [vmem:[#allocation2 + $0x50] sm:$0xff]  ;;  %v3425_v29 = vpack.i.bf16 %v4617_v23, %v4619_v24  ;;  %v4633_v32 = vld [vmem:[#allocation2 + $0x60] sm:$0xff]  ;;  %v4637_v34 = vld [vmem:[#allocation2 + $0x68] sm:$0xff]  ;;  %s2423_s27 = sadd.s32 %s2653_s4, %s2640_s24  ;;  %s5779_s5 = sld [smem:[#allocation71_spill]] }
 0x3b1   : > { %v3430_v30 = vpack.i.bf16 %v4621_v25, %v4623_v26  ;;  %v4631_v31 = vld [vmem:[#allocation2 + $0x49] sm:$0xff]  ;;  %v4635_v33 = vld [vmem:[#allocation2 + $0x51] sm:$0xff]  ;;  %v4645_v37 = vld [vmem:[#allocation2 + $0x61] sm:$0xff]  ;;  %s2641_s16 = sshll.u32 %s2423_s27, 7  ;;  %s2410_s26 = scalar_lea.sflag [#allocation5], %s4049_s17 }
 0x3b2   : > { %v3435_v35 = vpack.i.bf16 %v4631_v31, %v4633_v32  ;;  %v3440_v36 = vpack.i.bf16 %v4635_v33, %v4637_v34  ;;  %v4647_v38 = vld [vmem:[#allocation2 + $0x78] sm:$0xff]  ;;  %v4649_v39 = vld [vmem:[#allocation2 + $0x69] sm:$0xff]  ;;  %v4651_v40 = vld [vmem:[#allocation2 + $0x80] sm:$0xff] }
 0x3b3   : > { %3411 = vrot.lane.b32.xlu0 %v3410_v20, %s3760_s1  ;;  %v3445_v41 = vpack.i.bf16 %v4645_v37, %v4647_v38  ;;  %v3450_v42 = vpack.i.bf16 %v4649_v39, %v4651_v40  ;;  %v4659_v43 = vld [vmem:[#allocation2 + $0x79] sm:$0xff]  ;;  %v4661_v21 = vld [vmem:[#allocation2 + $0x90] sm:$0xff]  ;;  %v4663_v46 = vld [vmem:[#allocation2 + $0x81] sm:$0xff] }
 0x3b4   : > { %3421 = vrot.lane.b32.xlu1 %v3420_v22, %s3760_s1  ;;  %5713 = vst [vmem:[#allocation52_spill] sm:$0xff] %v4663_v46  ;;  %v4665_v48 = vld [vmem:[#allocation2 + $0x98] sm:$0xff]  ;;  %v1514_v50 = vld [vmem:[%s5714_s20 + $0x80] sm:$0xff]  ;;  %v1515_v20 = vld [vmem:[%s5714_s20 + $0x88] sm:$0xff]  ;;  %v3455_v0 = vpack.i.bf16 %v4659_v43, %v4661_v21 }
 0x3b5   : > { %v4673_v22 = vld [vmem:[#allocation2 + $0x91] sm:$0xff]  ;;  %v4699_v12 = vld [vmem:[#allocation2 + $0xa8] sm:$0xff]  ;;  %v4707_v8 = vld [vmem:[#allocation2 + $0x99] sm:$0xff]  ;;  %p5780_p12 = scmp.ne.s32.totalorder %s5776_s15, 0 }
 0x3b6   : > { %5715 = vst [vmem:[#allocation53_spill] sm:$0xff] %v4673_v22  ;;  %v1501_v18 = vld [vmem:[%s5714_s20 + $0x18] sm:$0xff]  ;;  %v1519_v14 = vld [vmem:[%s5714_s20 + $0xa8] sm:$0xff]  ;;  %5716 = vst [vmem:[#allocation54_spill] sm:$0xff] %v4707_v8  ;;  %s5498_s28 = scalar_lea.hbm %s5779_s5, %s2641_s16 }
 0x3b7   : > { %3426 = vrot.lane.b32.xlu0 %v3425_v29, %s3760_s1  ;;  %v3130_v29 = vpack.c.bf16 %v1515_v20, %v1514_v50  ;;  %v1517_v50 = vld [vmem:[%s5714_s20 + $0x98] sm:$0xff]  ;;  %v1500_v20 = vld [vmem:[%s5714_s20 + $0x10] sm:$0xff]  ;;  %v4748_v55 = vld [vmem:[#allocation2 + $0x22] sm:$0xff] }
 0x3b8   : > { %3431 = vrot.lane.b32.xlu1 %v3430_v30, %s3760_s1  ;;  %v1498_v30 = vld [vmem:[%s5714_s20] sm:$0xff]  ;;  %v4709_v10 = vld [vmem:[#allocation2 + $0xb0] sm:$0xff]  ;;  %v1505_v59 = vld [vmem:[%s5714_s20 + $0x38] sm:$0xff] }
 0x3b9   : > { %3131 = vmatprep.subr.bf16.mxu0 %v3130_v29  ;;  %5717 = vst [vmem:[#allocation55_spill] sm:$0xff] %v4709_v10  ;;  %v1502_v29 = vld [vmem:[%s5714_s20 + $0x20] sm:$0xff]  ;;  %v1531_v53 = vld [vmem:[%s5714_s20 + $0x108] sm:$0xff]  ;;  %v4779_v15 = vld [vmem:[#allocation2 + $0x32] sm:$0xff] }
 0x3ba   : > { %v4737_v63 = vld [vmem:[#allocation2 + $0x1a] sm:$0xff]  ;;  %v1551_v13 = vld [vmem:[%s5714_s20 + $0x1a8] sm:$0xff]  ;;  %v4856_v7 = vld [vmem:[#allocation2 + $0x52] sm:$0xff] }
 0x3bb   : > { %3436 = vrot.lane.b32.xlu0 %v3435_v35, %s3760_s1  ;;  %v1499_v35 = vld [vmem:[%s5714_s20 + $0x8] sm:$0xff]  ;;  %v1530_v28 = vld [vmem:[%s5714_s20 + $0x100] sm:$0xff]  ;;  %v1536_v5 = vld [vmem:[%s5714_s20 + $0x130] sm:$0xff] }
 0x3bc   : > { %3441 = vrot.lane.b32.xlu1 %v3440_v36, %s3760_s1  ;;  %v1516_v36 = vld [vmem:[%s5714_s20 + $0x90] sm:$0xff]  ;;  %v3132_v16 = vpack.c.bf16 %v1499_v35, %v1498_v30  ;;  %v1518_v35 = vld [vmem:[%s5714_s20 + $0xa0] sm:$0xff]  ;;  %v1537_v62 = vld [vmem:[%s5714_s20 + $0x138] sm:$0xff] }
 0x3bd   : > { %v3134_v30 = vpack.c.bf16 %v1517_v50, %v1516_v36  ;;  %v3138_v4 = vpack.c.bf16 %v1519_v14, %v1518_v35  ;;  %v1503_v36 = vld [vmem:[%s5714_s20 + $0x28] sm:$0xff]  ;;  %v3465_v50 = vpack.i.bf16 %v4673_v22, %v4699_v12  ;;  %v1521_v14 = vld [vmem:[%s5714_s20 + $0xb8] sm:$0xff]  ;;  %v1550_v11 = vld [vmem:[%s5714_s20 + $0x1a0] sm:$0xff] }
 0x3be   : > { %3133 = vmatpush3.bf16.msra.mxu0 %v3132_v16  ;;  %v1520_v16 = vld [vmem:[%s5714_s20 + $0xb0] sm:$0xff]  ;;  %v4735_v35 = vld [vmem:[#allocation2 + $0xc8] sm:$0xff]  ;;  %v3140_v6 = vpack.c.bf16 %v1503_v36, %v1502_v29  ;;  %v1506_v36 = vld [vmem:[%s5714_s20 + $0x40] sm:$0xff] }
 0x3bf   : > { %3446 = vrot.lane.b32.xlu0 %v3445_v41, %s3760_s1  ;;  %v3460_v41 = vpack.i.bf16 %v4663_v46, %v4665_v48  ;;  %3135 = vmatprep.subr.bf16.mxu0 %v3134_v30  ;;  %v4731_v30 = vld [vmem:[#allocation2 + $0xc0] sm:$0xff]  ;;  %5721 = vst [vmem:[#allocation59_spill] sm:$0xff] %v4735_v35  ;;  %v3142_v2 = vpack.c.bf16 %v1521_v14, %v1520_v16  ;;  %v1547_v16 = vld [vmem:[%s5714_s20 + $0x188] sm:$0xff]  ;;  %v1512_v58 = vld [vmem:[%s5714_s20 + $0x70] sm:$0xff] }
 0x3c0   : > { %3451 = vrot.lane.b32.xlu1 %v3450_v42, %s3760_s1  ;;  %v3136_v42 = vpack.c.bf16 %v1501_v18, %v1500_v20  ;;  %v3470_v18 = vpack.i.bf16 %v4707_v8, %v4709_v10  ;;  %v4729_v20 = vld [vmem:[#allocation2 + $0xa9] sm:$0xff]  ;;  %5719 = vst [vmem:[#allocation57_spill] sm:$0xff] %v4731_v30  ;;  %v1510_v3 = vld [vmem:[%s5714_s20 + $0x60] sm:$0xff]  ;;  %v1541_v56 = vld [vmem:[%s5714_s20 + $0x158] sm:$0xff] }
 0x3c1   : > { %5718 = vst [vmem:[#allocation56_spill] sm:$0xff] %v4729_v20  ;;  %v3475_v61 = vpack.i.bf16 %v4729_v20, %v4731_v30  ;;  %v1538_v60 = vld [vmem:[%s5714_s20 + $0x140] sm:$0xff]  ;;  %v1539_v54 = vld [vmem:[%s5714_s20 + $0x148] sm:$0xff]  ;;  %v4989_v27 = vld [vmem:[#allocation2 + $0xb2] sm:$0xff] }
 0x3c2   : > { %3137 = vmatpush3.bf16.msra.mxu0 %v3136_v42  ;;  %v1523_v42 = vld [vmem:[%s5714_s20 + $0xc8] sm:$0xff]  ;;  %5723 = vst [vmem:[#allocation61_spill] sm:$0xff] %v4989_v27 }
 0x3c3   : > { %3456 = vrot.lane.b32.xlu0 %v3455_v0, %s3760_s1  ;;  %v4733_v0 = vld [vmem:[#allocation2 + $0xb1] sm:$0xff]  ;;  %3139 = vmatprep.subr.bf16.mxu0 %v3138_v4  ;;  %v1522_v4 = vld [vmem:[%s5714_s20 + $0xc0] sm:$0xff] }
 0x3c4   : > { %3461 = vrot.lane.b32.xlu1 %v3460_v41, %s3760_s1  ;;  %5720 = vst [vmem:[#allocation58_spill] sm:$0xff] %v4733_v0  ;;  %v1504_v41 = vld [vmem:[%s5714_s20 + $0x30] sm:$0xff]  ;;  %v3480_v29 = vpack.i.bf16 %v4733_v0, %v4735_v35  ;;  %v3146_v17 = vpack.c.bf16 %v1523_v42, %v1522_v4  ;;  %v1549_v4 = vld [vmem:[%s5714_s20 + $0x198] sm:$0xff] }
 0x3c5   : > { %v3144_v14 = vpack.c.bf16 %v1505_v59, %v1504_v41  ;;  %v1524_v59 = vld [vmem:[%s5714_s20 + $0xd0] sm:$0xff]  ;;  %v4787_v41 = vpack.c.bf16 %v1531_v53, %v1530_v28  ;;  %v1533_v53 = vld [vmem:[%s5714_s20 + $0x118] sm:$0xff] }
 0x3c6   : > { %3141 = vmatpush3.bf16.msra.mxu0 %v3140_v6  ;;  %v1525_v6 = vld [vmem:[%s5714_s20 + $0xd8] sm:$0xff]  ;;  %v1532_v28 = vld [vmem:[%s5714_s20 + $0x110] sm:$0xff] }
 0x3c7   : > { %3466 = vrot.lane.b32.xlu0 %v3465_v50, %s3760_s1  ;;  %v1546_v50 = vld [vmem:[%s5714_s20 + $0x180] sm:$0xff]  ;;  %3143 = vmatprep.subr.bf16.mxu0 %v3142_v2  ;;  %v3485_v2 = vpack.i.bf16 %v4737_v63, %v4617_v23  ;;  %v4994_v35 = vld [vmem:[#allocation2 + $0xc9] sm:$0xff] }
 0x3c8   : > { %3471 = vrot.lane.b32.xlu1 %v3470_v18, %s3760_s1  ;;  %v1507_v18 = vld [vmem:[%s5714_s20 + $0x48] sm:$0xff]  ;;  %v4771_v57 = vpack.c.bf16 %v1547_v16, %v1546_v50  ;;  %v1548_v50 = vld [vmem:[%s5714_s20 + $0x190] sm:$0xff]  ;;  %v4808_v23 = vld [vmem:[#allocation2 + $0x3a] sm:$0xff]  ;;  %v4812_v16 = vpack.c.bf16 %v1533_v53, %v1532_v28  ;;  %v3150_v53 = vpack.c.bf16 %v1525_v6, %v1524_v59  ;;  %5724 = vst [vmem:[#allocation62_spill] sm:$0xff] %v4994_v35 }
 0x3c9   : > { %v4810_v42 = vpack.c.bf16 %v1549_v4, %v1548_v50  ;;  %v4824_v50 = vpack.c.bf16 %v1551_v13, %v1550_v11  ;;  %v1534_v4 = vld [vmem:[%s5714_s20 + $0x120] sm:$0xff]  ;;  %v1535_v28 = vld [vmem:[%s5714_s20 + $0x128] sm:$0xff]  ;;  %v1552_v11 = vld [vmem:[%s5714_s20 + $0x1b0] sm:$0xff]  ;;  %v3500_v59 = vpack.i.bf16 %v4808_v23, %v4635_v33 }
 0x3ca   : > { %3274 = vmatprep.subr.bf16.mxu1 %v4771_v57  ;;  %3145 = vmatpush3.bf16.msra.mxu0 %v3144_v14  ;;  %v1553_v13 = vld [vmem:[%s5714_s20 + $0x1b8] sm:$0xff]  ;;  %v1526_v14 = vld [vmem:[%s5714_s20 + $0xe0] sm:$0xff]  ;;  %v4854_v6 = vld [vmem:[#allocation2 + $0x4a] sm:$0xff] }
 0x3cb   : > { %3476 = vrot.lane.b32.xlu0 %v3475_v61, %s3760_s1  ;;  %v3490_v61 = vpack.i.bf16 %v4748_v55, %v4621_v25  ;;  %3282 = vmatpush3.bf16.msra.mxu1 %v4787_v41  ;;  %v1508_v25 = vld [vmem:[%s5714_s20 + $0x50] sm:$0xff] }
 0x3cc   : > { %3481 = vrot.lane.b32.xlu1 %v3480_v29, %s3760_s1  ;;  %v3148_v29 = vpack.c.bf16 %v1507_v18, %v1506_v36  ;;  %3147 = vmatprep.subr.bf16.mxu0 %v3146_v17  ;;  %v1509_v36 = vld [vmem:[%s5714_s20 + $0x58] sm:$0xff]  ;;  %v3495_v17 = vpack.i.bf16 %v4779_v15, %v4631_v31  ;;  %v1527_v18 = vld [vmem:[%s5714_s20 + $0xe8] sm:$0xff] }
 0x3cd   : > { %3275 = vmatprep.subr.bf16.mxu1 %v4810_v42  ;;  %v3152_v9 = vpack.c.bf16 %v1509_v36, %v1508_v25  ;;  %v1554_v25 = vld [vmem:[%s5714_s20 + $0x1c0] sm:$0xff]  ;;  %v3505_v36 = vpack.i.bf16 %v4854_v6, %v4645_v37  ;;  %v5016_v30 = vld [vmem:[#allocation2 + $0xca] sm:$0xff] }
 0x3ce   : > { %3149 = vmatpush3.bf16.msra.mxu0 %v3148_v29  ;;  %v1511_v29 = vld [vmem:[%s5714_s20 + $0x68] sm:$0xff]  ;;  %5726 = vst [vmem:[#allocation64_spill] sm:$0xff] %v5016_v30 }
 0x3cf   : > { %3486 = vrot.lane.b32.xlu0 %v3485_v2, %s3760_s1  ;;  %3283 = vmatpush3.bf16.msra.mxu1 %v4812_v16  ;;  %v4859_v2 = vpack.c.bf16 %v1535_v28, %v1534_v4  ;;  %v3154_v4 = vpack.c.bf16 %v1527_v18, %v1526_v14  ;;  %v1555_v28 = vld [vmem:[%s5714_s20 + $0x1c8] sm:$0xff]  ;;  %v3156_v1 = vpack.c.bf16 %v1511_v29, %v1510_v3  ;;  %v1513_v3 = vld [vmem:[%s5714_s20 + $0x78] sm:$0xff] }
 0x3d0   : > { %3491 = vrot.lane.b32.xlu1 %v3490_v61, %s3760_s1  ;;  %3276 = vmatprep.subr.bf16.mxu1 %v4824_v50  ;;  %v4865_v61 = vpack.c.bf16 %v1553_v13, %v1552_v11  ;;  %v1529_v11 = vld [vmem:[%s5714_s20 + $0xf8] sm:$0xff]  ;;  %v3510_v13 = vpack.i.bf16 %v4856_v7, %v4649_v39  ;;  %v4894_v14 = vld [vmem:[#allocation2 + $0x62] sm:$0xff]  ;;  %v4896_v18 = vld [vmem:[#allocation2 + $0x6a] sm:$0xff] }
 0x3d1   : > { %3151 = vmatprep.subr.bf16.mxu0 %v3150_v53  ;;  %v1528_v53 = vld [vmem:[%s5714_s20 + $0xf0] sm:$0xff]  ;;  %v3515_v29 = vpack.i.bf16 %v4894_v14, %v4659_v43 }
 0x3d2   : > { %3153 = vmatpush3.bf16.msra.mxu0 %v3152_v9  ;;  %v1557_v9 = vld [vmem:[%s5714_s20 + $0x1d8] sm:$0xff] }
 0x3d3   : > { %3496 = vrot.lane.b32.xlu0 %v3495_v17, %s3760_s1  ;;  %3284 = vmatpush3.bf16.msra.mxu1 %v4859_v2  ;;  %v4899_v17 = vpack.c.bf16 %v1537_v62, %v1536_v5  ;;  %v3158_v62 = vpack.c.bf16 %v1529_v11, %v1528_v53  ;;  %v1556_v5 = vld [vmem:[%s5714_s20 + $0x1d0] sm:$0xff]  ;;  %v4933_v53 = vld [vmem:[#allocation2 + $0x82] sm:$0xff]  ;;  %v3160_v11 = vpack.c.bf16 %v1513_v3, %v1512_v58 }
 0x3d4   : > { %3501 = vrot.lane.b32.xlu1 %v3500_v59, %s3760_s1  ;;  %3277 = vmatprep.subr.bf16.mxu1 %v4865_v61  ;;  %v4905_v59 = vpack.c.bf16 %v1555_v28, %v1554_v25  ;;  %v4928_v25 = vld [vmem:[#allocation2 + $0x7a] sm:$0xff]  ;;  %v4931_v28 = vpack.c.bf16 %v1539_v54, %v1538_v60  ;;  %v1559_v58 = vld [vmem:[%s5714_s20 + $0x1e8] sm:$0xff]  ;;  %v4956_v3 = vld [vmem:[#allocation2 + $0x92] sm:$0xff] }
 0x3d5   : > { %3155 = vmatprep.subr.bf16.mxu0 %v3154_v4  ;;  %v3520_v4 = vpack.i.bf16 %v4896_v18, %v4663_v46  ;;  %v1558_v54 = vld [vmem:[%s5714_s20 + $0x1e0] sm:$0xff]  ;;  %v3525_v60 = vpack.i.bf16 %v4928_v25, %v4673_v22 }
 0x3d6   : > { %3157 = vmatpush3.bf16.msra.mxu0 %v3156_v1  ;;  %v3530_v1 = vpack.i.bf16 %v4933_v53, %v4707_v8  ;;  %v1161_v8 = vld [vmem:[#allocation2 + $0xe1] sm:$0xff] }
 0x3d7   : > { %3506 = vrot.lane.b32.xlu0 %v3505_v36, %s3760_s1  ;;  %3285 = vmatpush3.bf16.msra.mxu1 %v4899_v17  ;;  %v4936_v36 = vpack.c.bf16 %v1557_v9, %v1556_v5  ;;  %v4961_v5 = vld [vmem:[#allocation2 + $0x9a] sm:$0xff]  ;;  %v4964_v9 = vpack.c.bf16 %v1559_v58, %v1558_v54  ;;  %v4985_v58 = vld [vmem:[#allocation2 + $0xaa] sm:$0xff] }
 0x3d8   : > { %3511 = vrot.lane.b32.xlu1 %v3510_v13, %s3760_s1  ;;  %3278 = vmatprep.subr.bf16.mxu1 %v4905_v59  ;;  %v1540_v13 = vld [vmem:[%s5714_s20 + $0x150] sm:$0xff]  ;;  %v3540_v54 = vpack.i.bf16 %v4961_v5, %v4733_v0  ;;  %v1545_v0 = vld [vmem:[%s5714_s20 + $0x178] sm:$0xff] }
 0x3d9   : > { %3159 = vmatprep.subr.bf16.mxu0 %v3158_v62  ;;  %v4959_v62 = vpack.c.bf16 %v1541_v56, %v1540_v13  ;;  %v1560_v56 = vld [vmem:[%s5714_s20 + $0x1f0] sm:$0xff]  ;;  %v3535_v13 = vpack.i.bf16 %v4956_v3, %v4729_v20 }
 0x3da   : > { %3161 = vmatpush3.bf16.msra.mxu0 %v3160_v11  ;;  %v1561_v11 = vld [vmem:[%s5714_s20 + $0x1f8] sm:$0xff] }
 0x3db   : > { %3516 = vrot.lane.b32.xlu0 %v3515_v29, %s3760_s1  ;;  %3286 = vmatpush3.bf16.msra.mxu1 %v4931_v28  ;;  %v1542_v29 = vld [vmem:[%s5714_s20 + $0x160] sm:$0xff] }
 0x3dc   : > { %3521 = vrot.lane.b32.xlu1 %v3520_v4, %s3760_s1  ;;  %3279 = vmatprep.subr.bf16.mxu1 %v4936_v36  ;;  %v1543_v4 = vld [vmem:[%s5714_s20 + $0x168] sm:$0xff] }
 0x3dd   : > { %3163 = vmatprep.subr.bf16.mxu0 %v4771_v57  ;;  %v4987_v57 = vld [vmem:[#allocation2 + $0xc1] sm:$0xff]  ;;  %v4992_v52 = vpack.c.bf16 %v1543_v4, %v1542_v29  ;;  %v3550_v4 = vpack.i.bf16 %v4989_v27, %v4994_v35 }
 0x3de   : > { %5722 = vst [vmem:[#allocation60_spill] sm:$0xff] %v4987_v57  ;;  %v3545_v29 = vpack.i.bf16 %v4985_v58, %v4987_v57  ;;  %v1033_v35 = vld [vmem:[#allocation2] sm:$0xff] }
 0x3df   : > { %3526 = vrot.lane.b32.xlu0 %v3525_v60, %s3760_s1  ;;  %3287 = vmatpush3.bf16.msra.mxu1 %v4959_v62  ;;  %v4997_v60 = vpack.c.bf16 %v1561_v11, %v1560_v56  ;;  %v5011_v56 = vld [vmem:[#allocation2 + $0xc2] sm:$0xff]  ;;  %v1160_v11 = vld [vmem:[#allocation2 + $0xd9] sm:$0xff] }
 0x3e0   : > { %3531 = vrot.lane.b32.xlu1 %v3530_v1, %s3760_s1  ;;  %3280 = vmatprep.subr.bf16.mxu1 %v4964_v9  ;;  %v1544_v1 = vld [vmem:[%s5714_s20 + $0x170] sm:$0xff]  ;;  %5725 = vst [vmem:[#allocation63_spill] sm:$0xff] %v5011_v56 }
 0x3e1   : > { %v5014_v20 = vpack.c.bf16 %v1545_v0, %v1544_v1  ;;  %v1065_v1 = vld [vmem:[#allocation2 + $0x2] sm:$0xff] }
 0x3e3   : > { %3536 = vrot.lane.b32.xlu0 %v3535_v13, %s3760_s1  ;;  %3288 = vmatpush3.bf16.msra.mxu1 %v4992_v52  ;;  %v3555_v13 = vpack.i.bf16 %v5011_v56, %v1160_v11 }
 0x3e4   : > { %3541 = vrot.lane.b32.xlu1 %v3540_v54, %s3760_s1  ;;  %3281 = vmatprep.subr.bf16.mxu1 %v4997_v60  ;;  %v3560_v54 = vpack.i.bf16 %v5016_v30, %v1161_v8  ;;  %v1066_v8 = vld [vmem:[#allocation2 + $0xa] sm:$0xff] }
 0x3e5   : > { %v1034_v30 = vld [vmem:[#allocation2 + $0x8] sm:$0xff] }
 0x3e7   : > { %3546 = vrot.lane.b32.xlu0 %v3545_v29, %s3760_s1  ;;  %3289 = vmatpush3.bf16.msra.mxu1 %v5014_v20 }
 0x3e8   : > { %3551 = vrot.lane.b32.xlu1 %v3550_v4, %s3760_s1 }
 0x3eb   : > { %3556 = vrot.lane.b32.xlu0 %v3555_v13, %s3760_s1 }
 0x3ec   : > { %3561 = vrot.lane.b32.xlu1 %v3560_v54, %s3760_s1  ;;  %s2426_s1 = sshll.u32 %s4120_s6, 4  ;;  %s5500_s1 = int_to_ptr.vmem [resolvable:$true] %s2426_s1 }
 0x3ed   : > { %s3625_s8 = scalar_lea.vmem %s5500_s1, 4096 }
 0x3ee   : > { %p3626_p9 = scmp.ne.s32.totalorder %s5500_s1, %s3625_s8 }
 0x3f0   : > { %p3627_p1 = pnand %p3626_p9, %p5780_p12 }
 0x3f2   : > { %p3628_p6 = pneg %p3627_p1 }
 0x421   : > { %v3407_v0 = vpop.permute.xlu0 %3406 }
 0x422   : > { %v3409_v57 = vunpack.i.h.bf16 %v3407_v0  ;;  %v3417_v51 = vpop.permute.xlu1 %3416  ;;  %v3408_v22 = vunpack.i.l.bf16 %v3407_v0 }
 0x423   : > { %v3418_v45 = vunpack.i.l.bf16 %v3417_v51  ;;  %v3419_v54 = vunpack.i.h.bf16 %v3417_v51 }
 0x424   : > { %v1450_v29 = vsel %vm882_vm3, %v1065_v1, %v3408_v22  ;;  %v1434_v11 = vsel %vm882_vm3, %v1033_v35, %v3409_v57 }
 0x425   : > { %v3412_v4 = vpop.permute.xlu0 %3411  ;;  %1689 = vmatprep.mubr.f32.mxu0 %v1450_v29  ;;  %v1452_v22 = vsel %vm882_vm3, %v4737_v63, %v3418_v45  ;;  %v1436_v51 = vsel %vm882_vm3, %v4597_v44, %v3419_v54 }
 0x426   : > { %v3414_v56 = vunpack.i.h.bf16 %v3412_v4  ;;  %v3413_v46 = vunpack.i.l.bf16 %v3412_v4  ;;  %1690 = vmatmul.mubr.f32.vlgmr.msra.gmra.mrb[0].mxu0 %v1434_v11  ;;  %v3422_v13 = vpop.permute.xlu1 %3421 }
 0x427   : > { %3165 = vmatpush3.bf16.msra.mxu0 %v4787_v41  ;;  %v3423_v10 = vunpack.i.l.bf16 %v3422_v13  ;;  %v3424_v1 = vunpack.i.h.bf16 %v3422_v13 }
 0x428   : > { %v1451_v27 = vsel %vm882_vm3, %v1066_v8, %v3413_v46  ;;  %v1435_v0 = vsel %vm882_vm3, %v1034_v30, %v3414_v56  ;;  %3167 = vmatprep.subr.bf16.mxu0 %v4810_v42 }
 0x429   : > { %v3427_v35 = vpop.permute.xlu0 %3426  ;;  %1694 = vmatprep.mubr.f32.mxu0 %v1451_v27  ;;  %v1453_v46 = vsel %vm882_vm3, %v4748_v55, %v3423_v10  ;;  %v1437_v27 = vsel %vm882_vm3, %v4604_v49, %v3424_v1 }
 0x42a   : > { %1695 = vmatmul.mubr.f32.gmra.mrb[2].mxu0 %v1435_v0  ;;  %v3432_v57 = vpop.permute.xlu1 %3431  ;;  %v3428_v41 = vunpack.i.l.bf16 %v3427_v35  ;;  %v3429_v30 = vunpack.i.h.bf16 %v3427_v35  ;;  %v1563_v35 = vld [vmem:[%s5714_s20 + $0x208] sm:$0xff] }
 0x42b   : > { %1699 = vmatprep.mubr.f32.mxu0 %v1452_v22  ;;  %3169 = vmatpush3.bf16.msra.mxu0 %v4812_v16  ;;  %v3433_v42 = vunpack.i.l.bf16 %v3432_v57  ;;  %v3434_v10 = vunpack.i.h.bf16 %v3432_v57 }
 0x42c   : > { %3171 = vmatprep.subr.bf16.mxu0 %v4824_v50  ;;  %v1454_v44 = vsel %vm882_vm3, %v4779_v15, %v3428_v41  ;;  %v1438_v50 = vsel %vm882_vm3, %v4602_v47, %v3429_v30 }
 0x42d   : > { %v3437_v63 = vpop.permute.xlu0 %3436  ;;  %v1455_v49 = vsel %vm882_vm3, %v4808_v23, %v3433_v42  ;;  %v1439_v11 = vsel %vm882_vm3, %v4610_v19, %v3434_v10 }
 0x42e   : > { %1700 = vmatmul.mubr.f32.gmra.mrb[4].mxu0 %v1436_v51  ;;  %v3442_v45 = vpop.permute.xlu1 %3441  ;;  %v3438_v56 = vunpack.i.l.bf16 %v3437_v63 }
 0x42f   : > { %1704 = vmatprep.mubr.f32.mxu0 %v1453_v46  ;;  %3173 = vmatpush3.bf16.msra.mxu0 %v4859_v2  ;;  %v3443_v4 = vunpack.i.l.bf16 %v3442_v45  ;;  %v3444_v13 = vunpack.i.h.bf16 %v3442_v45 }
 0x430   : > { %3175 = vmatprep.subr.bf16.mxu0 %v4865_v61  ;;  %v3439_v61 = vunpack.i.h.bf16 %v3437_v63 }
 0x431   : > { %v3447_v16 = vpop.permute.xlu0 %3446  ;;  %v1441_v1 = vsel %vm882_vm3, %v4623_v26, %v3444_v13 }
 0x432   : > { %1705 = vmatmul.mubr.f32.gmra.mrb[6].mxu0 %v1437_v27  ;;  %v3452_v55 = vpop.permute.xlu1 %3451  ;;  %v1440_v54 = vsel %vm882_vm3, %v4619_v24, %v3439_v61  ;;  %v3448_v0 = vunpack.i.l.bf16 %v3447_v16 }
 0x433   : > { %1709 = vmatprep.mubr.f32.mxu0 %v1454_v44  ;;  %3177 = vmatpush3.bf16.msra.mxu0 %v4899_v17  ;;  %v1456_v17 = vsel %vm882_vm3, %v4854_v6, %v3438_v56  ;;  %v3454_v45 = vunpack.i.h.bf16 %v3452_v55 }
 0x434   : > { %3179 = vmatprep.subr.bf16.mxu0 %v4905_v59  ;;  %v1458_v51 = vsel %vm882_vm3, %v4894_v14, %v3448_v0 }
 0x435   : > { %v3457_v2 = vpop.permute.xlu0 %3456  ;;  %v1443_v44 = vsel %vm882_vm3, %v4637_v34, %v3454_v45 }
 0x436   : > { %1710 = vmatmul.mubr.f32.gmra.mrb[8].mxu0 %v1438_v50  ;;  %v5052_v29 = vpop.permute.xlu1 %3461  ;;  %v3459_v42 = vunpack.i.h.bf16 %v3457_v2 }
 0x437   : > { %1714 = vmatprep.mubr.f32.mxu0 %v1455_v49  ;;  %3181 = vmatpush3.bf16.msra.mxu0 %v4931_v28  ;;  %v1457_v28 = vsel %vm882_vm3, %v4856_v7, %v3443_v4  ;;  %v3464_v49 = vunpack.i.h.bf16 %v5052_v29 }
 0x438   : > { %3183 = vmatprep.subr.bf16.mxu0 %v4936_v36  ;;  %v1562_v36 = vld [vmem:[%s5714_s20 + $0x200] sm:$0xff] }
 0x439   : > { %v5060_v8 = vpop.permute.xlu0 %3466  ;;  %v5086_v41 = vpack.c.bf16 %v1563_v35, %v1562_v36 }
 0x43a   : > { %1715 = vmatmul.mubr.f32.gmra.mrb[10].mxu0 %v1439_v11  ;;  %v5062_v59 = vpop.permute.xlu1 %3471  ;;  %v3468_v4 = vunpack.i.l.bf16 %v5060_v8  ;;  %v3469_v35 = vunpack.i.h.bf16 %v5060_v8 }
 0x43b   : > { %1719 = vmatprep.mubr.f32.mxu0 %v1456_v17  ;;  %3185 = vmatpush3.bf16.msra.mxu0 %v4959_v62  ;;  %v3449_v62 = vunpack.i.h.bf16 %v3447_v16  ;;  %v3463_v16 = vunpack.i.l.bf16 %v5052_v29  ;;  %v3474_v8 = vunpack.i.h.bf16 %v5062_v59 }
 0x43c   : > { %3187 = vmatprep.subr.bf16.mxu0 %v4964_v9  ;;  %v3453_v9 = vunpack.i.l.bf16 %v3452_v55 }
 0x43d   : > { %v5070_v22 = vpop.permute.xlu0 %3476  ;;  %v1442_v26 = vsel %vm882_vm3, %v4633_v32, %v3449_v62 }
 0x43e   : > { %1720 = vmatmul.mubr.f32.gmra.mrb[12].mxu0 %v1440_v54  ;;  %v5078_v57 = vpop.permute.xlu1 %3481  ;;  %v1459_v30 = vsel %vm882_vm3, %v4896_v18, %v3453_v9  ;;  %v1461_v54 = vsel %vm882_vm3, %v4933_v53, %v3463_v16 }
 0x43f   : > { %1724 = vmatprep.mubr.f32.mxu0 %v1457_v28  ;;  %3189 = vmatpush3.bf16.msra.mxu0 %v4992_v52  ;;  %v3458_v52 = vunpack.i.l.bf16 %v3457_v2  ;;  %v1444_v2 = vsel %vm882_vm3, %v4647_v38, %v3459_v42 }
 0x440   : > { %3191 = vmatprep.subr.bf16.mxu0 %v4997_v60 }
 0x441   : > { %v5088_v46 = vpop.permute.xlu0 %3486 }
 0x442   : > { %1725 = vmatmul.mubr.f32.gmra.mrb[14].mxu0 %v1441_v1  ;;  %v5090_v63 = vpop.permute.xlu1 %3491  ;;  %v3473_v1 = vunpack.i.l.bf16 %v5062_v59  ;;  %v3479_v59 = vunpack.i.h.bf16 %v5070_v22 }
 0x443   : > { %1729 = vmatprep.mubr.f32.mxu0 %v1458_v51  ;;  %3193 = vmatpush3.bf16.msra.mxu0 %v5014_v20  ;;  %v1460_v20 = vsel %vm882_vm3, %v4928_v25, %v3458_v52 }
 0x444   : > { %3195 = vmatprep.subr.bf16.mxu0 %v5086_v41 }
 0x445   : > { %v5098_v60 = vpop.permute.xlu0 %3496 }
 0x446   : > { %1730 = vmatmul.mubr.f32.gmra.mrb[16].mxu0 %v1442_v26  ;;  %v5100_v27 = vpop.permute.xlu1 %3501 }
 0x447   : > { %1734 = vmatprep.mubr.f32.mxu0 %v1459_v30  ;;  %v3478_v30 = vunpack.i.l.bf16 %v5070_v22  ;;  %v3484_v22 = vunpack.i.h.bf16 %v5078_v57 }
 0x449   : > { %v3507_v55 = vpop.permute.xlu0 %3506 }
 0x44a   : > { %v3509_v10 = vunpack.i.h.bf16 %v3507_v55  ;;  %1735 = vmatmul.mubr.f32.gmra.mrb[18].mxu0 %v1443_v44  ;;  %v3512_v50 = vpop.permute.xlu1 %3511  ;;  %v3508_v56 = vunpack.i.l.bf16 %v3507_v55 }
 0x44b   : > { %v3514_v61 = vunpack.i.h.bf16 %v3512_v50  ;;  %v3513_v11 = vunpack.i.l.bf16 %v3512_v50  ;;  %1739 = vmatprep.mubr.f32.mxu0 %v1460_v20 }
 0x44c   : > { %v1486_v17 = vsel %vm882_vm3, %v4633_v32, %v3508_v56  ;;  %v1470_v13 = vsel %vm882_vm3, %v4631_v31, %v3509_v10  ;;  %v1445_v31 = vsel %vm882_vm3, %v4651_v40, %v3464_v49  ;;  %v3483_v10 = vunpack.i.l.bf16 %v5078_v57 }
 0x44d   : > { %1854 = vmatprep.mubr.f32.mxu1 %v1486_v17  ;;  %v3517_v0 = vpop.permute.xlu0 %3516  ;;  %v1487_v29 = vsel %vm882_vm3, %v4637_v34, %v3513_v11  ;;  %v1471_v32 = vsel %vm882_vm3, %v4635_v33, %v3514_v61  ;;  %v1462_v34 = vsel %vm882_vm3, %v4956_v3, %v3468_v4  ;;  %v1446_v33 = vsel %vm882_vm3, %v4661_v21, %v3469_v35  ;;  %v5727_v17 = vld [vmem:[#allocation61_spill] sm:$0xff] }
 0x44e   : > { %1740 = vmatmul.mubr.f32.gmra.mrb[20].mxu0 %v1444_v2  ;;  %1855 = vmatmul.mubr.f32.vlgmr.msra.gmra.mrb[0].mxu1 %v1470_v13  ;;  %v3518_v28 = vunpack.i.l.bf16 %v3517_v0  ;;  %v3522_v36 = vpop.permute.xlu1 %3521  ;;  %v3519_v62 = vunpack.i.h.bf16 %v3517_v0  ;;  %v3488_v2 = vunpack.i.l.bf16 %v5088_v46  ;;  %v3493_v35 = vunpack.i.l.bf16 %v5090_v63 }
 0x44f   : > { %1744 = vmatprep.mubr.f32.mxu0 %v1461_v54  ;;  %1859 = vmatprep.mubr.f32.mxu1 %v1487_v29  ;;  %v3523_v9 = vunpack.i.l.bf16 %v3522_v36  ;;  %v3524_v26 = vunpack.i.h.bf16 %v3522_v36  ;;  %v3489_v54 = vunpack.i.h.bf16 %v5088_v46  ;;  %v5728_v29 = vld [vmem:[#allocation55_spill] sm:$0xff]  ;;  %v1564_v46 = vld [vmem:[%s5714_s20 + $0x210] sm:$0xff] }
 0x450   : > { %v1488_v51 = vsel %vm882_vm3, %v4647_v38, %v3518_v28  ;;  %v1472_v52 = vsel %vm882_vm3, %v4645_v37, %v3519_v62  ;;  %v1463_v38 = vsel %vm882_vm3, %v4961_v5, %v3473_v1  ;;  %v1447_v37 = vsel %vm882_vm3, %v4665_v48, %v3474_v8  ;;  %v5729_v28 = vld [vmem:[#allocation52_spill] sm:$0xff] }
 0x451   : > { %v3527_v45 = vpop.permute.xlu0 %3526  ;;  %v1489_v44 = vsel %vm882_vm3, %v4651_v40, %v3523_v9  ;;  %v1473_v55 = vsel %vm882_vm3, %v4649_v39, %v3524_v26  ;;  %v1464_v40 = vsel %vm882_vm3, %v4985_v58, %v3478_v30  ;;  %v1448_v39 = vsel %vm882_vm3, %v4699_v12, %v3479_v59  ;;  %v5730_v9 = vld [vmem:[#allocation50_spill] sm:$0xff] }
 0x452   : > { %1745 = vmatmul.mubr.f32.gmra.mrb[22].mxu0 %v1445_v31  ;;  %1860 = vmatmul.mubr.f32.gmra.mrb[2].mxu1 %v1471_v32  ;;  %v3528_v42 = vunpack.i.l.bf16 %v3527_v45  ;;  %v3532_v16 = vpop.permute.xlu1 %3531  ;;  %v3529_v20 = vunpack.i.h.bf16 %v3527_v45  ;;  %v1482_v62 = vsel %vm882_vm3, %v4602_v47, %v3488_v2  ;;  %v1565_v32 = vld [vmem:[%s5714_s20 + $0x218] sm:$0xff]  ;;  %v3494_v47 = vunpack.i.h.bf16 %v5090_v63  ;;  %v1566_v63 = vld [vmem:[%s5714_s20 + $0x220] sm:$0xff] }
 0x453   : > { %1749 = vmatprep.mubr.f32.mxu0 %v1462_v34  ;;  %1864 = vmatprep.mubr.f32.mxu1 %v1488_v51  ;;  %v3533_v50 = vunpack.i.l.bf16 %v3532_v16  ;;  %v3534_v61 = vunpack.i.h.bf16 %v3532_v16  ;;  %v1466_v34 = vsel %vm882_vm3, %v5730_v9, %v3489_v54  ;;  %v3498_v8 = vunpack.i.l.bf16 %v5098_v60  ;;  %v5732_v16 = vld [vmem:[#allocation51_spill] sm:$0xff]  ;;  %v5738_v9 = vld [vmem:[#allocation60_spill] sm:$0xff] }
 0x454   : > { %v1490_v56 = vsel %vm882_vm3, %v4661_v21, %v3528_v42  ;;  %v1474_v11 = vsel %vm882_vm3, %v4659_v43, %v3529_v20  ;;  %v1465_v21 = vsel %vm882_vm3, %v5727_v17, %v3483_v10  ;;  %v1449_v43 = vsel %vm882_vm3, %v5728_v29, %v3484_v22  ;;  %v1567_v42 = vld [vmem:[%s5714_s20 + $0x228] sm:$0xff]  ;;  %v5733_v20 = vld [vmem:[#allocation54_spill] sm:$0xff] }
 0x455   : > { %v3537_v49 = vpop.permute.xlu0 %3536  ;;  %v1491_v13 = vsel %vm882_vm3, %v4665_v48, %v3533_v50  ;;  %v1475_v36 = vsel %vm882_vm3, %v5729_v28, %v3534_v61  ;;  %v1483_v26 = vsel %vm882_vm3, %v4610_v19, %v3493_v35  ;;  %v1467_v59 = vsel %vm882_vm3, %v5732_v16, %v3494_v47  ;;  %v1133_v22 = vld [vmem:[#allocation2 + $0x50] sm:$0xff]  ;;  %v2089_v16 = vld [vmem:[%s5743_s21 + $0x68] sm:$0xff] }
 0x456   : > { %1750 = vmatmul.mubr.f32.gmra.mrb[24].mxu0 %v1446_v33  ;;  %1865 = vmatmul.mubr.f32.gmra.mrb[4].mxu1 %v1472_v52  ;;  %v3538_v4 = vunpack.i.l.bf16 %v3537_v49  ;;  %v3542_v57 = vpop.permute.xlu1 %3541  ;;  %v3539_v0 = vunpack.i.h.bf16 %v3537_v49  ;;  %v3198_v33 = vpack.c.bf16 %v1565_v32, %v1564_v46  ;;  %v1484_v10 = vsel %vm882_vm3, %v4619_v24, %v3498_v8  ;;  %v1568_v61 = vld [vmem:[%s5714_s20 + $0x230] sm:$0xff]  ;;  %v1145_v32 = vld [vmem:[#allocation2 + $0xe0] sm:$0xff] }
 0x457   : > { %1754 = vmatprep.mubr.f32.mxu0 %v1463_v38  ;;  %1869 = vmatprep.mubr.f32.mxu1 %v1489_v44  ;;  %v3543_v31 = vunpack.i.l.bf16 %v3542_v57  ;;  %v3544_v51 = vunpack.i.h.bf16 %v3542_v57  ;;  %v3499_v44 = vunpack.i.h.bf16 %v5098_v60  ;;  %v3202_v50 = vpack.c.bf16 %v1567_v42, %v1566_v63  ;;  %v2080_v8 = vld [vmem:[%s5743_s21 + $0x20] sm:$0xff]  ;;  %v2087_v63 = vld [vmem:[%s5743_s21 + $0x58] sm:$0xff] }
 0x458   : > { %v1492_v48 = vsel %vm882_vm3, %v4699_v12, %v3538_v4  ;;  %v5731_v12 = vld [vmem:[#allocation53_spill] sm:$0xff]  ;;  %v3504_v24 = vunpack.i.h.bf16 %v5100_v27  ;;  %v5735_v4 = vld [vmem:[#allocation56_spill] sm:$0xff] }
 0x459   : > { %v3547_v1 = vpop.permute.xlu0 %3546  ;;  %v1476_v45 = vsel %vm882_vm3, %v5731_v12, %v3539_v0  ;;  %v1493_v30 = vsel %vm882_vm3, %v5728_v29, %v3543_v31  ;;  %v1100_v0 = vld [vmem:[#allocation2 + $0x39] sm:$0xff] }
 0x45a   : > { %1755 = vmatmul.mubr.f32.gmra.mrb[26].mxu0 %v1447_v37  ;;  %1870 = vmatmul.mubr.f32.gmra.mrb[6].mxu1 %v1473_v55  ;;  %v3548_v52 = vunpack.i.l.bf16 %v3547_v1  ;;  %v3552_v38 = vpop.permute.xlu1 %3551  ;;  %v3549_v19 = vunpack.i.h.bf16 %v3547_v1  ;;  %v1477_v37 = vsel %vm882_vm3, %v5733_v20, %v3544_v51  ;;  %v3503_v55 = vunpack.i.l.bf16 %v5100_v27  ;;  %v5736_v29 = vld [vmem:[#allocation59_spill] sm:$0xff]  ;;  %v5739_v51 = vld [vmem:[#allocation62_spill] sm:$0xff]  ;;  %v2084_v42 = vld [vmem:[%s5743_s21 + $0x40] sm:$0xff] }
 0x45b   : > { %1759 = vmatprep.mubr.f32.mxu0 %v1464_v40  ;;  %1874 = vmatprep.mubr.f32.mxu1 %v1490_v56  ;;  %v1099_v40 = vld [vmem:[#allocation2 + $0x31] sm:$0xff]  ;;  %v3553_v60 = vunpack.i.l.bf16 %v3552_v38  ;;  %v5734_v56 = vld [vmem:[#allocation57_spill] sm:$0xff]  ;;  %v1469_v35 = vsel %vm882_vm3, %v1100_v0, %v3504_v24  ;;  %v2088_v20 = vld [vmem:[%s5743_s21 + $0x60] sm:$0xff] }
 0x45c   : > { %v1468_v2 = vsel %vm882_vm3, %v1099_v40, %v3499_v44  ;;  %v1485_v57 = vsel %vm882_vm3, %v1133_v22, %v3503_v55  ;;  %v1144_v27 = vld [vmem:[#allocation2 + $0xd8] sm:$0xff]  ;;  %v2086_v44 = vld [vmem:[%s5743_s21 + $0x50] sm:$0xff] }
 0x45d   : > { %v3557_v49 = vpop.permute.xlu0 %3556  ;;  %v2090_v55 = vld [vmem:[%s5743_s21 + $0x70] sm:$0xff] }
 0x45e   : > { %1760 = vmatmul.mubr.f32.gmra.mrb[28].mxu0 %v1448_v39  ;;  %1875 = vmatmul.mubr.f32.gmra.mrb[8].mxu1 %v1474_v11  ;;  %v1569_v39 = vld [vmem:[%s5714_s20 + $0x238] sm:$0xff]  ;;  %v3554_v11 = vunpack.i.h.bf16 %v3552_v38  ;;  %v3562_v28 = vpop.permute.xlu1 %3561 }
 0x45f   : > { %1764 = vmatprep.mubr.f32.mxu0 %v1465_v21  ;;  %1879 = vmatprep.mubr.f32.mxu1 %v1491_v13  ;;  %v1478_v21 = vsel %vm882_vm3, %v5735_v4, %v3549_v19  ;;  %v3558_v13 = vunpack.i.l.bf16 %v3557_v49  ;;  %v3206_v54 = vpack.c.bf16 %v1569_v39, %v1568_v61  ;;  %v3563_v31 = vunpack.i.l.bf16 %v3562_v28 }
 0x460   : > { %v3564_v1 = vunpack.i.h.bf16 %v3562_v28  ;;  %v3220_v19 = vpack.c.bf16 %v2086_v44, %v2084_v42 }
 0x461   : > { %v1496_v46 = vsel %vm882_vm3, %v1144_v27, %v3558_v13  ;;  %v1497_v47 = vsel %vm882_vm3, %v1145_v32, %v3563_v31 }
 0x462   : > { %1765 = vmatmul.mubr.f32.gmra.mrb[30].mxu0 %v1449_v43  ;;  %1880 = vmatmul.mubr.f32.gmra.mrb[10].mxu1 %v1475_v36  ;;  %v1495_v43 = vsel %vm882_vm3, %v5736_v29, %v3553_v60  ;;  %v3559_v36 = vunpack.i.h.bf16 %v3557_v49  ;;  %v1481_v12 = vsel %vm882_vm3, %v5739_v51, %v3564_v1 }
 0x463   : > { %1834 = vmatprep.mubr.f32.mxu0 %v1482_v62  ;;  %1884 = vmatprep.mubr.f32.mxu1 %v1492_v48  ;;  %v5737_v62 = vld [vmem:[#allocation58_spill] sm:$0xff] }
 0x464   : > { %v1479_v48 = vsel %vm882_vm3, %v5737_v62, %v3554_v11 }
 0x466   : > { %1835 = vmatmul.mubr.f32.vlgmr.msra.gmra.mrb[32].mxu0 %v1466_v34  ;;  %1885 = vmatmul.mubr.f32.gmra.mrb[12].mxu1 %v1476_v45  ;;  %v1480_v34 = vsel %vm882_vm3, %v5738_v9, %v3559_v36  ;;  %v2083_v45 = vld [vmem:[%s5743_s21 + $0x38] sm:$0xff] }
 0x467   : > { %3197 = vmatpush3.bf16.msra.mxu0 %v5086_v41  ;;  %1839 = vmatprep.mubr.f32.mxu0 %v1483_v26  ;;  %v1494_v41 = vsel %vm882_vm3, %v5734_v56, %v3548_v52 }
 0x468   : > { %1889 = vmatprep.mubr.f32.mxu1 %v1493_v30  ;;  %3199 = vmatprep.subr.bf16.mxu0 %v3198_v33  ;;  %v2085_v30 = vld [vmem:[%s5743_s21 + $0x48] sm:$0xff] }
 0x469   : > { %v3218_v38 = vpack.c.bf16 %v2087_v63, %v2085_v30 }
 0x46a   : > { %1840 = vmatmul.mubr.f32.gmra.mrb[34].mxu0 %v1467_v59  ;;  %1890 = vmatmul.mubr.f32.gmra.mrb[14].mxu1 %v1477_v37  ;;  %v2091_v59 = vld [vmem:[%s5743_s21 + $0x78] sm:$0xff] }
 0x46b   : > { %3201 = vmatpush3.bf16.msra.mxu0 %v3198_v33  ;;  %1844 = vmatprep.mubr.f32.mxu0 %v1484_v10  ;;  %v2082_v33 = vld [vmem:[%s5743_s21 + $0x30] sm:$0xff]  ;;  %v3222_v37 = vpack.c.bf16 %v2091_v59, %v2089_v16  ;;  %v3224_v10 = vpack.c.bf16 %v2090_v55, %v2088_v20 }
 0x46c   : > { %1894 = vmatprep.mubr.f32.mxu1 %v1494_v41  ;;  %3203 = vmatprep.subr.bf16.mxu0 %v3202_v50  ;;  %v3216_v52 = vpack.c.bf16 %v2082_v33, %v2080_v8 }
 0x46e   : > { %1845 = vmatmul.mubr.f32.gmra.mrb[36].mxu0 %v1468_v2  ;;  %1895 = vmatmul.mubr.f32.gmra.mrb[16].mxu1 %v1478_v21 }
 0x46f   : > { %3205 = vmatpush3.bf16.msra.mxu0 %v3202_v50  ;;  %1849 = vmatprep.mubr.f32.mxu0 %v1485_v57 }
 0x470   : > { %1899 = vmatprep.mubr.f32.mxu1 %v1495_v43  ;;  %3207 = vmatprep.subr.bf16.mxu0 %v3206_v54 }
 0x472   : > { %1850 = vmatmul.mubr.f32.gmra.mrb[38].mxu0 %v1469_v35  ;;  %1900 = vmatmul.mubr.f32.gmra.mrb[18].mxu1 %v1479_v48 }
 0x473   : > { %3209 = vmatpush3.bf16.msra.mxu0 %v3206_v54  ;;  %1904 = vmatprep.mubr.f32.mxu1 %v1496_v46 }
 0x474   : > { %3010 = vmatprep.mubr.msk.f32.mxu0 %vm882_vm3, %v4779_v15  ;;  %v5740_v15 = vmov 0.0  }
 0x476   : > { %1905 = vmatmul.mubr.f32.gmra.mrb[20].mxu1 %v1480_v34  ;;  %3011 = vmatmul.mubr.msk.f32.vlgmr.msra.gmra.mrb[40].mxu0 %vm882_vm3, %v4808_v23  ;;  %v1176_v23 = vld [vmem:[#allocation2 + $0xda] sm:$0xff] }
 0x477   : > { %1909 = vmatprep.mubr.f32.mxu1 %v1497_v47  ;;  %3013 = vmatprep.mubr.msk.f32.mxu0 %vm882_vm3, %v4854_v6  ;;  %v5742_v6 = vld [vmem:[#allocation64_spill] sm:$0xff] }
 0x478   : > { %v5314_v47 = vld [vmem:[%s5744_s25] ss:$0 sm:$0xff]  ;;  %s3761_s25 = smov [#allocation8]  }
 0x479   : > { %s3629_s30 = sshll.u32 %s3761_s25, 4  ;;  %s3630_s30 = int_to_ptr.vmem [resolvable:$false] %s3629_s30 }
 0x47a   : > { %1910 = vmatmul.mubr.f32.gmra.mrb[22].mxu1 %v1481_v12  ;;  %3014 = vmatmul.mubr.msk.f32.gmra.mrb[42].mxu0 %vm882_vm3, %v4856_v7  ;;  %v5741_v7 = vld [vmem:[#allocation63_spill] sm:$0xff]  ;;  %s3631_s22 = scalar_lea.vmem %s3630_s30, 8192  ;;  %p3632_p0 = scmp.lt.s32.totalorder %s5500_s1, %s3630_s30 }
 0x47b   : > { %3016 = vmatprep.mubr.msk.f32.mxu0 %vm882_vm3, %v4894_v14  ;;  %2216 = vmatprep.mubr.f32.mxu1 %v5740_v15  ;;  %v1177_v14 = vld [vmem:[#allocation2 + $0xe2] sm:$0xff]  ;;  %p3633_p2 = scmp.lt.s32.totalorder %s3631_s22, %s3625_s8 }
 0x47d   : > { %p3634_p10 = por %p3633_p2, %p3632_p0 }
 0x47e   : > { %3017 = vmatmul.mubr.msk.f32.gmra.mrb[44].mxu0 %vm882_vm3, %v4896_v18  ;;  %v2077_v18 = vld [vmem:[%s5743_s21 + $0x8] sm:$0xff] }
 0x47f   : > { %3019 = vmatprep.mubr.msk.f32.mxu0 %vm882_vm3, %v4928_v25  ;;  %v2079_v25 = vld [vmem:[%s5743_s21 + $0x18] sm:$0xff]  ;;  %p3635_p8 = pnand %p3634_p10, %p3628_p6 }
 0x482   : > { %3020 = vmatmul.mubr.msk.f32.gmra.mrb[46].mxu0 %vm882_vm3, %v4933_v53  ;;  %v2076_v53 = vld [vmem:[%s5743_s21] sm:$0xff] }
 0x483   : > { %3022 = vmatprep.mubr.msk.f32.mxu0 %vm882_vm3, %v4956_v3  ;;  %v3210_v3 = vpack.c.bf16 %v2079_v25, %v2077_v18 }
 0x485   : > { %3211 = vmatprep.subr.bf16.mxu1 %v3210_v3 }
 0x486   : > { %3023 = vmatmul.mubr.msk.f32.gmra.mrb[48].mxu0 %vm882_vm3, %v4961_v5  ;;  %v2078_v5 = vld [vmem:[%s5743_s21 + $0x10] sm:$0xff] }
 0x487   : > { %3025 = vmatprep.mubr.msk.f32.mxu0 %vm882_vm3, %v4985_v58  ;;  %v3212_v58 = vpack.c.bf16 %v2078_v5, %v2076_v53 }
 0x489   : > { %3213 = vmatpush1.bf16.msra.mxu1 %v3212_v58 }
 0x48a   : > { %3026 = vmatmul.mubr.msk.f32.gmra.mrb[50].mxu0 %vm882_vm3, %v5727_v17  ;;  %v2081_v17 = vld [vmem:[%s5743_s21 + $0x28] sm:$0xff] }
 0x48b   : > { %3028 = vmatprep.mubr.msk.f32.mxu0 %vm882_vm3, %v5741_v7  ;;  %v3214_v26 = vpack.c.bf16 %v2083_v45, %v2081_v17 }
 0x48d   : > { %3215 = vmatprep.subr.bf16.mxu1 %v3214_v26 }
 0x48e   : > { %3029 = vmatmul.mubr.msk.f32.gmra.mrb[52].mxu0 %vm882_vm3, %v5742_v6  ;;  %3217 = vmatpush1.bf16.msra.mxu1 %v3216_v52 }
 0x48f   : > { %3031 = vmatprep.mubr.msk.f32.mxu0 %vm882_vm3, %v1176_v23  ;;  %3219 = vmatprep.subr.bf16.mxu1 %v3218_v38 }
 0x492   : > { %3032 = vmatmul.mubr.msk.f32.gmra.mrb[54].mxu0 %vm882_vm3, %v1177_v14  ;;  %3221 = vmatpush1.bf16.msra.mxu1 %v3220_v19 }
 0x493   : > { %3223 = vmatprep.subr.bf16.mxu1 %v3222_v37 }
 0x496   : > { %3225 = vmatpush1.bf16.msra.mxu1 %v3224_v10 }
 0x4f9   : > { %v2842_v50 = vpop.f32.mrb[0].mxu0 }
 0x4fa   : > { %v2843_v40 = vpop.f32.mrb[1].mxu0 }
 0x4fb   : > { %v5303_v60 = vadd.f32 %v2843_v40, %v2842_v50 }
 0x4fd   : > { %v2845_v56 = vpop.f32.mrb[2].mxu0 }
 0x4fe   : > { %v2846_v41 = vpop.f32.mrb[3].mxu0 }
 0x4ff   : > { %v5305_v49 = vadd.f32 %v2846_v41, %v2845_v56 }
 0x501   : > { %v2848_v22 = vpop.f32.mrb[4].mxu0 }
 0x502   : > { %v2849_v61 = vpop.f32.mrb[5].mxu0 }
 0x503   : > { %v5307_v39 = vadd.f32 %v2849_v61, %v2848_v22 }
 0x505   : > { %v2851_v24 = vpop.f32.mrb[6].mxu0 }
 0x506   : > { %v2852_v11 = vpop.f32.mrb[7].mxu0 }
 0x507   : > { %v5309_v2 = vadd.f32 %v2852_v11, %v2851_v24 }
 0x509   : > { %v2854_v4 = vpop.f32.mrb[8].mxu0 }
 0x50a   : > { %v2855_v21 = vpop.f32.mrb[9].mxu0 }
 0x50b   : > { %v2856_v13 = vadd.f32 %v2855_v21, %v2854_v4 }
 0x50d   : > { %v2857_v57 = vpop.f32.mrb[10].mxu0  ;;  %v1712_v7 = vadd.f32 %v2856_v13, %v5314_v47 }
 0x50e   : > { %v2858_v54 = vpop.f32.mrb[11].mxu0 }
 0x50f   : > { %v2859_v0 = vadd.f32 %v2858_v54, %v2857_v57 }
 0x511   : > { %v2860_v29 = vpop.f32.mrb[12].mxu0  ;;  %v1717_v5 = vadd.f32 %v2859_v0, %v5314_v47 }
 0x512   : > { %v2861_v43 = vpop.f32.mrb[13].mxu0 }
 0x513   : > { %v2862_v28 = vadd.f32 %v2861_v43, %v2860_v29 }
 0x515   : > { %v2863_v27 = vpop.f32.mrb[14].mxu0  ;;  %v1722_v30 = vadd.f32 %v2862_v28, %v5314_v47 }
 0x516   : > { %v2864_v36 = vpop.f32.mrb[15].mxu0 }
 0x517   : > { %v2865_v35 = vadd.f32 %v2864_v36, %v2863_v27 }
 0x519   : > { %v2866_v62 = vpop.f32.mrb[16].mxu0  ;;  %v1727_v20 = vadd.f32 %v2865_v35, %v5314_v47 }
 0x51a   : > { %v2867_v48 = vpop.f32.mrb[17].mxu0 }
 0x51b   : > { %v2868_v31 = vadd.f32 %v2867_v48, %v2866_v62  ;;  %v1692_v62 = vadd.f32 %v5303_v60, %v5314_v47 }
 0x51d   : > { %v2869_v46 = vpop.f32.mrb[18].mxu0  ;;  %v1732_v22 = vadd.f32 %v2868_v31, %v5314_v47 }
 0x51e   : > { %v2870_v32 = vpop.f32.mrb[19].mxu0 }
 0x51f   : > { %v2871_v1 = vadd.f32 %v2870_v32, %v2869_v46 }
 0x521   : > { %v2872_v9 = vpop.f32.mrb[20].mxu0  ;;  %v2934_v34 = vpop.f32.mrb[0].mxu1  ;;  %v1737_v54 = vadd.f32 %v2871_v1, %v5314_v47 }
 0x522   : > { %v2873_v51 = vpop.f32.mrb[21].mxu0  ;;  %v2935_v12 = vpop.f32.mrb[1].mxu1 }
 0x523   : > { %v2874_v23 = vadd.f32 %v2873_v51, %v2872_v9  ;;  %v2936_v6 = vadd.f32 %v2935_v12, %v2934_v34 }
 0x525   : > { %v2875_v14 = vpop.f32.mrb[22].mxu0  ;;  %v2937_v18 = vpop.f32.mrb[2].mxu1  ;;  %v5317_v25 = vadd.f32 %v2936_v6, %v1712_v7  ;;  %v1742_v48 = vadd.f32 %v2874_v23, %v5314_v47  ;;  %v1697_v7 = vadd.f32 %v5305_v49, %v5314_v47 }
 0x526   : > { %v2876_v53 = vpop.f32.mrb[23].mxu0  ;;  %v2938_v3 = vpop.f32.mrb[3].mxu1 }
 0x527   : > { %v2877_v58 = vadd.f32 %v2876_v53, %v2875_v14  ;;  %v2939_v17 = vadd.f32 %v2938_v3, %v2937_v18 }
 0x529   : > { %v2878_v45 = vpop.f32.mrb[24].mxu0  ;;  %v2940_v8 = vpop.f32.mrb[4].mxu1  ;;  %v5320_v26 = vadd.f32 %v2939_v17, %v1717_v5  ;;  %v1747_v6 = vadd.f32 %v2877_v58, %v5314_v47 }
 0x52a   : > { %v2879_v33 = vpop.f32.mrb[25].mxu0  ;;  %v2941_v52 = vpop.f32.mrb[5].mxu1 }
 0x52b   : > { %v2880_v63 = vadd.f32 %v2879_v33, %v2878_v45  ;;  %v2942_v42 = vadd.f32 %v2941_v52, %v2940_v8  ;;  %v1702_v45 = vadd.f32 %v5307_v39, %v5314_v47 }
 0x52d   : > { %v2881_v38 = vpop.f32.mrb[26].mxu0  ;;  %v2943_v44 = vpop.f32.mrb[6].mxu1  ;;  %v5323_v19 = vadd.f32 %v2942_v42, %v1722_v30  ;;  %v1752_v8 = vadd.f32 %v2880_v63, %v5314_v47 }
 0x52e   : > { %v2882_v16 = vpop.f32.mrb[27].mxu0  ;;  %v2944_v59 = vpop.f32.mrb[7].mxu1 }
 0x52f   : > { %v2883_v37 = vadd.f32 %v2882_v16, %v2881_v38  ;;  %v2945_v55 = vadd.f32 %v2944_v59, %v2943_v44  ;;  %v1707_v16 = vadd.f32 %v5309_v2, %v5314_v47 }
 0x531   : > { %v2884_v10 = vpop.f32.mrb[28].mxu0  ;;  %v2946_v50 = vpop.f32.mrb[8].mxu1  ;;  %v5326_v40 = vadd.f32 %v2945_v55, %v1727_v20  ;;  %v1757_v59 = vadd.f32 %v2883_v37, %v5314_v47 }
 0x532   : > { %v2885_v56 = vpop.f32.mrb[29].mxu0  ;;  %v2947_v41 = vpop.f32.mrb[9].mxu1 }
 0x533   : > { %v2886_v61 = vadd.f32 %v2885_v56, %v2884_v10  ;;  %v2948_v24 = vadd.f32 %v2947_v41, %v2946_v50 }
 0x535   : > { %v2887_v11 = vpop.f32.mrb[30].mxu0  ;;  %v2949_v4 = vpop.f32.mrb[10].mxu1  ;;  %v5329_v21 = vadd.f32 %v2948_v24, %v1732_v22  ;;  %v1762_v24 = vadd.f32 %v2886_v61, %v5314_v47 }
 0x536   : > { %v2888_v13 = vpop.f32.mrb[31].mxu0  ;;  %v2950_v57 = vpop.f32.mrb[11].mxu1 }
 0x537   : > { %v2889_v0 = vadd.f32 %v2888_v13, %v2887_v11  ;;  %v2951_v29 = vadd.f32 %v2950_v57, %v2949_v4 }
 0x539   : > { %v2922_v43 = vpop.f32.mrb[32].mxu0  ;;  %v2952_v28 = vpop.f32.mrb[12].mxu1  ;;  %v5332_v27 = vadd.f32 %v2951_v29, %v1737_v54 }
 0x53a   : > { %v2923_v36 = vpop.f32.mrb[33].mxu0  ;;  %v2953_v35 = vpop.f32.mrb[13].mxu1 }
 0x53b   : > { %v2924_v31 = vadd.f32 %v2923_v36, %v2922_v43  ;;  %v2954_v46 = vadd.f32 %v2953_v35, %v2952_v28  ;;  %v1767_v28 = vadd.f32 %v2889_v0, %v5314_v47 }
 0x53d   : > { %v2925_v32 = vpop.f32.mrb[34].mxu0  ;;  %v2955_v9 = vpop.f32.mrb[14].mxu1  ;;  %v1837_v34 = vadd.f32 %v2924_v31, %v1692_v62  ;;  %v5337_v51 = vadd.f32 %v2954_v46, %v1742_v48 }
 0x53e   : > { %v2926_v1 = vpop.f32.mrb[35].mxu0  ;;  %v2956_v12 = vpop.f32.mrb[15].mxu1 }
 0x53f   : > { %v2927_v14 = vadd.f32 %v2926_v1, %v2925_v32  ;;  %v2957_v18 = vadd.f32 %v2956_v12, %v2955_v9 }
 0x541   : > { %v2928_v53 = vpop.f32.mrb[36].mxu0  ;;  %v2958_v60 = vpop.f32.mrb[16].mxu1  ;;  %v1842_v3 = vadd.f32 %v2927_v14, %v1697_v7  ;;  %v5342_v23 = vadd.f32 %v2957_v18, %v1747_v6 }
 0x542   : > { %v2929_v5 = vpop.f32.mrb[37].mxu0  ;;  %v2959_v17 = vpop.f32.mrb[17].mxu1 }
 0x543   : > { %v2930_v33 = vadd.f32 %v2929_v5, %v2928_v53  ;;  %v2960_v52 = vadd.f32 %v2959_v17, %v2958_v60 }
 0x545   : > { %v2931_v30 = vpop.f32.mrb[38].mxu0  ;;  %v2961_v49 = vpop.f32.mrb[18].mxu1  ;;  %v1847_v42 = vadd.f32 %v2930_v33, %v1702_v45  ;;  %v1897_v58 = vadd.f32 %v2960_v52, %v1752_v8 }
 0x546   : > { %v2932_v38 = vpop.f32.mrb[39].mxu0  ;;  %v2962_v44 = vpop.f32.mrb[19].mxu1 }
 0x547   : > { %v2933_v20 = vadd.f32 %v2932_v38, %v2931_v30  ;;  %v2963_v55 = vadd.f32 %v2962_v44, %v2961_v49 }
 0x549   : > { %v2964_v10 = vpop.f32.mrb[20].mxu1  ;;  %v3012_v50 = vpop.f32.mrb[40].mxu0  ;;  %v1852_v39 = vadd.f32 %v2933_v20, %v1707_v16  ;;  %v1902_v56 = vadd.f32 %v2963_v55, %v1757_v59  ;;  %v2094_v59 = vlaneseq }
 0x54a   : > { %v1987_v63 = vadd.f32 %v3012_v50, %v1842_v3  ;;  %v2965_v41 = vpop.f32.mrb[21].mxu1  ;;  %v1981_v22 = vpop.f32.mrb[41].mxu0 }
 0x54b   : > { %v2966_v11 = vadd.f32 %v2965_v41, %v2964_v10  ;;  %v1982_v4 = vadd.f32 %v1981_v22, %v1837_v34  ;;  %v2095_v20 = vshrl.u32 %v2094_v59, 7  ;;  %v2092_v10 = vld [vmem:[%s5745_s29] sm:$0x3] }
 0x54c   : > { %v2061_v62 = vmax.f32 %v1987_v63, 0.0 }
 0x54d   : > { %v2060_v13 = vmax.f32 %v1982_v4, 0.0  ;;  %v2967_v57 = vpop.f32.mrb[22].mxu1  ;;  %v3015_v54 = vpop.f32.mrb[42].mxu0  ;;  %v1907_v29 = vadd.f32 %v2966_v11, %v1762_v24  ;;  %v2096_v55 = vsub.s32 0, %v2095_v20  ;;  %v2100_v50 = vsub.s32 1, %v2095_v20  ;;  %v5746_v24 = vld [vmem:[#allocation20_spill] sm:$0xff] }
 0x54e   : > { %v1997_v2 = vadd.f32 %v3015_v54, %v1852_v39  ;;  %v2968_v43 = vpop.f32.mrb[23].mxu1  ;;  %v1991_v37 = vpop.f32.mrb[43].mxu0  ;;  %v5747_v4 = vld [vmem:[#allocation18_spill] sm:$0xff] }
 0x54f   : > { %v2969_v36 = vadd.f32 %v2968_v43, %v2967_v57  ;;  %v1992_v35 = vadd.f32 %v1991_v37, %v1847_v42  ;;  %2621 = vmatmul.mubr.msk.f32.vlgmr.msra.gmra.mrb[24].mxu1 %vm882_vm3, %v2060_v13  ;;  %v5394_v39 = vrot.slane %v2092_v10, %v2096_v55 }
 0x550   : > { %2222 = vmatprep.mubr.f32.mxu1 %v5740_v15  ;;  %v2063_v12 = vmax.f32 %v1997_v2, 0.0 }
 0x551   : > { %v3018_v48 = vpop.f32.mrb[44].mxu0  ;;  %v1912_v61 = vadd.f32 %v2969_v36, %v1767_v28  ;;  %v2062_v9 = vmax.f32 %v1992_v35, 0.0  ;;  %v5748_v28 = vld [vmem:[#allocation24_spill] sm:$0xff]  ;;  %v5749_v35 = vld [vmem:[#allocation22_spill] sm:$0xff] }
 0x552   : > { %v2007_v31 = vadd.f32 %v3018_v48, %v5320_v26  ;;  %v2001_v46 = vpop.f32.mrb[45].mxu0 }
 0x553   : > { %v2002_v32 = vadd.f32 %v2001_v46, %v5317_v25  ;;  %2622 = vmatmul.mubr.msk.f32.gmra.mrb[26].mxu1 %vm882_vm3, %v2061_v62 }
 0x554   : > { %2228 = vmatprep.mubr.f32.mxu1 %v5740_v15  ;;  %v2065_v60 = vmax.f32 %v2007_v31, 0.0 }
 0x555   : > { %v3021_v47 = vpop.f32.mrb[46].mxu0  ;;  %v2064_v14 = vmax.f32 %v2002_v32, 0.0 }
 0x556   : > { %v2017_v0 = vadd.f32 %v3021_v47, %v5326_v40  ;;  %v2011_v34 = vpop.f32.mrb[47].mxu0  ;;  %v5750_v47 = vld [vmem:[#allocation28_spill] sm:$0xff] }
 0x557   : > { %v2012_v1 = vadd.f32 %v2011_v34, %v5323_v19  ;;  %2623 = vmatmul.mubr.msk.f32.gmra.mrb[28].mxu1 %vm882_vm3, %v2062_v9  ;;  %v5751_v34 = vld [vmem:[#allocation26_spill] sm:$0xff] }
 0x558   : > { %2234 = vmatprep.mubr.f32.mxu1 %v5740_v15 }
 0x559   : > { %v3024_v26 = vpop.f32.mrb[48].mxu0  ;;  %v2066_v17 = vmax.f32 %v2012_v1, 0.0 }
 0x55a   : > { %v2027_v7 = vadd.f32 %v3024_v26, %v5332_v27  ;;  %v2021_v25 = vpop.f32.mrb[49].mxu0 }
 0x55b   : > { %v2022_v6 = vadd.f32 %v2021_v25, %v5329_v21  ;;  %2624 = vmatmul.mubr.msk.f32.gmra.mrb[30].mxu1 %vm882_vm3, %v2063_v12 }
 0x55c   : > { %2240 = vmatprep.mubr.f32.mxu1 %v5740_v15  ;;  %v2069_v30 = vmax.f32 %v2027_v7, 0.0 }
 0x55d   : > { %v3027_v40 = vpop.f32.mrb[50].mxu0  ;;  %v2068_v52 = vmax.f32 %v2022_v6, 0.0 }
 0x55e   : > { %v2037_v18 = vadd.f32 %v3027_v40, %v5342_v23  ;;  %v2031_v19 = vpop.f32.mrb[51].mxu0  ;;  %v5752_v40 = vld [vmem:[#allocation32_spill] sm:$0xff] }
 0x55f   : > { %v2032_v53 = vadd.f32 %v2031_v19, %v5337_v51  ;;  %2625 = vmatmul.mubr.msk.f32.gmra.mrb[32].mxu1 %vm882_vm3, %v2064_v14  ;;  %v2067_v51 = vmax.f32 %v2017_v0, 0.0  ;;  %v5753_v19 = vld [vmem:[#allocation30_spill] sm:$0xff] }
 0x560   : > { %2246 = vmatprep.mubr.f32.mxu1 %v5740_v15  ;;  %v2071_v42 = vmax.f32 %v2037_v18, 0.0 }
 0x561   : > { %v3030_v27 = vpop.f32.mrb[52].mxu0  ;;  %v2070_v49 = vmax.f32 %v2032_v53, 0.0 }
 0x562   : > { %v2047_v3 = vadd.f32 %v3030_v27, %v1902_v56  ;;  %v2041_v5 = vpop.f32.mrb[53].mxu0  ;;  %v5396_v56 = vrot.slane %v2092_v10, %v2100_v50 }
 0x563   : > { %v2042_v21 = vadd.f32 %v2041_v5, %v1897_v58  ;;  %2626 = vmatmul.mubr.msk.f32.gmra.mrb[34].mxu1 %vm882_vm3, %v2065_v60 }
 0x564   : > { %2252 = vmatprep.mubr.f32.mxu1 %v5740_v15  ;;  %v2073_v38 = vmax.f32 %v2047_v3, 0.0 }
 0x565   : > { %v3033_v45 = vpop.f32.mrb[54].mxu0  ;;  %v2072_v58 = vmax.f32 %v2042_v21, 0.0 }
 0x566   : > { %v2057_v8 = vadd.f32 %v3033_v45, %v1912_v61  ;;  %v2051_v23 = vpop.f32.mrb[55].mxu0  ;;  %v5754_v45 = vld [vmem:[#allocation36_spill] sm:$0xff] }
 0x567   : > { %v2052_v33 = vadd.f32 %v2051_v23, %v1907_v29  ;;  %2627 = vmatmul.mubr.msk.f32.gmra.mrb[36].mxu1 %vm882_vm3, %v2066_v17  ;;  %v5755_v23 = vld [vmem:[#allocation34_spill] sm:$0xff] }
 0x568   : > { %2258 = vmatprep.mubr.f32.mxu1 %v5740_v15  ;;  %v2075_v16 = vmax.f32 %v2057_v8, 0.0 }
 0x569   : > { %v2074_v44 = vmax.f32 %v2052_v33, 0.0 }
 0x56b   : > { %2628 = vmatmul.mubr.msk.f32.gmra.mrb[38].mxu1 %vm882_vm3, %v2067_v51 }
 0x56c   : > { %2264 = vmatprep.mubr.f32.mxu1 %v5740_v15 }
 0x56f   : > { %2629 = vmatmul.mubr.msk.f32.gmra.mrb[40].mxu1 %vm882_vm3, %v2068_v52 }
 0x570   : > { %2270 = vmatprep.mubr.f32.mxu1 %v5740_v15 }
 0x573   : > { %2630 = vmatmul.mubr.msk.f32.gmra.mrb[42].mxu1 %vm882_vm3, %v2069_v30 }
 0x574   : > { %2276 = vmatprep.mubr.f32.mxu1 %v5740_v15 }
 0x577   : > { %2631 = vmatmul.mubr.msk.f32.gmra.mrb[44].mxu1 %vm882_vm3, %v2070_v49 }
 0x578   : > { %2282 = vmatprep.mubr.f32.mxu1 %v5740_v15 }
 0x57b   : > { %2632 = vmatmul.mubr.msk.f32.gmra.mrb[46].mxu1 %vm882_vm3, %v2071_v42 }
 0x57c   : > { %2288 = vmatprep.mubr.f32.mxu1 %v5740_v15 }
 0x57f   : > { %2633 = vmatmul.mubr.msk.f32.gmra.mrb[48].mxu1 %vm882_vm3, %v2072_v58 }
 0x580   : > { %2294 = vmatprep.mubr.f32.mxu1 %v5740_v15 }
 0x583   : > { %2634 = vmatmul.mubr.msk.f32.gmra.mrb[50].mxu1 %vm882_vm3, %v2073_v38  ;;  %v5756_v38 = vld [vmem:[#allocation40_spill] sm:$0xff] }
 0x584   : > { %2300 = vmatprep.mubr.f32.mxu1 %v5740_v15 }
 0x587   : > { %2635 = vmatmul.mubr.msk.f32.gmra.mrb[52].mxu1 %vm882_vm3, %v2074_v44 }
 0x588   : > { %2306 = vmatprep.mubr.f32.mxu1 %v5740_v15 }
 0x58b   : > { %2636 = vmatmul.mubr.msk.f32.gmra.mrb[54].mxu1 %vm882_vm3, %v2075_v16  ;;  %v5757_v16 = vld [vmem:[#allocation38_spill] sm:$0xff] }
 0x622   : > { %v2218_v63 = vpop.f32.mrb[24].mxu1 }
 0x623   : > { %v2219_v15 = vadd.f32 %v2218_v63, %v5394_v39  ;;  %v2220_v41 = vpop.f32.mrb[25].mxu1 }
 0x624   : > { %v2221_v22 = vadd.f32 %v2220_v41, %v5396_v56  ;;  %v5758_v41 = vld [vmem:[#allocation44_spill] sm:$0xff] }
 0x625   : > { %v2313_v11 = vadd.f32 %v2219_v15, %v5746_v24  ;;  %v5759_v24 = vld [vmem:[#allocation42_spill] sm:$0xff] }
 0x626   : > { %v2314_v13 = vadd.f32 %v2221_v22, %v5747_v4  ;;  %v2224_v57 = vpop.f32.mrb[26].mxu1 }
 0x627   : > { %v2345_v54 = vmax.f32 %v2313_v11, 0.0  ;;  %v2225_v29 = vadd.f32 %v2224_v57, %v5394_v39  ;;  %v2226_v2 = vpop.f32.mrb[27].mxu1 }
 0x628   : > { %v2346_v43 = vmax.f32 %v2314_v13, 0.0  ;;  %v2227_v37 = vadd.f32 %v2226_v2, %v5396_v56 }
 0x629   : > { %2377 = vst [vmem:[%s4120_s6] sm:$0xff] %v2345_v54  ;;  %v2315_v36 = vadd.f32 %v2225_v29, %v5748_v28  ;;  %v5761_v28 = vld [vmem:[#allocation46_spill] sm:$0xff] }
 0x62a   : > { %2378 = vst [vmem:[%s4120_s6 + $0x8] sm:$0xff] %v2346_v43  ;;  %v2316_v62 = vadd.f32 %v2227_v37, %v5749_v35  ;;  %v2230_v48 = vpop.f32.mrb[28].mxu1  ;;  %v5760_v43 = vld [vmem:[#allocation48_spill] sm:$0xff] }
 0x62b   : > { %v2347_v61 = vmax.f32 %v2315_v36, 0.0  ;;  %v2231_v31 = vadd.f32 %v2230_v48, %v5394_v39  ;;  %v2232_v46 = vpop.f32.mrb[29].mxu1 }
 0x62c   : > { %v2348_v32 = vmax.f32 %v2316_v62, 0.0  ;;  %v2233_v9 = vadd.f32 %v2232_v46, %v5396_v56 }
 0x62d   : > { %2379 = vst [vmem:[%s4120_s6 + $0x10] sm:$0xff] %v2347_v61  ;;  %v2317_v0 = vadd.f32 %v2231_v31, %v5750_v47  ;;  %v5763_v47 = vld [vmem:[#allocation19_spill] sm:$0xff] }
 0x62e   : > { %2380 = vst [vmem:[%s4120_s6 + $0x18] sm:$0xff] %v2348_v32  ;;  %v2318_v1 = vadd.f32 %v2233_v9, %v5751_v34  ;;  %v2236_v12 = vpop.f32.mrb[30].mxu1  ;;  %v5762_v32 = vld [vmem:[#allocation21_spill] sm:$0xff] }
 0x62f   : > { %v2349_v26 = vmax.f32 %v2317_v0, 0.0  ;;  %v2237_v7 = vadd.f32 %v2236_v12, %v5394_v39  ;;  %v2238_v25 = vpop.f32.mrb[31].mxu1 }
 0x630   : > { %v2350_v6 = vmax.f32 %v2318_v1, 0.0  ;;  %v2239_v14 = vadd.f32 %v2238_v25, %v5396_v56 }
 0x631   : > { %2381 = vst [vmem:[%s4120_s6 + $0x20] sm:$0xff] %v2349_v26  ;;  %v2319_v18 = vadd.f32 %v2237_v7, %v5752_v40  ;;  %v5765_v40 = vld [vmem:[#allocation23_spill] sm:$0xff] }
 0x632   : > { %2382 = vst [vmem:[%s4120_s6 + $0x28] sm:$0xff] %v2350_v6  ;;  %v2320_v53 = vadd.f32 %v2239_v14, %v5753_v19  ;;  %v2242_v60 = vpop.f32.mrb[32].mxu1  ;;  %v5764_v6 = vld [vmem:[#allocation25_spill] sm:$0xff] }
 0x633   : > { %v2351_v27 = vmax.f32 %v2319_v18, 0.0  ;;  %v2243_v3 = vadd.f32 %v2242_v60, %v5394_v39  ;;  %v2244_v5 = vpop.f32.mrb[33].mxu1 }
 0x634   : > { %v2352_v21 = vmax.f32 %v2320_v53, 0.0  ;;  %v2245_v17 = vadd.f32 %v2244_v5, %v5396_v56 }
 0x635   : > { %2383 = vst [vmem:[%s4120_s6 + $0x30] sm:$0xff] %v2351_v27  ;;  %v2321_v8 = vadd.f32 %v2243_v3, %v5754_v45  ;;  %v5767_v45 = vld [vmem:[#allocation27_spill] sm:$0xff] }
 0x636   : > { %2384 = vst [vmem:[%s4120_s6 + $0x38] sm:$0xff] %v2352_v21  ;;  %v2322_v33 = vadd.f32 %v2245_v17, %v5755_v23  ;;  %v2248_v51 = vpop.f32.mrb[34].mxu1  ;;  %v5766_v21 = vld [vmem:[#allocation29_spill] sm:$0xff] }
 0x637   : > { %v2353_v52 = vmax.f32 %v2321_v8, 0.0  ;;  %v2249_v30 = vadd.f32 %v2248_v51, %v5394_v39  ;;  %v2250_v49 = vpop.f32.mrb[35].mxu1 }
 0x638   : > { %v2354_v42 = vmax.f32 %v2322_v33, 0.0  ;;  %v2251_v58 = vadd.f32 %v2250_v49, %v5396_v56 }
 0x639   : > { %2385 = vst [vmem:[%s4120_s6 + $0x40] sm:$0xff] %v2353_v52  ;;  %v2323_v44 = vadd.f32 %v2249_v30, %v5756_v38  ;;  %v5769_v38 = vld [vmem:[#allocation31_spill] sm:$0xff] }
 0x63a   : > { %2386 = vst [vmem:[%s4120_s6 + $0x48] sm:$0xff] %v2354_v42  ;;  %v2324_v59 = vadd.f32 %v2251_v58, %v5757_v16  ;;  %v2254_v20 = vpop.f32.mrb[36].mxu1  ;;  %v5768_v42 = vld [vmem:[#allocation33_spill] sm:$0xff] }
 0x63b   : > { %v2355_v55 = vmax.f32 %v2323_v44, 0.0  ;;  %v2255_v10 = vadd.f32 %v2254_v20, %v5394_v39  ;;  %v2256_v50 = vpop.f32.mrb[37].mxu1 }
 0x63c   : > { %v2356_v63 = vmax.f32 %v2324_v59, 0.0  ;;  %v2257_v15 = vadd.f32 %v2256_v50, %v5396_v56 }
 0x63d   : > { %2387 = vst [vmem:[%s4120_s6 + $0x50] sm:$0xff] %v2355_v55  ;;  %v2325_v22 = vadd.f32 %v2255_v10, %v5758_v41  ;;  %v5771_v41 = vld [vmem:[#allocation35_spill] sm:$0xff] }
 0x63e   : > { %2388 = vst [vmem:[%s4120_s6 + $0x58] sm:$0xff] %v2356_v63  ;;  %v2326_v11 = vadd.f32 %v2257_v15, %v5759_v24  ;;  %v2260_v4 = vpop.f32.mrb[38].mxu1  ;;  %v5770_v63 = vld [vmem:[#allocation37_spill] sm:$0xff] }
 0x63f   : > { %v2357_v13 = vmax.f32 %v2325_v22, 0.0  ;;  %v2261_v57 = vadd.f32 %v2260_v4, %v5394_v39  ;;  %v2262_v54 = vpop.f32.mrb[39].mxu1 }
 0x640   : > { %v2358_v29 = vmax.f32 %v2326_v11, 0.0  ;;  %v2263_v2 = vadd.f32 %v2262_v54, %v5396_v56 }
 0x641   : > { %2389 = vst [vmem:[%s4120_s6 + $0x60] sm:$0xff] %v2357_v13  ;;  %v2327_v37 = vadd.f32 %v2261_v57, %v5760_v43  ;;  %v5773_v43 = vld [vmem:[#allocation39_spill] sm:$0xff] }
 0x642   : > { %2390 = vst [vmem:[%s4120_s6 + $0x68] sm:$0xff] %v2358_v29  ;;  %v2328_v36 = vadd.f32 %v2263_v2, %v5761_v28  ;;  %v2266_v35 = vpop.f32.mrb[40].mxu1  ;;  %v5772_v29 = vld [vmem:[#allocation41_spill] sm:$0xff] }
 0x643   : > { %v2359_v62 = vmax.f32 %v2327_v37, 0.0  ;;  %v2267_v48 = vadd.f32 %v2266_v35, %v5394_v39  ;;  %v2268_v61 = vpop.f32.mrb[41].mxu1 }
 0x644   : > { %v2360_v31 = vmax.f32 %v2328_v36, 0.0  ;;  %v2269_v46 = vadd.f32 %v2268_v61, %v5396_v56 }
 0x645   : > { %2391 = vst [vmem:[%s4120_s6 + $0x70] sm:$0xff] %v2359_v62  ;;  %v2329_v9 = vadd.f32 %v2267_v48, %v5762_v32  ;;  %v5775_v32 = vld [vmem:[#allocation43_spill] sm:$0xff] }
 0x646   : > { %2392 = vst [vmem:[%s4120_s6 + $0x78] sm:$0xff] %v2360_v31  ;;  %v2330_v0 = vadd.f32 %v2269_v46, %v5763_v47  ;;  %v2272_v34 = vpop.f32.mrb[42].mxu1  ;;  %v5774_v31 = vld [vmem:[#allocation45_spill] sm:$0xff] }
 0x647   : > { %v2361_v1 = vmax.f32 %v2329_v9, 0.0  ;;  %v2273_v12 = vadd.f32 %v2272_v34, %v5394_v39  ;;  %v2274_v26 = vpop.f32.mrb[43].mxu1 }
 0x648   : > { %v2362_v7 = vmax.f32 %v2330_v0, 0.0  ;;  %v2275_v25 = vadd.f32 %v2274_v26, %v5396_v56 }
 0x649   : > { %2393 = vst [vmem:[%s4120_s6 + $0x80] sm:$0xff] %v2361_v1  ;;  %v2331_v14 = vadd.f32 %v2273_v12, %v5764_v6  ;;  %v5778_v6 = vld [vmem:[#allocation47_spill] sm:$0xff] }
 0x64a   : > { %2394 = vst [vmem:[%s4120_s6 + $0x88] sm:$0xff] %v2362_v7  ;;  %v2332_v18 = vadd.f32 %v2275_v25, %v5765_v40  ;;  %v2278_v19 = vpop.f32.mrb[44].mxu1  ;;  %v5777_v7 = vld [vmem:[#allocation49_spill] sm:$0xff] }
 0x64b   : > { %v2363_v53 = vmax.f32 %v2331_v14, 0.0  ;;  %v2279_v60 = vadd.f32 %v2278_v19, %v5394_v39  ;;  %v2280_v27 = vpop.f32.mrb[45].mxu1 }
 0x64c   : > { %v2364_v3 = vmax.f32 %v2332_v18, 0.0  ;;  %v2281_v5 = vadd.f32 %v2280_v27, %v5396_v56 }
 0x64d   : > { %2395 = vst [vmem:[%s4120_s6 + $0x90] sm:$0xff] %v2363_v53  ;;  %v2333_v17 = vadd.f32 %v2279_v60, %v5766_v21 }
 0x64e   : > { %2396 = vst [vmem:[%s4120_s6 + $0x98] sm:$0xff] %v2364_v3  ;;  %v2334_v8 = vadd.f32 %v2281_v5, %v5767_v45  ;;  %v2284_v23 = vpop.f32.mrb[46].mxu1 }
 0x64f   : > { %v2365_v33 = vmax.f32 %v2333_v17, 0.0  ;;  %v2285_v51 = vadd.f32 %v2284_v23, %v5394_v39  ;;  %v2286_v52 = vpop.f32.mrb[47].mxu1 }
 0x650   : > { %v2366_v30 = vmax.f32 %v2334_v8, 0.0  ;;  %v2287_v49 = vadd.f32 %v2286_v52, %v5396_v56 }
 0x651   : > { %2397 = vst [vmem:[%s4120_s6 + $0xa0] sm:$0xff] %v2365_v33  ;;  %v2335_v58 = vadd.f32 %v2285_v51, %v5768_v42 }
 0x652   : > { %2398 = vst [vmem:[%s4120_s6 + $0xa8] sm:$0xff] %v2366_v30  ;;  %v2336_v44 = vadd.f32 %v2287_v49, %v5769_v38  ;;  %v2290_v16 = vpop.f32.mrb[48].mxu1 }
 0x653   : > { %v2367_v59 = vmax.f32 %v2335_v58, 0.0  ;;  %v2291_v20 = vadd.f32 %v2290_v16, %v5394_v39  ;;  %v2292_v55 = vpop.f32.mrb[49].mxu1 }
 0x654   : > { %v2368_v10 = vmax.f32 %v2336_v44, 0.0  ;;  %v2293_v50 = vadd.f32 %v2292_v55, %v5396_v56 }
 0x655   : > { %2399 = vst [vmem:[%s4120_s6 + $0xb0] sm:$0xff] %v2367_v59  ;;  %v2337_v15 = vadd.f32 %v2291_v20, %v5770_v63 }
 0x656   : > { %2400 = vst [vmem:[%s4120_s6 + $0xb8] sm:$0xff] %v2368_v10  ;;  %v2338_v22 = vadd.f32 %v2293_v50, %v5771_v41  ;;  %v2296_v24 = vpop.f32.mrb[50].mxu1 }
 0x657   : > { %v2369_v11 = vmax.f32 %v2337_v15, 0.0  ;;  %v2297_v4 = vadd.f32 %v2296_v24, %v5394_v39  ;;  %v2298_v13 = vpop.f32.mrb[51].mxu1 }
 0x658   : > { %v2370_v57 = vmax.f32 %v2338_v22, 0.0  ;;  %v2299_v54 = vadd.f32 %v2298_v13, %v5396_v56 }
 0x659   : > { %2401 = vst [vmem:[%s4120_s6 + $0xc0] sm:$0xff] %v2369_v11  ;;  %v2339_v2 = vadd.f32 %v2297_v4, %v5772_v29 }
 0x65a   : > { %2402 = vst [vmem:[%s4120_s6 + $0xc8] sm:$0xff] %v2370_v57  ;;  %v2340_v37 = vadd.f32 %v2299_v54, %v5773_v43  ;;  %v2302_v28 = vpop.f32.mrb[52].mxu1 }
 0x65b   : > { %v2371_v36 = vmax.f32 %v2339_v2, 0.0  ;;  %v2303_v35 = vadd.f32 %v2302_v28, %v5394_v39  ;;  %v2304_v62 = vpop.f32.mrb[53].mxu1 }
 0x65c   : > { %v2372_v48 = vmax.f32 %v2340_v37, 0.0  ;;  %v2305_v61 = vadd.f32 %v2304_v62, %v5396_v56 }
 0x65d   : > { %2403 = vst [vmem:[%s4120_s6 + $0xd0] sm:$0xff] %v2371_v36  ;;  %v2341_v46 = vadd.f32 %v2303_v35, %v5774_v31 }
 0x65e   : > { %2404 = vst [vmem:[%s4120_s6 + $0xd8] sm:$0xff] %v2372_v48  ;;  %v2342_v9 = vadd.f32 %v2305_v61, %v5775_v32  ;;  %v2308_v47 = vpop.f32.mrb[54].mxu1 }
 0x65f   : > { %v2373_v0 = vmax.f32 %v2341_v46, 0.0  ;;  %v2309_v34 = vadd.f32 %v2308_v47, %v5394_v39  ;;  %v2310_v1 = vpop.f32.mrb[55].mxu1 }
 0x660   : > { %v2374_v12 = vmax.f32 %v2342_v9, 0.0  ;;  %v2311_v26 = vadd.f32 %v2310_v1, %v5396_v56 }
 0x661   : > { %2405 = vst [vmem:[%s4120_s6 + $0xe0] sm:$0xff] %v2373_v0  ;;  %v2343_v25 = vadd.f32 %v2309_v34, %v5777_v7 }
 0x662   : > { %2406 = vst [vmem:[%s4120_s6 + $0xe8] sm:$0xff] %v2374_v12  ;;  %v2344_v14 = vadd.f32 %v2311_v26, %v5778_v6 }
 0x663   : > { %v2375_v40 = vmax.f32 %v2343_v25, 0.0 }
 0x664   : > { %v2376_v39 = vmax.f32 %v2344_v14, 0.0 }
 0x665   : > { %2407 = vst [vmem:[%s4120_s6 + $0xf0] sm:$0xff] %v2375_v40 }
 0x666   : > { %2408 = vst [vmem:[%s4120_s6 + $0xf8] sm:$0xff] %v2376_v39 }
 0x667   : > { %3638 = shalt.err (!%p3635_p8)
}
 0x668   : > { %s3639_s6 = scalar_lea.hbm %s5498_s28, 4096  ;;  %s3643_s24 = scalar_lea.hbm %s5779_s5, 16384 }
 0x669   : > { %p3640_p11 = scmp.ne.s32.totalorder %s5498_s28, %s3639_s6  ;;  %p3644_p3 = scmp.lt.u32.totalorder %s5498_s28, %s5779_s5 }
 0x66a   : > { %p3645_p7 = scmp.lt.u32.totalorder %s3643_s24, %s3639_s6  ;;  %p3647_p9 = scmp.lt.u32.totalorder %s3639_s6, %s5498_s28 }
 0x66b   : > { %p3641_p13 = pnand %p3640_p11, %p5780_p12 }
 0x66c   : > { %p3646_p5 = por %p3645_p7, %p3644_p3 }
 0x66d   : > { %p3642_p4 = pneg %p3641_p13 }
 0x66e   : > { %p3648_p1 = por %p3647_p9, %p3646_p5 }
 0x670   : > { %p3649_p6 = pnand %p3648_p1, %p3642_p4 }
 0x672   : > { %3652 = shalt.err (!%p3649_p6)
}
 0x673   : > { %s3762_s7 = smov 256   ;;  %s3763_s23 = smov 16  }
 0x674   : > { %3294 = dma.vmem_to_hbm [thread:$0]  (%p5780_p12), %s5500_s1, 4096, %s5498_s28, %s2410_s26, %s3762_s7, %s3762_s7, %s3763_s23  }
 0x675 PF: > { %s5781_s8 = sld [smem:[#allocation12_spill]]  ;;  %s5782_s25 = sld [smem:[#allocation16_spill]] }
 0x676   : > { %p3308_p0 = scmp.ge.s32.totalorder %s3751_s19, 2 }
 0x67b   : > { %s2441_s30 = sand.u32 1, %s5781_s8   ;;  %p5783_p2 = scmp.ne.s32.totalorder %s5782_s25, 0 }
 0x67c   : > { %s2442_s22 = scalar_lea.sflag [#allocation5], %s2441_s30 }
 0x67d   : > { %p3304_p10 = pnand %p3308_p0, %p5783_p2 }
 0x67f   : > { %3706 = dma.done.wait (!%p3304_p10), %s2442_s22, 4096  }
 0x680   : > { %3708 = vsyncadd (!%p3304_p10), %s2442_s22, 4294963200  ;;  %s28_s19 = sadd.s32 1, %s3751_s19   ;;  %s5784_s17 = smov %s3982_s12 }
 0x681   : > { %p25_p8 = scmp.ge.s32.totalorder %s28_s19, 6   ;;  %s5785_s15 = sld [smem:[#allocation13_spill]] }
 0x682   : > { %s5786_s1 = sld [smem:[#allocation14_spill]]  ;;  %s5787_s28 = sld [smem:[#allocation17_spill]] }
 0x683   : > { %s5788_s30 = smov %s3715_s10  ;;  %s5789_s10 = smov %s3719_s11 }
 0x684   : > { %s5790_s11 = smov %s3998_s9  ;;  %s5791_s12 = smov %s3727_s13 }
 0x685   : > { %s5792_s13 = smov %s3731_s14  ;;  %s5793_s14 = smov %s5784_s17 }
 0x686   : > { %s5794_s16 = smov %s3747_s18  ;;  %27 = sbr.rel (!%p25_p8) target bundleno = 19 (0x13), region = 137 }
 0x688   : > { %s5795_s17 = smov %s5786_s1  ;;  %s5796_s18 = smov %s5787_s28 }
 0x68d   :  { %2447 = vsyncpa [#allocation4], 1 }
 0x68e   :  { %2449 = vsyncpa [#allocation4 + $0x1], 1 }
 0x68f   :  { %2450 = vsyncpa [#allocation7], 1 }
 0x690   :  { %2452 = vsyncpa [#allocation7 + $0x1], 1 }
 0x691   :  { %2453 = vsyncpa [#allocation5], 1 }
 0x692   :  { %2455 = vsyncpa [#allocation5 + $0x1], 1 }

</bundles_post_ra>
